<compile_context>
chip_gen: v7x
topology: tpu7x:2x2x1
jax: 0.10.0
libtpu: 0.0.40
codegen_flags: <defaults>
</compile_context>

<pallas_src>
import functools
import math

import jax
import jax.numpy as jnp
from jax.experimental import pallas as pl
from jax.experimental.pallas import tpu as pltpu

NHEAD = 8  # nn.TransformerEncoderLayer(nhead=8)


def _layernorm(x, g, b, eps=1e-5):
    mu = jnp.mean(x, axis=-1, keepdims=True)
    var = jnp.mean((x - mu) ** 2, axis=-1, keepdims=True)
    return (x - mu) * jax.lax.rsqrt(var + eps) * g + b


def fused_kernel(x_ref, emb_ref,
                 w_in_ref, b_in_ref, w_out_ref, b_out_ref,
                 ln1_ref, ln2_ref, w1_ref, b1_ref, w2_ref, b2_ref,
                 y_ref, hmean_ref, *, nhead, num_layers):
    """grid = (batch_blocks,): all layers for one block of batch rows.

    Weight refs carry the full L axis (resident in VMEM across the grid);
    activations for the whole block are packed into the matmul M dimension.
    """
    bb, seq, d_model = x_ref.shape
    hd = d_model // nhead
    rows = bb * seq

    h = x_ref[...].reshape(rows, d_model)                         # (Bb*S, D) f32

    for l in range(num_layers):
        # ---- multi-head self attention: one lane-dense QKV matmul ----
        qkv = jnp.dot(h.astype(jnp.bfloat16), w_in_ref[l],
                      preferred_element_type=jnp.float32) + b_in_ref[l]   # (rows, 3D)

        # Tiny per-(batch, head) score path stays f32 (MXU-drain bound anyway).
        def head_slice(base, b, hh):
            return qkv[b * seq:(b + 1) * seq,
                       base + hh * hd: base + (hh + 1) * hd]              # (S, hd)

        q = jnp.stack([head_slice(0, b, hh)
                       for b in range(bb) for hh in range(nhead)], axis=0)
        k = jnp.stack([head_slice(d_model, b, hh)
                       for b in range(bb) for hh in range(nhead)], axis=0)
        v = jnp.stack([head_slice(2 * d_model, b, hh)
                       for b in range(bb) for hh in range(nhead)], axis=0)

        # 1/sqrt(hd) is folded into the Q weights/bias at init time.
        s = jnp.einsum('nqd,nkd->nqk', q, k,
                       preferred_element_type=jnp.float32)                # (n,S,S)
        s = s - jnp.max(s, axis=-1, keepdims=True)
        p = jnp.exp(s)
        p = p / jnp.sum(p, axis=-1, keepdims=True)                        # exact softmax
        o = jnp.einsum('nqk,nkd->nqd', p, v,
                       preferred_element_type=jnp.float32)                # (n,S,hd)

        # Reassemble (rows, D) with static lane/row concats, then one out-proj matmul.
        o2d = jnp.concatenate(
            [jnp.concatenate([o[b * nhead + hh] for hh in range(nhead)], axis=-1)
             for b in range(bb)], axis=0)                                 # (rows, D)
        attn = jnp.dot(o2d.astype(jnp.bfloat16), w_out_ref[l],
                       preferred_element_type=jnp.float32) + b_out_ref[l]

        # ---- add & norm 1 (post-norm, PyTorch default) ----
        ln1 = ln1_ref[l]
        h1 = _layernorm(h + attn, ln1[0:1], ln1[1:2])

        # ---- feed forward (ReLU, PyTorch default activation) ----
        hid = jnp.dot(h1.astype(jnp.bfloat16), w1_ref[l],
                      preferred_element_type=jnp.float32) + b1_ref[l]
        hid = jnp.maximum(hid, 0.0)
        ff = jnp.dot(hid.astype(jnp.bfloat16), w2_ref[l],
                     preferred_element_type=jnp.float32) + b2_ref[l]

        # ---- add & norm 2 ----
        ln2 = ln2_ref[l]
        h = _layernorm(h1 + ff, ln2[0:1], ln2[1:2])

    # ---- epilogue: + emotion embedding (broadcast over seq), mean over seq ----
    for b in range(bb):
        yb = h[b * seq:(b + 1) * seq] + emb_ref[b]                        # (S,D)+(1,D)
        y_ref[b] = yb
        hmean_ref[b] = jnp.mean(yb, axis=0, keepdims=True)


def intensity_extractor_forward(x, emotion_class, params, emb_table, *, block_b=None):
    """Mirrors IntensityExtractor.forward.

    x: (B, S, D) f32, emotion_class: (B, 1) int32.
    Returns (h_mix (B, D), x_out (B, D, S)).
    """
    (w_in, b_in, w_out, b_out, ln1, ln2, w1, b1, w2, b2) = params
    B, S, D = x.shape
    L = w_in.shape[0]
    FF = w1.shape[-1]
    H = NHEAD
    hd = D // H

    if block_b is None:
        block_b = min(B, max(1, 128 // max(S, 1)))  # target M ~ 128 matmul rows/step
    while B % block_b:
        block_b -= 1
    nb = B // block_b

    emb = emb_table[emotion_class]             # (B, 1, D)  embedding gather = glue

    # Advisory cost estimate for XLA's scheduler around the custom call.
    rows = B * S
    flops = int(L * (2 * rows * D * 3 * D + 2 * rows * D * D
                     + 4 * rows * D * FF + 4 * B * H * S * S * hd))
    transcendentals = int(L * B * (H * S * S + 2 * S))
    bytes_accessed = int(sum(int(a.size) * a.dtype.itemsize for a in params)
                         + x.size * 4 + emb.size * 4 + B * S * D * 4 + B * D * 4)

    kernel = functools.partial(fused_kernel, nhead=H, num_layers=L)
    const = lambda i: (0, 0, 0)                # weight blocks: grid-invariant => resident
    y, hm = pl.pallas_call(
        kernel,
        out_shape=(jax.ShapeDtypeStruct((B, S, D), jnp.float32),
                   jax.ShapeDtypeStruct((B, 1, D), jnp.float32)),
        grid=(nb,),
        in_specs=[
            pl.BlockSpec((block_b, S, D), lambda i: (i, 0, 0)),          # x
            pl.BlockSpec((block_b, 1, D), lambda i: (i, 0, 0)),          # emotion emb
            pl.BlockSpec((L, D, 3 * D), const),                          # w_in  (bf16)
            pl.BlockSpec((L, 1, 3 * D), const),                          # b_in
            pl.BlockSpec((L, D, D), const),                              # w_out (bf16)
            pl.BlockSpec((L, 1, D), const),                              # b_out
            pl.BlockSpec((L, 2, D), const),                              # ln1 (g, b)
            pl.BlockSpec((L, 2, D), const),                              # ln2 (g, b)
            pl.BlockSpec((L, D, FF), const),                             # w1 (bf16)
            pl.BlockSpec((L, 1, FF), const),                             # b1
            pl.BlockSpec((L, FF, D), const),                             # w2 (bf16)
            pl.BlockSpec((L, 1, D), const),                              # b2
        ],
        out_specs=(pl.BlockSpec((block_b, S, D), lambda i: (i, 0, 0)),
                   pl.BlockSpec((block_b, 1, D), lambda i: (i, 0, 0))),
        compiler_params=pltpu.CompilerParams(
            dimension_semantics=("parallel",)),   # ~2.5 MiB resident: fits default
                                                  # scoped VMEM on v5e/v6e/v7x
        cost_estimate=pl.CostEstimate(flops=flops,
                                      transcendentals=transcendentals,
                                      bytes_accessed=bytes_accessed),
    )(x, emb, w_in, b_in, w_out, b_out, ln1, ln2, w1, b1, w2, b2)

    x_out = jnp.transpose(y, (0, 2, 1))        # (S,B,D)->(B,D,S) equivalent permute
    h_mix = hm[:, 0, :]                        # (B, D)
    return h_mix, x_out


def init_layer_params(key, D, FF, nhead):
    hd = D // nhead
    ks = jax.random.split(key, 8)
    s = 0.05
    # PyTorch keeps in_proj_weight (3D, D) / out_proj.weight (D, D) with rows as
    # outputs; we generate the transposed (x @ W) versions directly, lane-dense.
    w_in_t = jax.random.normal(ks[0], (D, 3 * D), jnp.float32) * s   # in_proj_weight.T
    b_in = jax.random.normal(ks[1], (3 * D,), jnp.float32) * s
    w_out_t = jax.random.normal(ks[2], (D, D), jnp.float32) * s      # out_proj.weight.T
    b_out = jax.random.normal(ks[3], (D,), jnp.float32) * s
    w1_t = jax.random.normal(ks[4], (D, FF), jnp.float32) * s        # linear1.weight.T
    b1 = jax.random.normal(ks[5], (FF,), jnp.float32) * s
    w2_t = jax.random.normal(ks[6], (FF, D), jnp.float32) * s        # linear2.weight.T
    b2 = jax.random.normal(ks[7], (D,), jnp.float32) * s

    # Fold the 1/sqrt(head_dim) attention scale into the Q projection (weights + bias).
    scale = 1.0 / math.sqrt(hd)
    w_in_t = w_in_t.at[:, :D].multiply(scale)
    b_in = b_in.at[:D].multiply(scale)

    ln1 = jnp.stack([jnp.ones((D,), jnp.float32), jnp.zeros((D,), jnp.float32)])
    ln2 = jnp.stack([jnp.ones((D,), jnp.float32), jnp.zeros((D,), jnp.float32)])

    return (w_in_t.astype(jnp.bfloat16), b_in.reshape(1, 3 * D),
            w_out_t.astype(jnp.bfloat16), b_out.reshape(1, D),
            ln1, ln2,
            w1_t.astype(jnp.bfloat16), b1.reshape(1, FF),
            w2_t.astype(jnp.bfloat16), b2.reshape(1, D))


def init_stacked_params(keys, D, FF, nhead):
    per_layer = [init_layer_params(k, D, FF, nhead) for k in keys]
    return tuple(jnp.stack(arrs) for arrs in zip(*per_layer))


def reference_forward(x, emotion_class, params, emb_table, nhead=NHEAD):
    """Pure-JAX reference with the same mixed-precision choices as the kernel."""
    (w_in, b_in, w_out, b_out, ln1, ln2, w1, b1, w2, b2) = params
    L = w_in.shape[0]
    B, S, D = x.shape
    hd = D // nhead
    h = x
    for l in range(L):
        qkv = jnp.einsum('bsd,de->bse', h.astype(jnp.bfloat16), w_in[l],
                         preferred_element_type=jnp.float32) + b_in[l]
        qkv = qkv.reshape(B, S, 3, nhead, hd)
        q, k, v = qkv[:, :, 0], qkv[:, :, 1], qkv[:, :, 2]        # (B,S,H,hd) f32
        s = jnp.einsum('bqhd,bkhd->bhqk', q, k)
        s = s - jnp.max(s, axis=-1, keepdims=True)
        p = jnp.exp(s)
        p = p / jnp.sum(p, axis=-1, keepdims=True)
        o = jnp.einsum('bhqk,bkhd->bqhd', p, v).reshape(B, S, D)
        attn = jnp.einsum('bsd,de->bse', o.astype(jnp.bfloat16), w_out[l],
                          preferred_element_type=jnp.float32) + b_out[l]
        h1 = _layernorm(h + attn, ln1[l, 0], ln1[l, 1])
        hid = jnp.maximum(
            jnp.einsum('bsd,df->bsf', h1.astype(jnp.bfloat16), w1[l],
                       preferred_element_type=jnp.float32) + b1[l], 0.0)
        ff = jnp.einsum('bsf,fd->bsd', hid.astype(jnp.bfloat16), w2[l],
                        preferred_element_type=jnp.float32) + b2[l]
        h = _layernorm(h1 + ff, ln2[l, 0], ln2[l, 1])
    y = h + emb_table[emotion_class]           # (B,S,D) + (B,1,D)
    return jnp.mean(y, axis=1), jnp.transpose(y, (0, 2, 1))


if __name__ == "__main__":
    B, S = 2, 8
    input_dim = 64          # d_model (nhead=8 -> head_dim=8)
    hidden_dim = 32         # fc output dim (fc is unused in forward())
    num_layers = 2
    num_emotions = 4
    dim_feedforward = 2048  # PyTorch TransformerEncoderLayer default

    key = jax.random.PRNGKey(0)
    k_x, k_emb, *k_layers = jax.random.split(key, 2 + num_layers)

    x = jax.random.normal(k_x, (B, S, input_dim), jnp.float32)
    emotion_class = jnp.array([[1], [3]], dtype=jnp.int32)           # (B, 1)
    emb_table = jax.random.normal(k_emb, (num_emotions, input_dim), jnp.float32) * 0.05
    params = init_stacked_params(k_layers, input_dim, dim_feedforward, NHEAD)
    # TODO(synk): self.fc = Linear(input_dim, hidden_dim) is defined but never
    # used in the PyTorch forward(), so it is intentionally not materialized.

    h_mix, x_out = intensity_extractor_forward(x, emotion_class, params, emb_table)
    jax.block_until_ready((h_mix, x_out))

    assert h_mix.shape == (B, input_dim)
    assert x_out.shape == (B, input_dim, S)

    # Cross-check against a pure-JAX reference using the same precision choices.
    h_ref, x_out_ref = reference_forward(x, emotion_class, params, emb_table)
    assert jnp.allclose(h_mix, h_ref, atol=5e-2, rtol=5e-2), \
        float(jnp.max(jnp.abs(h_mix - h_ref)))
    assert jnp.allclose(x_out, x_out_ref, atol=5e-2, rtol=5e-2), \
        float(jnp.max(jnp.abs(x_out - x_out_ref)))
    print("KERNEL_OK")
</pallas_src>

<mosaic_0001>
module attributes {stable_mosaic.version = 11 : i64} {
  func.func @fused_kernel(%arg0: i32, %arg1: memref<2x8x64xf32, #tpu.memory_space<vmem>>, %arg2: memref<2x1x64xf32, #tpu.memory_space<vmem>>, %arg3: memref<2x64x192xbf16, #tpu.memory_space<vmem>>, %arg4: memref<2x1x192xf32, #tpu.memory_space<vmem>>, %arg5: memref<2x64x64xbf16, #tpu.memory_space<vmem>>, %arg6: memref<2x1x64xf32, #tpu.memory_space<vmem>>, %arg7: memref<2x2x64xf32, #tpu.memory_space<vmem>>, %arg8: memref<2x2x64xf32, #tpu.memory_space<vmem>>, %arg9: memref<2x64x2048xbf16, #tpu.memory_space<vmem>>, %arg10: memref<2x1x2048xf32, #tpu.memory_space<vmem>>, %arg11: memref<2x2048x64xbf16, #tpu.memory_space<vmem>>, %arg12: memref<2x1x64xf32, #tpu.memory_space<vmem>>, %arg13: memref<2x8x64xf32, #tpu.memory_space<vmem>>, %arg14: memref<2x1x64xf32, #tpu.memory_space<vmem>>) attributes {dimension_semantics = [#tpu.dimension_semantics<parallel>], iteration_bounds = array<i64: 1>, scalar_prefetch = 0 : i64, scratch_operands = 0 : i64, tpu.core_type = #tpu.core_type<tc>, window_params = [{transform_indices = @transform_0, window_bounds = array<i64: 2, 8, 64>}, {transform_indices = @transform_1, window_bounds = array<i64: 2, 1, 64>}, {pipeline_mode = #tpu.pipeline_mode<synchronous>, transform_indices = @transform_2, window_bounds = array<i64: 2, 64, 192>}, {pipeline_mode = #tpu.pipeline_mode<synchronous>, transform_indices = @transform_3, window_bounds = array<i64: 2, 1, 192>}, {pipeline_mode = #tpu.pipeline_mode<synchronous>, transform_indices = @transform_4, window_bounds = array<i64: 2, 64, 64>}, {pipeline_mode = #tpu.pipeline_mode<synchronous>, transform_indices = @transform_5, window_bounds = array<i64: 2, 1, 64>}, {pipeline_mode = #tpu.pipeline_mode<synchronous>, transform_indices = @transform_6, window_bounds = array<i64: 2, 2, 64>}, {pipeline_mode = #tpu.pipeline_mode<synchronous>, transform_indices = @transform_7, window_bounds = array<i64: 2, 2, 64>}, {pipeline_mode = #tpu.pipeline_mode<synchronous>, transform_indices = @transform_8, window_bounds = array<i64: 2, 64, 2048>}, {pipeline_mode = #tpu.pipeline_mode<synchronous>, transform_indices = @transform_9, window_bounds = array<i64: 2, 1, 2048>}, {pipeline_mode = #tpu.pipeline_mode<synchronous>, transform_indices = @transform_10, window_bounds = array<i64: 2, 2048, 64>}, {pipeline_mode = #tpu.pipeline_mode<synchronous>, transform_indices = @transform_11, window_bounds = array<i64: 2, 1, 64>}, {transform_indices = @transform_12, window_bounds = array<i64: 2, 8, 64>}, {transform_indices = @transform_13, window_bounds = array<i64: 2, 1, 64>}]} {
    %c0 = arith.constant 0 : index
    %c0_0 = arith.constant 0 : index
    %c0_1 = arith.constant 0 : index
    %0 = vector.load %arg1[%c0, %c0_0, %c0_1] : memref<2x8x64xf32, #tpu.memory_space<vmem>>, vector<2x8x64xf32>
    %1 = vector.shape_cast %0 : vector<2x8x64xf32> to vector<16x64xf32>
    %2 = arith.truncf %1 : vector<16x64xf32> to vector<16x64xbf16>
    %c0_2 = arith.constant 0 : index
    %c0_3 = arith.constant 0 : index
    %c0_4 = arith.constant 0 : index
    %3 = vector.load %arg3[%c0_2, %c0_3, %c0_4] : memref<2x64x192xbf16, #tpu.memory_space<vmem>>, vector<1x64x192xbf16>
    %4 = vector.shape_cast %3 : vector<1x64x192xbf16> to vector<64x192xbf16>
    %cst = arith.constant dense<0.000000e+00> : vector<16x192xf32>
    %5 = tpu.matmul %2, %4, %cst {dimension_numbers = #tpu.dot_dimension_numbers<[1], [0], [0], [1], [0, 0, 1, 1], [], []>} : vector<16x64xbf16>, vector<64x192xbf16>, vector<16x192xf32> -> vector<16x192xf32>
    %c0_5 = arith.constant 0 : index
    %c0_6 = arith.constant 0 : index
    %c0_7 = arith.constant 0 : index
    %6 = vector.load %arg4[%c0_5, %c0_6, %c0_7] : memref<2x1x192xf32, #tpu.memory_space<vmem>>, vector<1x1x192xf32>
    %7 = vector.shape_cast %6 : vector<1x1x192xf32> to vector<1x192xf32>
    %8 = vector.broadcast %7 : vector<1x192xf32> to vector<16x192xf32>
    %9 = arith.addf %5, %8 : vector<16x192xf32>
    %10 = vector.extract_strided_slice %9 {offsets = [0, 0], sizes = [8, 8], strides = [1, 1]} : vector<16x192xf32> to vector<8x8xf32>
    %11 = vector.extract_strided_slice %9 {offsets = [0, 8], sizes = [8, 8], strides = [1, 1]} : vector<16x192xf32> to vector<8x8xf32>
    %12 = vector.extract_strided_slice %9 {offsets = [0, 16], sizes = [8, 8], strides = [1, 1]} : vector<16x192xf32> to vector<8x8xf32>
    %13 = vector.extract_strided_slice %9 {offsets = [0, 24], sizes = [8, 8], strides = [1, 1]} : vector<16x192xf32> to vector<8x8xf32>
    %14 = vector.extract_strided_slice %9 {offsets = [0, 32], sizes = [8, 8], strides = [1, 1]} : vector<16x192xf32> to vector<8x8xf32>
    %15 = vector.extract_strided_slice %9 {offsets = [0, 40], sizes = [8, 8], strides = [1, 1]} : vector<16x192xf32> to vector<8x8xf32>
    %16 = vector.extract_strided_slice %9 {offsets = [0, 48], sizes = [8, 8], strides = [1, 1]} : vector<16x192xf32> to vector<8x8xf32>
    %17 = vector.extract_strided_slice %9 {offsets = [0, 56], sizes = [8, 8], strides = [1, 1]} : vector<16x192xf32> to vector<8x8xf32>
    %18 = vector.extract_strided_slice %9 {offsets = [8, 0], sizes = [8, 8], strides = [1, 1]} : vector<16x192xf32> to vector<8x8xf32>
    %19 = vector.extract_strided_slice %9 {offsets = [8, 8], sizes = [8, 8], strides = [1, 1]} : vector<16x192xf32> to vector<8x8xf32>
    %20 = vector.extract_strided_slice %9 {offsets = [8, 16], sizes = [8, 8], strides = [1, 1]} : vector<16x192xf32> to vector<8x8xf32>
    %21 = vector.extract_strided_slice %9 {offsets = [8, 24], sizes = [8, 8], strides = [1, 1]} : vector<16x192xf32> to vector<8x8xf32>
    %22 = vector.extract_strided_slice %9 {offsets = [8, 32], sizes = [8, 8], strides = [1, 1]} : vector<16x192xf32> to vector<8x8xf32>
    %23 = vector.extract_strided_slice %9 {offsets = [8, 40], sizes = [8, 8], strides = [1, 1]} : vector<16x192xf32> to vector<8x8xf32>
    %24 = vector.extract_strided_slice %9 {offsets = [8, 48], sizes = [8, 8], strides = [1, 1]} : vector<16x192xf32> to vector<8x8xf32>
    %25 = vector.extract_strided_slice %9 {offsets = [8, 56], sizes = [8, 8], strides = [1, 1]} : vector<16x192xf32> to vector<8x8xf32>
    %26 = vector.shape_cast %10 : vector<8x8xf32> to vector<1x8x8xf32>
    %27 = vector.shape_cast %11 : vector<8x8xf32> to vector<1x8x8xf32>
    %28 = vector.shape_cast %12 : vector<8x8xf32> to vector<1x8x8xf32>
    %29 = vector.shape_cast %13 : vector<8x8xf32> to vector<1x8x8xf32>
    %30 = vector.shape_cast %14 : vector<8x8xf32> to vector<1x8x8xf32>
    %31 = vector.shape_cast %15 : vector<8x8xf32> to vector<1x8x8xf32>
    %32 = vector.shape_cast %16 : vector<8x8xf32> to vector<1x8x8xf32>
    %33 = vector.shape_cast %17 : vector<8x8xf32> to vector<1x8x8xf32>
    %34 = vector.shape_cast %18 : vector<8x8xf32> to vector<1x8x8xf32>
    %35 = vector.shape_cast %19 : vector<8x8xf32> to vector<1x8x8xf32>
    %36 = vector.shape_cast %20 : vector<8x8xf32> to vector<1x8x8xf32>
    %37 = vector.shape_cast %21 : vector<8x8xf32> to vector<1x8x8xf32>
    %38 = vector.shape_cast %22 : vector<8x8xf32> to vector<1x8x8xf32>
    %39 = vector.shape_cast %23 : vector<8x8xf32> to vector<1x8x8xf32>
    %40 = vector.shape_cast %24 : vector<8x8xf32> to vector<1x8x8xf32>
    %41 = vector.shape_cast %25 : vector<8x8xf32> to vector<1x8x8xf32>
    %42 = tpu.concatenate %26, %27, %28, %29, %30, %31, %32, %33, %34, %35, %36, %37, %38, %39, %40, %41 in 0 : vector<1x8x8xf32>, vector<1x8x8xf32>, vector<1x8x8xf32>, vector<1x8x8xf32>, vector<1x8x8xf32>, vector<1x8x8xf32>, vector<1x8x8xf32>, vector<1x8x8xf32>, vector<1x8x8xf32>, vector<1x8x8xf32>, vector<1x8x8xf32>, vector<1x8x8xf32>, vector<1x8x8xf32>, vector<1x8x8xf32>, vector<1x8x8xf32>, vector<1x8x8xf32> -> vector<16x8x8xf32>
    %43 = vector.extract_strided_slice %9 {offsets = [0, 64], sizes = [8, 8], strides = [1, 1]} : vector<16x192xf32> to vector<8x8xf32>
    %44 = vector.extract_strided_slice %9 {offsets = [0, 72], sizes = [8, 8], strides = [1, 1]} : vector<16x192xf32> to vector<8x8xf32>
    %45 = vector.extract_strided_slice %9 {offsets = [0, 80], sizes = [8, 8], strides = [1, 1]} : vector<16x192xf32> to vector<8x8xf32>
    %46 = vector.extract_strided_slice %9 {offsets = [0, 88], sizes = [8, 8], strides = [1, 1]} : vector<16x192xf32> to vector<8x8xf32>
    %47 = vector.extract_strided_slice %9 {offsets = [0, 96], sizes = [8, 8], strides = [1, 1]} : vector<16x192xf32> to vector<8x8xf32>
    %48 = vector.extract_strided_slice %9 {offsets = [0, 104], sizes = [8, 8], strides = [1, 1]} : vector<16x192xf32> to vector<8x8xf32>
    %49 = vector.extract_strided_slice %9 {offsets = [0, 112], sizes = [8, 8], strides = [1, 1]} : vector<16x192xf32> to vector<8x8xf32>
    %50 = vector.extract_strided_slice %9 {offsets = [0, 120], sizes = [8, 8], strides = [1, 1]} : vector<16x192xf32> to vector<8x8xf32>
    %51 = vector.extract_strided_slice %9 {offsets = [8, 64], sizes = [8, 8], strides = [1, 1]} : vector<16x192xf32> to vector<8x8xf32>
    %52 = vector.extract_strided_slice %9 {offsets = [8, 72], sizes = [8, 8], strides = [1, 1]} : vector<16x192xf32> to vector<8x8xf32>
    %53 = vector.extract_strided_slice %9 {offsets = [8, 80], sizes = [8, 8], strides = [1, 1]} : vector<16x192xf32> to vector<8x8xf32>
    %54 = vector.extract_strided_slice %9 {offsets = [8, 88], sizes = [8, 8], strides = [1, 1]} : vector<16x192xf32> to vector<8x8xf32>
    %55 = vector.extract_strided_slice %9 {offsets = [8, 96], sizes = [8, 8], strides = [1, 1]} : vector<16x192xf32> to vector<8x8xf32>
    %56 = vector.extract_strided_slice %9 {offsets = [8, 104], sizes = [8, 8], strides = [1, 1]} : vector<16x192xf32> to vector<8x8xf32>
    %57 = vector.extract_strided_slice %9 {offsets = [8, 112], sizes = [8, 8], strides = [1, 1]} : vector<16x192xf32> to vector<8x8xf32>
    %58 = vector.extract_strided_slice %9 {offsets = [8, 120], sizes = [8, 8], strides = [1, 1]} : vector<16x192xf32> to vector<8x8xf32>
    %59 = vector.shape_cast %43 : vector<8x8xf32> to vector<1x8x8xf32>
    %60 = vector.shape_cast %44 : vector<8x8xf32> to vector<1x8x8xf32>
    %61 = vector.shape_cast %45 : vector<8x8xf32> to vector<1x8x8xf32>
    %62 = vector.shape_cast %46 : vector<8x8xf32> to vector<1x8x8xf32>
    %63 = vector.shape_cast %47 : vector<8x8xf32> to vector<1x8x8xf32>
    %64 = vector.shape_cast %48 : vector<8x8xf32> to vector<1x8x8xf32>
    %65 = vector.shape_cast %49 : vector<8x8xf32> to vector<1x8x8xf32>
    %66 = vector.shape_cast %50 : vector<8x8xf32> to vector<1x8x8xf32>
    %67 = vector.shape_cast %51 : vector<8x8xf32> to vector<1x8x8xf32>
    %68 = vector.shape_cast %52 : vector<8x8xf32> to vector<1x8x8xf32>
    %69 = vector.shape_cast %53 : vector<8x8xf32> to vector<1x8x8xf32>
    %70 = vector.shape_cast %54 : vector<8x8xf32> to vector<1x8x8xf32>
    %71 = vector.shape_cast %55 : vector<8x8xf32> to vector<1x8x8xf32>
    %72 = vector.shape_cast %56 : vector<8x8xf32> to vector<1x8x8xf32>
    %73 = vector.shape_cast %57 : vector<8x8xf32> to vector<1x8x8xf32>
    %74 = vector.shape_cast %58 : vector<8x8xf32> to vector<1x8x8xf32>
    %75 = tpu.concatenate %59, %60, %61, %62, %63, %64, %65, %66, %67, %68, %69, %70, %71, %72, %73, %74 in 0 : vector<1x8x8xf32>, vector<1x8x8xf32>, vector<1x8x8xf32>, vector<1x8x8xf32>, vector<1x8x8xf32>, vector<1x8x8xf32>, vector<1x8x8xf32>, vector<1x8x8xf32>, vector<1x8x8xf32>, vector<1x8x8xf32>, vector<1x8x8xf32>, vector<1x8x8xf32>, vector<1x8x8xf32>, vector<1x8x8xf32>, vector<1x8x8xf32>, vector<1x8x8xf32> -> vector<16x8x8xf32>
    %76 = vector.extract_strided_slice %9 {offsets = [0, 128], sizes = [8, 8], strides = [1, 1]} : vector<16x192xf32> to vector<8x8xf32>
    %77 = vector.extract_strided_slice %9 {offsets = [0, 136], sizes = [8, 8], strides = [1, 1]} : vector<16x192xf32> to vector<8x8xf32>
    %78 = vector.extract_strided_slice %9 {offsets = [0, 144], sizes = [8, 8], strides = [1, 1]} : vector<16x192xf32> to vector<8x8xf32>
    %79 = vector.extract_strided_slice %9 {offsets = [0, 152], sizes = [8, 8], strides = [1, 1]} : vector<16x192xf32> to vector<8x8xf32>
    %80 = vector.extract_strided_slice %9 {offsets = [0, 160], sizes = [8, 8], strides = [1, 1]} : vector<16x192xf32> to vector<8x8xf32>
    %81 = vector.extract_strided_slice %9 {offsets = [0, 168], sizes = [8, 8], strides = [1, 1]} : vector<16x192xf32> to vector<8x8xf32>
    %82 = vector.extract_strided_slice %9 {offsets = [0, 176], sizes = [8, 8], strides = [1, 1]} : vector<16x192xf32> to vector<8x8xf32>
    %83 = vector.extract_strided_slice %9 {offsets = [0, 184], sizes = [8, 8], strides = [1, 1]} : vector<16x192xf32> to vector<8x8xf32>
    %84 = vector.extract_strided_slice %9 {offsets = [8, 128], sizes = [8, 8], strides = [1, 1]} : vector<16x192xf32> to vector<8x8xf32>
    %85 = vector.extract_strided_slice %9 {offsets = [8, 136], sizes = [8, 8], strides = [1, 1]} : vector<16x192xf32> to vector<8x8xf32>
    %86 = vector.extract_strided_slice %9 {offsets = [8, 144], sizes = [8, 8], strides = [1, 1]} : vector<16x192xf32> to vector<8x8xf32>
    %87 = vector.extract_strided_slice %9 {offsets = [8, 152], sizes = [8, 8], strides = [1, 1]} : vector<16x192xf32> to vector<8x8xf32>
    %88 = vector.extract_strided_slice %9 {offsets = [8, 160], sizes = [8, 8], strides = [1, 1]} : vector<16x192xf32> to vector<8x8xf32>
    %89 = vector.extract_strided_slice %9 {offsets = [8, 168], sizes = [8, 8], strides = [1, 1]} : vector<16x192xf32> to vector<8x8xf32>
    %90 = vector.extract_strided_slice %9 {offsets = [8, 176], sizes = [8, 8], strides = [1, 1]} : vector<16x192xf32> to vector<8x8xf32>
    %91 = vector.extract_strided_slice %9 {offsets = [8, 184], sizes = [8, 8], strides = [1, 1]} : vector<16x192xf32> to vector<8x8xf32>
    %92 = vector.shape_cast %76 : vector<8x8xf32> to vector<1x8x8xf32>
    %93 = vector.shape_cast %77 : vector<8x8xf32> to vector<1x8x8xf32>
    %94 = vector.shape_cast %78 : vector<8x8xf32> to vector<1x8x8xf32>
    %95 = vector.shape_cast %79 : vector<8x8xf32> to vector<1x8x8xf32>
    %96 = vector.shape_cast %80 : vector<8x8xf32> to vector<1x8x8xf32>
    %97 = vector.shape_cast %81 : vector<8x8xf32> to vector<1x8x8xf32>
    %98 = vector.shape_cast %82 : vector<8x8xf32> to vector<1x8x8xf32>
    %99 = vector.shape_cast %83 : vector<8x8xf32> to vector<1x8x8xf32>
    %100 = vector.shape_cast %84 : vector<8x8xf32> to vector<1x8x8xf32>
    %101 = vector.shape_cast %85 : vector<8x8xf32> to vector<1x8x8xf32>
    %102 = vector.shape_cast %86 : vector<8x8xf32> to vector<1x8x8xf32>
    %103 = vector.shape_cast %87 : vector<8x8xf32> to vector<1x8x8xf32>
    %104 = vector.shape_cast %88 : vector<8x8xf32> to vector<1x8x8xf32>
    %105 = vector.shape_cast %89 : vector<8x8xf32> to vector<1x8x8xf32>
    %106 = vector.shape_cast %90 : vector<8x8xf32> to vector<1x8x8xf32>
    %107 = vector.shape_cast %91 : vector<8x8xf32> to vector<1x8x8xf32>
    %108 = tpu.concatenate %92, %93, %94, %95, %96, %97, %98, %99, %100, %101, %102, %103, %104, %105, %106, %107 in 0 : vector<1x8x8xf32>, vector<1x8x8xf32>, vector<1x8x8xf32>, vector<1x8x8xf32>, vector<1x8x8xf32>, vector<1x8x8xf32>, vector<1x8x8xf32>, vector<1x8x8xf32>, vector<1x8x8xf32>, vector<1x8x8xf32>, vector<1x8x8xf32>, vector<1x8x8xf32>, vector<1x8x8xf32>, vector<1x8x8xf32>, vector<1x8x8xf32>, vector<1x8x8xf32> -> vector<16x8x8xf32>
    "tpu.trace_start"() <{level = 10 : i32, message = "nqd,nkd->nqk"}> : () -> ()
    %cst_8 = arith.constant dense<0.000000e+00> : vector<16x8x8xf32>
    %109 = tpu.matmul %42, %75, %cst_8 {dimension_numbers = #tpu.dot_dimension_numbers<[2], [2], [1], [1], [0, 0, 0, 1, 1, 1], [0], [0]>} : vector<16x8x8xf32>, vector<16x8x8xf32>, vector<16x8x8xf32> -> vector<16x8x8xf32>
    "tpu.trace_stop"() : () -> ()
    %cst_9 = arith.constant dense<0xFF800000> : vector<16x8xf32>
    %110 = vector.multi_reduction <maximumf>, %109, %cst_9 [2] : vector<16x8x8xf32> to vector<16x8xf32>
    %111 = vector.shape_cast %110 : vector<16x8xf32> to vector<16x8x1xf32>
    %112 = vector.broadcast %111 : vector<16x8x1xf32> to vector<16x8x8xf32>
    %113 = arith.subf %109, %112 : vector<16x8x8xf32>
    %114 = math.exp %113 : vector<16x8x8xf32>
    %cst_10 = arith.constant dense<0.000000e+00> : vector<16x8xf32>
    %115 = vector.multi_reduction <add>, %114, %cst_10 [2] : vector<16x8x8xf32> to vector<16x8xf32>
    %116 = vector.shape_cast %115 : vector<16x8xf32> to vector<16x8x1xf32>
    %117 = vector.broadcast %116 : vector<16x8x1xf32> to vector<16x8x8xf32>
    %118 = arith.divf %114, %117 : vector<16x8x8xf32>
    "tpu.trace_start"() <{level = 10 : i32, message = "nqk,nkd->nqd"}> : () -> ()
    %cst_11 = arith.constant dense<0.000000e+00> : vector<16x8x8xf32>
    %119 = tpu.matmul %118, %108, %cst_11 {dimension_numbers = #tpu.dot_dimension_numbers<[2], [1], [1], [2], [0, 0, 0, 1, 1, 2], [0], [0]>} : vector<16x8x8xf32>, vector<16x8x8xf32>, vector<16x8x8xf32> -> vector<16x8x8xf32>
    "tpu.trace_stop"() : () -> ()
    %120 = vector.extract_strided_slice %119 {offsets = [0, 0, 0], sizes = [1, 8, 8], strides = [1, 1, 1]} : vector<16x8x8xf32> to vector<1x8x8xf32>
    %121 = vector.shape_cast %120 : vector<1x8x8xf32> to vector<8x8xf32>
    %122 = vector.extract_strided_slice %119 {offsets = [1, 0, 0], sizes = [1, 8, 8], strides = [1, 1, 1]} : vector<16x8x8xf32> to vector<1x8x8xf32>
    %123 = vector.shape_cast %122 : vector<1x8x8xf32> to vector<8x8xf32>
    %124 = vector.extract_strided_slice %119 {offsets = [2, 0, 0], sizes = [1, 8, 8], strides = [1, 1, 1]} : vector<16x8x8xf32> to vector<1x8x8xf32>
    %125 = vector.shape_cast %124 : vector<1x8x8xf32> to vector<8x8xf32>
    %126 = vector.extract_strided_slice %119 {offsets = [3, 0, 0], sizes = [1, 8, 8], strides = [1, 1, 1]} : vector<16x8x8xf32> to vector<1x8x8xf32>
    %127 = vector.shape_cast %126 : vector<1x8x8xf32> to vector<8x8xf32>
    %128 = vector.extract_strided_slice %119 {offsets = [4, 0, 0], sizes = [1, 8, 8], strides = [1, 1, 1]} : vector<16x8x8xf32> to vector<1x8x8xf32>
    %129 = vector.shape_cast %128 : vector<1x8x8xf32> to vector<8x8xf32>
    %130 = vector.extract_strided_slice %119 {offsets = [5, 0, 0], sizes = [1, 8, 8], strides = [1, 1, 1]} : vector<16x8x8xf32> to vector<1x8x8xf32>
    %131 = vector.shape_cast %130 : vector<1x8x8xf32> to vector<8x8xf32>
    %132 = vector.extract_strided_slice %119 {offsets = [6, 0, 0], sizes = [1, 8, 8], strides = [1, 1, 1]} : vector<16x8x8xf32> to vector<1x8x8xf32>
    %133 = vector.shape_cast %132 : vector<1x8x8xf32> to vector<8x8xf32>
    %134 = vector.extract_strided_slice %119 {offsets = [7, 0, 0], sizes = [1, 8, 8], strides = [1, 1, 1]} : vector<16x8x8xf32> to vector<1x8x8xf32>
    %135 = vector.shape_cast %134 : vector<1x8x8xf32> to vector<8x8xf32>
    %136 = tpu.concatenate %121, %123, %125, %127, %129, %131, %133, %135 in 1 : vector<8x8xf32>, vector<8x8xf32>, vector<8x8xf32>, vector<8x8xf32>, vector<8x8xf32>, vector<8x8xf32>, vector<8x8xf32>, vector<8x8xf32> -> vector<8x64xf32>
    %137 = vector.extract_strided_slice %119 {offsets = [8, 0, 0], sizes = [1, 8, 8], strides = [1, 1, 1]} : vector<16x8x8xf32> to vector<1x8x8xf32>
    %138 = vector.shape_cast %137 : vector<1x8x8xf32> to vector<8x8xf32>
    %139 = vector.extract_strided_slice %119 {offsets = [9, 0, 0], sizes = [1, 8, 8], strides = [1, 1, 1]} : vector<16x8x8xf32> to vector<1x8x8xf32>
    %140 = vector.shape_cast %139 : vector<1x8x8xf32> to vector<8x8xf32>
    %141 = vector.extract_strided_slice %119 {offsets = [10, 0, 0], sizes = [1, 8, 8], strides = [1, 1, 1]} : vector<16x8x8xf32> to vector<1x8x8xf32>
    %142 = vector.shape_cast %141 : vector<1x8x8xf32> to vector<8x8xf32>
    %143 = vector.extract_strided_slice %119 {offsets = [11, 0, 0], sizes = [1, 8, 8], strides = [1, 1, 1]} : vector<16x8x8xf32> to vector<1x8x8xf32>
    %144 = vector.shape_cast %143 : vector<1x8x8xf32> to vector<8x8xf32>
    %145 = vector.extract_strided_slice %119 {offsets = [12, 0, 0], sizes = [1, 8, 8], strides = [1, 1, 1]} : vector<16x8x8xf32> to vector<1x8x8xf32>
    %146 = vector.shape_cast %145 : vector<1x8x8xf32> to vector<8x8xf32>
    %147 = vector.extract_strided_slice %119 {offsets = [13, 0, 0], sizes = [1, 8, 8], strides = [1, 1, 1]} : vector<16x8x8xf32> to vector<1x8x8xf32>
    %148 = vector.shape_cast %147 : vector<1x8x8xf32> to vector<8x8xf32>
    %149 = vector.extract_strided_slice %119 {offsets = [14, 0, 0], sizes = [1, 8, 8], strides = [1, 1, 1]} : vector<16x8x8xf32> to vector<1x8x8xf32>
    %150 = vector.shape_cast %149 : vector<1x8x8xf32> to vector<8x8xf32>
    %151 = vector.extract_strided_slice %119 {offsets = [15, 0, 0], sizes = [1, 8, 8], strides = [1, 1, 1]} : vector<16x8x8xf32> to vector<1x8x8xf32>
    %152 = vector.shape_cast %151 : vector<1x8x8xf32> to vector<8x8xf32>
    %153 = tpu.concatenate %138, %140, %142, %144, %146, %148, %150, %152 in 1 : vector<8x8xf32>, vector<8x8xf32>, vector<8x8xf32>, vector<8x8xf32>, vector<8x8xf32>, vector<8x8xf32>, vector<8x8xf32>, vector<8x8xf32> -> vector<8x64xf32>
    %154 = tpu.concatenate %136, %153 in 0 : vector<8x64xf32>, vector<8x64xf32> -> vector<16x64xf32>
    %155 = arith.truncf %154 : vector<16x64xf32> to vector<16x64xbf16>
    %c0_12 = arith.constant 0 : index
    %c0_13 = arith.constant 0 : index
    %c0_14 = arith.constant 0 : index
    %156 = vector.load %arg5[%c0_12, %c0_13, %c0_14] : memref<2x64x64xbf16, #tpu.memory_space<vmem>>, vector<1x64x64xbf16>
    %157 = vector.shape_cast %156 : vector<1x64x64xbf16> to vector<64x64xbf16>
    %cst_15 = arith.constant dense<0.000000e+00> : vector<16x64xf32>
    %158 = tpu.matmul %155, %157, %cst_15 {dimension_numbers = #tpu.dot_dimension_numbers<[1], [0], [0], [1], [0, 0, 1, 1], [], []>} : vector<16x64xbf16>, vector<64x64xbf16>, vector<16x64xf32> -> vector<16x64xf32>
    %c0_16 = arith.constant 0 : index
    %c0_17 = arith.constant 0 : index
    %c0_18 = arith.constant 0 : index
    %159 = vector.load %arg6[%c0_16, %c0_17, %c0_18] : memref<2x1x64xf32, #tpu.memory_space<vmem>>, vector<1x1x64xf32>
    %160 = vector.shape_cast %159 : vector<1x1x64xf32> to vector<1x64xf32>
    %161 = vector.broadcast %160 : vector<1x64xf32> to vector<16x64xf32>
    %162 = arith.addf %158, %161 : vector<16x64xf32>
    %c0_19 = arith.constant 0 : index
    %c0_20 = arith.constant 0 : index
    %c0_21 = arith.constant 0 : index
    %163 = vector.load %arg7[%c0_19, %c0_20, %c0_21] : memref<2x2x64xf32, #tpu.memory_space<vmem>>, vector<1x2x64xf32>
    %164 = vector.shape_cast %163 : vector<1x2x64xf32> to vector<2x64xf32>
    %165 = arith.addf %1, %162 : vector<16x64xf32>
    %166 = vector.extract_strided_slice %164 {offsets = [0, 0], sizes = [1, 64], strides = [1, 1]} : vector<2x64xf32> to vector<1x64xf32>
    %167 = vector.extract_strided_slice %164 {offsets = [1, 0], sizes = [1, 64], strides = [1, 1]} : vector<2x64xf32> to vector<1x64xf32>
    %cst_22 = arith.constant dense<0.000000e+00> : vector<16xf32>
    %168 = vector.multi_reduction <add>, %165, %cst_22 [1] : vector<16x64xf32> to vector<16xf32>
    %169 = vector.shape_cast %168 : vector<16xf32> to vector<16x1xf32>
    %cst_23 = arith.constant 6.400000e+01 : f32
    %170 = vector.broadcast %cst_23 : f32 to vector<16x1xf32>
    %171 = arith.divf %169, %170 : vector<16x1xf32>
    %172 = vector.broadcast %171 : vector<16x1xf32> to vector<16x64xf32>
    %173 = arith.subf %165, %172 : vector<16x64xf32>
    %174 = arith.mulf %173, %173 : vector<16x64xf32>
    %cst_24 = arith.constant dense<0.000000e+00> : vector<16xf32>
    %175 = vector.multi_reduction <add>, %174, %cst_24 [1] : vector<16x64xf32> to vector<16xf32>
    %176 = vector.shape_cast %175 : vector<16xf32> to vector<16x1xf32>
    %cst_25 = arith.constant 6.400000e+01 : f32
    %177 = vector.broadcast %cst_25 : f32 to vector<16x1xf32>
    %178 = arith.divf %176, %177 : vector<16x1xf32>
    %179 = vector.broadcast %171 : vector<16x1xf32> to vector<16x64xf32>
    %180 = arith.subf %165, %179 : vector<16x64xf32>
    %cst_26 = arith.constant 9.99999974E-6 : f32
    %181 = vector.broadcast %cst_26 : f32 to vector<16x1xf32>
    %182 = arith.addf %178, %181 : vector<16x1xf32>
    %183 = math.rsqrt %182 : vector<16x1xf32>
    %184 = vector.broadcast %183 : vector<16x1xf32> to vector<16x64xf32>
    %185 = arith.mulf %180, %184 : vector<16x64xf32>
    %186 = vector.broadcast %166 : vector<1x64xf32> to vector<16x64xf32>
    %187 = arith.mulf %185, %186 : vector<16x64xf32>
    %188 = vector.broadcast %167 : vector<1x64xf32> to vector<16x64xf32>
    %189 = arith.addf %187, %188 : vector<16x64xf32>
    %190 = arith.truncf %189 : vector<16x64xf32> to vector<16x64xbf16>
    %c0_27 = arith.constant 0 : index
    %c0_28 = arith.constant 0 : index
    %c0_29 = arith.constant 0 : index
    %191 = vector.load %arg9[%c0_27, %c0_28, %c0_29] : memref<2x64x2048xbf16, #tpu.memory_space<vmem>>, vector<1x64x2048xbf16>
    %192 = vector.shape_cast %191 : vector<1x64x2048xbf16> to vector<64x2048xbf16>
    %cst_30 = arith.constant dense<0.000000e+00> : vector<16x2048xf32>
    %193 = tpu.matmul %190, %192, %cst_30 {dimension_numbers = #tpu.dot_dimension_numbers<[1], [0], [0], [1], [0, 0, 1, 1], [], []>} : vector<16x64xbf16>, vector<64x2048xbf16>, vector<16x2048xf32> -> vector<16x2048xf32>
    %c0_31 = arith.constant 0 : index
    %c0_32 = arith.constant 0 : index
    %c0_33 = arith.constant 0 : index
    %194 = vector.load %arg10[%c0_31, %c0_32, %c0_33] : memref<2x1x2048xf32, #tpu.memory_space<vmem>>, vector<1x1x2048xf32>
    %195 = vector.shape_cast %194 : vector<1x1x2048xf32> to vector<1x2048xf32>
    %196 = vector.broadcast %195 : vector<1x2048xf32> to vector<16x2048xf32>
    %197 = arith.addf %193, %196 : vector<16x2048xf32>
    %cst_34 = arith.constant 0.000000e+00 : f32
    %198 = vector.broadcast %cst_34 : f32 to vector<16x2048xf32>
    %199 = arith.maximumf %197, %198 : vector<16x2048xf32>
    %200 = arith.truncf %199 : vector<16x2048xf32> to vector<16x2048xbf16>
    %c0_35 = arith.constant 0 : index
    %c0_36 = arith.constant 0 : index
    %c0_37 = arith.constant 0 : index
    %201 = vector.load %arg11[%c0_35, %c0_36, %c0_37] : memref<2x2048x64xbf16, #tpu.memory_space<vmem>>, vector<1x2048x64xbf16>
    %202 = vector.shape_cast %201 : vector<1x2048x64xbf16> to vector<2048x64xbf16>
    %cst_38 = arith.constant dense<0.000000e+00> : vector<16x64xf32>
    %203 = tpu.matmul %200, %202, %cst_38 {dimension_numbers = #tpu.dot_dimension_numbers<[1], [0], [0], [1], [0, 0, 1, 1], [], []>} : vector<16x2048xbf16>, vector<2048x64xbf16>, vector<16x64xf32> -> vector<16x64xf32>
    %c0_39 = arith.constant 0 : index
    %c0_40 = arith.constant 0 : index
    %c0_41 = arith.constant 0 : index
    %204 = vector.load %arg12[%c0_39, %c0_40, %c0_41] : memref<2x1x64xf32, #tpu.memory_space<vmem>>, vector<1x1x64xf32>
    %205 = vector.shape_cast %204 : vector<1x1x64xf32> to vector<1x64xf32>
    %206 = vector.broadcast %205 : vector<1x64xf32> to vector<16x64xf32>
    %207 = arith.addf %203, %206 : vector<16x64xf32>
    %c0_42 = arith.constant 0 : index
    %c0_43 = arith.constant 0 : index
    %c0_44 = arith.constant 0 : index
    %208 = vector.load %arg8[%c0_42, %c0_43, %c0_44] : memref<2x2x64xf32, #tpu.memory_space<vmem>>, vector<1x2x64xf32>
    %209 = vector.shape_cast %208 : vector<1x2x64xf32> to vector<2x64xf32>
    %210 = arith.addf %189, %207 : vector<16x64xf32>
    %211 = vector.extract_strided_slice %209 {offsets = [0, 0], sizes = [1, 64], strides = [1, 1]} : vector<2x64xf32> to vector<1x64xf32>
    %212 = vector.extract_strided_slice %209 {offsets = [1, 0], sizes = [1, 64], strides = [1, 1]} : vector<2x64xf32> to vector<1x64xf32>
    %cst_45 = arith.constant dense<0.000000e+00> : vector<16xf32>
    %213 = vector.multi_reduction <add>, %210, %cst_45 [1] : vector<16x64xf32> to vector<16xf32>
    %214 = vector.shape_cast %213 : vector<16xf32> to vector<16x1xf32>
    %cst_46 = arith.constant 6.400000e+01 : f32
    %215 = vector.broadcast %cst_46 : f32 to vector<16x1xf32>
    %216 = arith.divf %214, %215 : vector<16x1xf32>
    %217 = vector.broadcast %216 : vector<16x1xf32> to vector<16x64xf32>
    %218 = arith.subf %210, %217 : vector<16x64xf32>
    %219 = arith.mulf %218, %218 : vector<16x64xf32>
    %cst_47 = arith.constant dense<0.000000e+00> : vector<16xf32>
    %220 = vector.multi_reduction <add>, %219, %cst_47 [1] : vector<16x64xf32> to vector<16xf32>
    %221 = vector.shape_cast %220 : vector<16xf32> to vector<16x1xf32>
    %cst_48 = arith.constant 6.400000e+01 : f32
    %222 = vector.broadcast %cst_48 : f32 to vector<16x1xf32>
    %223 = arith.divf %221, %222 : vector<16x1xf32>
    %224 = vector.broadcast %216 : vector<16x1xf32> to vector<16x64xf32>
    %225 = arith.subf %210, %224 : vector<16x64xf32>
    %cst_49 = arith.constant 9.99999974E-6 : f32
    %226 = vector.broadcast %cst_49 : f32 to vector<16x1xf32>
    %227 = arith.addf %223, %226 : vector<16x1xf32>
    %228 = math.rsqrt %227 : vector<16x1xf32>
    %229 = vector.broadcast %228 : vector<16x1xf32> to vector<16x64xf32>
    %230 = arith.mulf %225, %229 : vector<16x64xf32>
    %231 = vector.broadcast %211 : vector<1x64xf32> to vector<16x64xf32>
    %232 = arith.mulf %230, %231 : vector<16x64xf32>
    %233 = vector.broadcast %212 : vector<1x64xf32> to vector<16x64xf32>
    %234 = arith.addf %232, %233 : vector<16x64xf32>
    %235 = arith.truncf %234 : vector<16x64xf32> to vector<16x64xbf16>
    %c1 = arith.constant 1 : index
    %c0_50 = arith.constant 0 : index
    %c0_51 = arith.constant 0 : index
    %236 = vector.load %arg3[%c1, %c0_50, %c0_51] : memref<2x64x192xbf16, #tpu.memory_space<vmem>>, vector<1x64x192xbf16>
    %237 = vector.shape_cast %236 : vector<1x64x192xbf16> to vector<64x192xbf16>
    %cst_52 = arith.constant dense<0.000000e+00> : vector<16x192xf32>
    %238 = tpu.matmul %235, %237, %cst_52 {dimension_numbers = #tpu.dot_dimension_numbers<[1], [0], [0], [1], [0, 0, 1, 1], [], []>} : vector<16x64xbf16>, vector<64x192xbf16>, vector<16x192xf32> -> vector<16x192xf32>
    %c1_53 = arith.constant 1 : index
    %c0_54 = arith.constant 0 : index
    %c0_55 = arith.constant 0 : index
    %239 = vector.load %arg4[%c1_53, %c0_54, %c0_55] : memref<2x1x192xf32, #tpu.memory_space<vmem>>, vector<1x1x192xf32>
    %240 = vector.shape_cast %239 : vector<1x1x192xf32> to vector<1x192xf32>
    %241 = vector.broadcast %240 : vector<1x192xf32> to vector<16x192xf32>
    %242 = arith.addf %238, %241 : vector<16x192xf32>
    %243 = vector.extract_strided_slice %242 {offsets = [0, 0], sizes = [8, 8], strides = [1, 1]} : vector<16x192xf32> to vector<8x8xf32>
    %244 = vector.extract_strided_slice %242 {offsets = [0, 8], sizes = [8, 8], strides = [1, 1]} : vector<16x192xf32> to vector<8x8xf32>
    %245 = vector.extract_strided_slice %242 {offsets = [0, 16], sizes = [8, 8], strides = [1, 1]} : vector<16x192xf32> to vector<8x8xf32>
    %246 = vector.extract_strided_slice %242 {offsets = [0, 24], sizes = [8, 8], strides = [1, 1]} : vector<16x192xf32> to vector<8x8xf32>
    %247 = vector.extract_strided_slice %242 {offsets = [0, 32], sizes = [8, 8], strides = [1, 1]} : vector<16x192xf32> to vector<8x8xf32>
    %248 = vector.extract_strided_slice %242 {offsets = [0, 40], sizes = [8, 8], strides = [1, 1]} : vector<16x192xf32> to vector<8x8xf32>
    %249 = vector.extract_strided_slice %242 {offsets = [0, 48], sizes = [8, 8], strides = [1, 1]} : vector<16x192xf32> to vector<8x8xf32>
    %250 = vector.extract_strided_slice %242 {offsets = [0, 56], sizes = [8, 8], strides = [1, 1]} : vector<16x192xf32> to vector<8x8xf32>
    %251 = vector.extract_strided_slice %242 {offsets = [8, 0], sizes = [8, 8], strides = [1, 1]} : vector<16x192xf32> to vector<8x8xf32>
    %252 = vector.extract_strided_slice %242 {offsets = [8, 8], sizes = [8, 8], strides = [1, 1]} : vector<16x192xf32> to vector<8x8xf32>
    %253 = vector.extract_strided_slice %242 {offsets = [8, 16], sizes = [8, 8], strides = [1, 1]} : vector<16x192xf32> to vector<8x8xf32>
    %254 = vector.extract_strided_slice %242 {offsets = [8, 24], sizes = [8, 8], strides = [1, 1]} : vector<16x192xf32> to vector<8x8xf32>
    %255 = vector.extract_strided_slice %242 {offsets = [8, 32], sizes = [8, 8], strides = [1, 1]} : vector<16x192xf32> to vector<8x8xf32>
    %256 = vector.extract_strided_slice %242 {offsets = [8, 40], sizes = [8, 8], strides = [1, 1]} : vector<16x192xf32> to vector<8x8xf32>
    %257 = vector.extract_strided_slice %242 {offsets = [8, 48], sizes = [8, 8], strides = [1, 1]} : vector<16x192xf32> to vector<8x8xf32>
    %258 = vector.extract_strided_slice %242 {offsets = [8, 56], sizes = [8, 8], strides = [1, 1]} : vector<16x192xf32> to vector<8x8xf32>
    %259 = vector.shape_cast %243 : vector<8x8xf32> to vector<1x8x8xf32>
    %260 = vector.shape_cast %244 : vector<8x8xf32> to vector<1x8x8xf32>
    %261 = vector.shape_cast %245 : vector<8x8xf32> to vector<1x8x8xf32>
    %262 = vector.shape_cast %246 : vector<8x8xf32> to vector<1x8x8xf32>
    %263 = vector.shape_cast %247 : vector<8x8xf32> to vector<1x8x8xf32>
    %264 = vector.shape_cast %248 : vector<8x8xf32> to vector<1x8x8xf32>
    %265 = vector.shape_cast %249 : vector<8x8xf32> to vector<1x8x8xf32>
    %266 = vector.shape_cast %250 : vector<8x8xf32> to vector<1x8x8xf32>
    %267 = vector.shape_cast %251 : vector<8x8xf32> to vector<1x8x8xf32>
    %268 = vector.shape_cast %252 : vector<8x8xf32> to vector<1x8x8xf32>
    %269 = vector.shape_cast %253 : vector<8x8xf32> to vector<1x8x8xf32>
    %270 = vector.shape_cast %254 : vector<8x8xf32> to vector<1x8x8xf32>
    %271 = vector.shape_cast %255 : vector<8x8xf32> to vector<1x8x8xf32>
    %272 = vector.shape_cast %256 : vector<8x8xf32> to vector<1x8x8xf32>
    %273 = vector.shape_cast %257 : vector<8x8xf32> to vector<1x8x8xf32>
    %274 = vector.shape_cast %258 : vector<8x8xf32> to vector<1x8x8xf32>
    %275 = tpu.concatenate %259, %260, %261, %262, %263, %264, %265, %266, %267, %268, %269, %270, %271, %272, %273, %274 in 0 : vector<1x8x8xf32>, vector<1x8x8xf32>, vector<1x8x8xf32>, vector<1x8x8xf32>, vector<1x8x8xf32>, vector<1x8x8xf32>, vector<1x8x8xf32>, vector<1x8x8xf32>, vector<1x8x8xf32>, vector<1x8x8xf32>, vector<1x8x8xf32>, vector<1x8x8xf32>, vector<1x8x8xf32>, vector<1x8x8xf32>, vector<1x8x8xf32>, vector<1x8x8xf32> -> vector<16x8x8xf32>
    %276 = vector.extract_strided_slice %242 {offsets = [0, 64], sizes = [8, 8], strides = [1, 1]} : vector<16x192xf32> to vector<8x8xf32>
    %277 = vector.extract_strided_slice %242 {offsets = [0, 72], sizes = [8, 8], strides = [1, 1]} : vector<16x192xf32> to vector<8x8xf32>
    %278 = vector.extract_strided_slice %242 {offsets = [0, 80], sizes = [8, 8], strides = [1, 1]} : vector<16x192xf32> to vector<8x8xf32>
    %279 = vector.extract_strided_slice %242 {offsets = [0, 88], sizes = [8, 8], strides = [1, 1]} : vector<16x192xf32> to vector<8x8xf32>
    %280 = vector.extract_strided_slice %242 {offsets = [0, 96], sizes = [8, 8], strides = [1, 1]} : vector<16x192xf32> to vector<8x8xf32>
    %281 = vector.extract_strided_slice %242 {offsets = [0, 104], sizes = [8, 8], strides = [1, 1]} : vector<16x192xf32> to vector<8x8xf32>
    %282 = vector.extract_strided_slice %242 {offsets = [0, 112], sizes = [8, 8], strides = [1, 1]} : vector<16x192xf32> to vector<8x8xf32>
    %283 = vector.extract_strided_slice %242 {offsets = [0, 120], sizes = [8, 8], strides = [1, 1]} : vector<16x192xf32> to vector<8x8xf32>
    %284 = vector.extract_strided_slice %242 {offsets = [8, 64], sizes = [8, 8], strides = [1, 1]} : vector<16x192xf32> to vector<8x8xf32>
    %285 = vector.extract_strided_slice %242 {offsets = [8, 72], sizes = [8, 8], strides = [1, 1]} : vector<16x192xf32> to vector<8x8xf32>
    %286 = vector.extract_strided_slice %242 {offsets = [8, 80], sizes = [8, 8], strides = [1, 1]} : vector<16x192xf32> to vector<8x8xf32>
    %287 = vector.extract_strided_slice %242 {offsets = [8, 88], sizes = [8, 8], strides = [1, 1]} : vector<16x192xf32> to vector<8x8xf32>
    %288 = vector.extract_strided_slice %242 {offsets = [8, 96], sizes = [8, 8], strides = [1, 1]} : vector<16x192xf32> to vector<8x8xf32>
    %289 = vector.extract_strided_slice %242 {offsets = [8, 104], sizes = [8, 8], strides = [1, 1]} : vector<16x192xf32> to vector<8x8xf32>
    %290 = vector.extract_strided_slice %242 {offsets = [8, 112], sizes = [8, 8], strides = [1, 1]} : vector<16x192xf32> to vector<8x8xf32>
    %291 = vector.extract_strided_slice %242 {offsets = [8, 120], sizes = [8, 8], strides = [1, 1]} : vector<16x192xf32> to vector<8x8xf32>
    %292 = vector.shape_cast %276 : vector<8x8xf32> to vector<1x8x8xf32>
    %293 = vector.shape_cast %277 : vector<8x8xf32> to vector<1x8x8xf32>
    %294 = vector.shape_cast %278 : vector<8x8xf32> to vector<1x8x8xf32>
    %295 = vector.shape_cast %279 : vector<8x8xf32> to vector<1x8x8xf32>
    %296 = vector.shape_cast %280 : vector<8x8xf32> to vector<1x8x8xf32>
    %297 = vector.shape_cast %281 : vector<8x8xf32> to vector<1x8x8xf32>
    %298 = vector.shape_cast %282 : vector<8x8xf32> to vector<1x8x8xf32>
    %299 = vector.shape_cast %283 : vector<8x8xf32> to vector<1x8x8xf32>
    %300 = vector.shape_cast %284 : vector<8x8xf32> to vector<1x8x8xf32>
    %301 = vector.shape_cast %285 : vector<8x8xf32> to vector<1x8x8xf32>
    %302 = vector.shape_cast %286 : vector<8x8xf32> to vector<1x8x8xf32>
    %303 = vector.shape_cast %287 : vector<8x8xf32> to vector<1x8x8xf32>
    %304 = vector.shape_cast %288 : vector<8x8xf32> to vector<1x8x8xf32>
    %305 = vector.shape_cast %289 : vector<8x8xf32> to vector<1x8x8xf32>
    %306 = vector.shape_cast %290 : vector<8x8xf32> to vector<1x8x8xf32>
    %307 = vector.shape_cast %291 : vector<8x8xf32> to vector<1x8x8xf32>
    %308 = tpu.concatenate %292, %293, %294, %295, %296, %297, %298, %299, %300, %301, %302, %303, %304, %305, %306, %307 in 0 : vector<1x8x8xf32>, vector<1x8x8xf32>, vector<1x8x8xf32>, vector<1x8x8xf32>, vector<1x8x8xf32>, vector<1x8x8xf32>, vector<1x8x8xf32>, vector<1x8x8xf32>, vector<1x8x8xf32>, vector<1x8x8xf32>, vector<1x8x8xf32>, vector<1x8x8xf32>, vector<1x8x8xf32>, vector<1x8x8xf32>, vector<1x8x8xf32>, vector<1x8x8xf32> -> vector<16x8x8xf32>
    %309 = vector.extract_strided_slice %242 {offsets = [0, 128], sizes = [8, 8], strides = [1, 1]} : vector<16x192xf32> to vector<8x8xf32>
    %310 = vector.extract_strided_slice %242 {offsets = [0, 136], sizes = [8, 8], strides = [1, 1]} : vector<16x192xf32> to vector<8x8xf32>
    %311 = vector.extract_strided_slice %242 {offsets = [0, 144], sizes = [8, 8], strides = [1, 1]} : vector<16x192xf32> to vector<8x8xf32>
    %312 = vector.extract_strided_slice %242 {offsets = [0, 152], sizes = [8, 8], strides = [1, 1]} : vector<16x192xf32> to vector<8x8xf32>
    %313 = vector.extract_strided_slice %242 {offsets = [0, 160], sizes = [8, 8], strides = [1, 1]} : vector<16x192xf32> to vector<8x8xf32>
    %314 = vector.extract_strided_slice %242 {offsets = [0, 168], sizes = [8, 8], strides = [1, 1]} : vector<16x192xf32> to vector<8x8xf32>
    %315 = vector.extract_strided_slice %242 {offsets = [0, 176], sizes = [8, 8], strides = [1, 1]} : vector<16x192xf32> to vector<8x8xf32>
    %316 = vector.extract_strided_slice %242 {offsets = [0, 184], sizes = [8, 8], strides = [1, 1]} : vector<16x192xf32> to vector<8x8xf32>
    %317 = vector.extract_strided_slice %242 {offsets = [8, 128], sizes = [8, 8], strides = [1, 1]} : vector<16x192xf32> to vector<8x8xf32>
    %318 = vector.extract_strided_slice %242 {offsets = [8, 136], sizes = [8, 8], strides = [1, 1]} : vector<16x192xf32> to vector<8x8xf32>
    %319 = vector.extract_strided_slice %242 {offsets = [8, 144], sizes = [8, 8], strides = [1, 1]} : vector<16x192xf32> to vector<8x8xf32>
    %320 = vector.extract_strided_slice %242 {offsets = [8, 152], sizes = [8, 8], strides = [1, 1]} : vector<16x192xf32> to vector<8x8xf32>
    %321 = vector.extract_strided_slice %242 {offsets = [8, 160], sizes = [8, 8], strides = [1, 1]} : vector<16x192xf32> to vector<8x8xf32>
    %322 = vector.extract_strided_slice %242 {offsets = [8, 168], sizes = [8, 8], strides = [1, 1]} : vector<16x192xf32> to vector<8x8xf32>
    %323 = vector.extract_strided_slice %242 {offsets = [8, 176], sizes = [8, 8], strides = [1, 1]} : vector<16x192xf32> to vector<8x8xf32>
    %324 = vector.extract_strided_slice %242 {offsets = [8, 184], sizes = [8, 8], strides = [1, 1]} : vector<16x192xf32> to vector<8x8xf32>
    %325 = vector.shape_cast %309 : vector<8x8xf32> to vector<1x8x8xf32>
    %326 = vector.shape_cast %310 : vector<8x8xf32> to vector<1x8x8xf32>
    %327 = vector.shape_cast %311 : vector<8x8xf32> to vector<1x8x8xf32>
    %328 = vector.shape_cast %312 : vector<8x8xf32> to vector<1x8x8xf32>
    %329 = vector.shape_cast %313 : vector<8x8xf32> to vector<1x8x8xf32>
    %330 = vector.shape_cast %314 : vector<8x8xf32> to vector<1x8x8xf32>
    %331 = vector.shape_cast %315 : vector<8x8xf32> to vector<1x8x8xf32>
    %332 = vector.shape_cast %316 : vector<8x8xf32> to vector<1x8x8xf32>
    %333 = vector.shape_cast %317 : vector<8x8xf32> to vector<1x8x8xf32>
    %334 = vector.shape_cast %318 : vector<8x8xf32> to vector<1x8x8xf32>
    %335 = vector.shape_cast %319 : vector<8x8xf32> to vector<1x8x8xf32>
    %336 = vector.shape_cast %320 : vector<8x8xf32> to vector<1x8x8xf32>
    %337 = vector.shape_cast %321 : vector<8x8xf32> to vector<1x8x8xf32>
    %338 = vector.shape_cast %322 : vector<8x8xf32> to vector<1x8x8xf32>
    %339 = vector.shape_cast %323 : vector<8x8xf32> to vector<1x8x8xf32>
    %340 = vector.shape_cast %324 : vector<8x8xf32> to vector<1x8x8xf32>
    %341 = tpu.concatenate %325, %326, %327, %328, %329, %330, %331, %332, %333, %334, %335, %336, %337, %338, %339, %340 in 0 : vector<1x8x8xf32>, vector<1x8x8xf32>, vector<1x8x8xf32>, vector<1x8x8xf32>, vector<1x8x8xf32>, vector<1x8x8xf32>, vector<1x8x8xf32>, vector<1x8x8xf32>, vector<1x8x8xf32>, vector<1x8x8xf32>, vector<1x8x8xf32>, vector<1x8x8xf32>, vector<1x8x8xf32>, vector<1x8x8xf32>, vector<1x8x8xf32>, vector<1x8x8xf32> -> vector<16x8x8xf32>
    "tpu.trace_start"() <{level = 10 : i32, message = "nqd,nkd->nqk"}> : () -> ()
    %cst_56 = arith.constant dense<0.000000e+00> : vector<16x8x8xf32>
    %342 = tpu.matmul %275, %308, %cst_56 {dimension_numbers = #tpu.dot_dimension_numbers<[2], [2], [1], [1], [0, 0, 0, 1, 1, 1], [0], [0]>} : vector<16x8x8xf32>, vector<16x8x8xf32>, vector<16x8x8xf32> -> vector<16x8x8xf32>
    "tpu.trace_stop"() : () -> ()
    %cst_57 = arith.constant dense<0xFF800000> : vector<16x8xf32>
    %343 = vector.multi_reduction <maximumf>, %342, %cst_57 [2] : vector<16x8x8xf32> to vector<16x8xf32>
    %344 = vector.shape_cast %343 : vector<16x8xf32> to vector<16x8x1xf32>
    %345 = vector.broadcast %344 : vector<16x8x1xf32> to vector<16x8x8xf32>
    %346 = arith.subf %342, %345 : vector<16x8x8xf32>
    %347 = math.exp %346 : vector<16x8x8xf32>
    %cst_58 = arith.constant dense<0.000000e+00> : vector<16x8xf32>
    %348 = vector.multi_reduction <add>, %347, %cst_58 [2] : vector<16x8x8xf32> to vector<16x8xf32>
    %349 = vector.shape_cast %348 : vector<16x8xf32> to vector<16x8x1xf32>
    %350 = vector.broadcast %349 : vector<16x8x1xf32> to vector<16x8x8xf32>
    %351 = arith.divf %347, %350 : vector<16x8x8xf32>
    "tpu.trace_start"() <{level = 10 : i32, message = "nqk,nkd->nqd"}> : () -> ()
    %cst_59 = arith.constant dense<0.000000e+00> : vector<16x8x8xf32>
    %352 = tpu.matmul %351, %341, %cst_59 {dimension_numbers = #tpu.dot_dimension_numbers<[2], [1], [1], [2], [0, 0, 0, 1, 1, 2], [0], [0]>} : vector<16x8x8xf32>, vector<16x8x8xf32>, vector<16x8x8xf32> -> vector<16x8x8xf32>
    "tpu.trace_stop"() : () -> ()
    %353 = vector.extract_strided_slice %352 {offsets = [0, 0, 0], sizes = [1, 8, 8], strides = [1, 1, 1]} : vector<16x8x8xf32> to vector<1x8x8xf32>
    %354 = vector.shape_cast %353 : vector<1x8x8xf32> to vector<8x8xf32>
    %355 = vector.extract_strided_slice %352 {offsets = [1, 0, 0], sizes = [1, 8, 8], strides = [1, 1, 1]} : vector<16x8x8xf32> to vector<1x8x8xf32>
    %356 = vector.shape_cast %355 : vector<1x8x8xf32> to vector<8x8xf32>
    %357 = vector.extract_strided_slice %352 {offsets = [2, 0, 0], sizes = [1, 8, 8], strides = [1, 1, 1]} : vector<16x8x8xf32> to vector<1x8x8xf32>
    %358 = vector.shape_cast %357 : vector<1x8x8xf32> to vector<8x8xf32>
    %359 = vector.extract_strided_slice %352 {offsets = [3, 0, 0], sizes = [1, 8, 8], strides = [1, 1, 1]} : vector<16x8x8xf32> to vector<1x8x8xf32>
    %360 = vector.shape_cast %359 : vector<1x8x8xf32> to vector<8x8xf32>
    %361 = vector.extract_strided_slice %352 {offsets = [4, 0, 0], sizes = [1, 8, 8], strides = [1, 1, 1]} : vector<16x8x8xf32> to vector<1x8x8xf32>
    %362 = vector.shape_cast %361 : vector<1x8x8xf32> to vector<8x8xf32>
    %363 = vector.extract_strided_slice %352 {offsets = [5, 0, 0], sizes = [1, 8, 8], strides = [1, 1, 1]} : vector<16x8x8xf32> to vector<1x8x8xf32>
    %364 = vector.shape_cast %363 : vector<1x8x8xf32> to vector<8x8xf32>
    %365 = vector.extract_strided_slice %352 {offsets = [6, 0, 0], sizes = [1, 8, 8], strides = [1, 1, 1]} : vector<16x8x8xf32> to vector<1x8x8xf32>
    %366 = vector.shape_cast %365 : vector<1x8x8xf32> to vector<8x8xf32>
    %367 = vector.extract_strided_slice %352 {offsets = [7, 0, 0], sizes = [1, 8, 8], strides = [1, 1, 1]} : vector<16x8x8xf32> to vector<1x8x8xf32>
    %368 = vector.shape_cast %367 : vector<1x8x8xf32> to vector<8x8xf32>
    %369 = tpu.concatenate %354, %356, %358, %360, %362, %364, %366, %368 in 1 : vector<8x8xf32>, vector<8x8xf32>, vector<8x8xf32>, vector<8x8xf32>, vector<8x8xf32>, vector<8x8xf32>, vector<8x8xf32>, vector<8x8xf32> -> vector<8x64xf32>
    %370 = vector.extract_strided_slice %352 {offsets = [8, 0, 0], sizes = [1, 8, 8], strides = [1, 1, 1]} : vector<16x8x8xf32> to vector<1x8x8xf32>
    %371 = vector.shape_cast %370 : vector<1x8x8xf32> to vector<8x8xf32>
    %372 = vector.extract_strided_slice %352 {offsets = [9, 0, 0], sizes = [1, 8, 8], strides = [1, 1, 1]} : vector<16x8x8xf32> to vector<1x8x8xf32>
    %373 = vector.shape_cast %372 : vector<1x8x8xf32> to vector<8x8xf32>
    %374 = vector.extract_strided_slice %352 {offsets = [10, 0, 0], sizes = [1, 8, 8], strides = [1, 1, 1]} : vector<16x8x8xf32> to vector<1x8x8xf32>
    %375 = vector.shape_cast %374 : vector<1x8x8xf32> to vector<8x8xf32>
    %376 = vector.extract_strided_slice %352 {offsets = [11, 0, 0], sizes = [1, 8, 8], strides = [1, 1, 1]} : vector<16x8x8xf32> to vector<1x8x8xf32>
    %377 = vector.shape_cast %376 : vector<1x8x8xf32> to vector<8x8xf32>
    %378 = vector.extract_strided_slice %352 {offsets = [12, 0, 0], sizes = [1, 8, 8], strides = [1, 1, 1]} : vector<16x8x8xf32> to vector<1x8x8xf32>
    %379 = vector.shape_cast %378 : vector<1x8x8xf32> to vector<8x8xf32>
    %380 = vector.extract_strided_slice %352 {offsets = [13, 0, 0], sizes = [1, 8, 8], strides = [1, 1, 1]} : vector<16x8x8xf32> to vector<1x8x8xf32>
    %381 = vector.shape_cast %380 : vector<1x8x8xf32> to vector<8x8xf32>
    %382 = vector.extract_strided_slice %352 {offsets = [14, 0, 0], sizes = [1, 8, 8], strides = [1, 1, 1]} : vector<16x8x8xf32> to vector<1x8x8xf32>
    %383 = vector.shape_cast %382 : vector<1x8x8xf32> to vector<8x8xf32>
    %384 = vector.extract_strided_slice %352 {offsets = [15, 0, 0], sizes = [1, 8, 8], strides = [1, 1, 1]} : vector<16x8x8xf32> to vector<1x8x8xf32>
    %385 = vector.shape_cast %384 : vector<1x8x8xf32> to vector<8x8xf32>
    %386 = tpu.concatenate %371, %373, %375, %377, %379, %381, %383, %385 in 1 : vector<8x8xf32>, vector<8x8xf32>, vector<8x8xf32>, vector<8x8xf32>, vector<8x8xf32>, vector<8x8xf32>, vector<8x8xf32>, vector<8x8xf32> -> vector<8x64xf32>
    %387 = tpu.concatenate %369, %386 in 0 : vector<8x64xf32>, vector<8x64xf32> -> vector<16x64xf32>
    %388 = arith.truncf %387 : vector<16x64xf32> to vector<16x64xbf16>
    %c1_60 = arith.constant 1 : index
    %c0_61 = arith.constant 0 : index
    %c0_62 = arith.constant 0 : index
    %389 = vector.load %arg5[%c1_60, %c0_61, %c0_62] : memref<2x64x64xbf16, #tpu.memory_space<vmem>>, vector<1x64x64xbf16>
    %390 = vector.shape_cast %389 : vector<1x64x64xbf16> to vector<64x64xbf16>
    %cst_63 = arith.constant dense<0.000000e+00> : vector<16x64xf32>
    %391 = tpu.matmul %388, %390, %cst_63 {dimension_numbers = #tpu.dot_dimension_numbers<[1], [0], [0], [1], [0, 0, 1, 1], [], []>} : vector<16x64xbf16>, vector<64x64xbf16>, vector<16x64xf32> -> vector<16x64xf32>
    %c1_64 = arith.constant 1 : index
    %c0_65 = arith.constant 0 : index
    %c0_66 = arith.constant 0 : index
    %392 = vector.load %arg6[%c1_64, %c0_65, %c0_66] : memref<2x1x64xf32, #tpu.memory_space<vmem>>, vector<1x1x64xf32>
    %393 = vector.shape_cast %392 : vector<1x1x64xf32> to vector<1x64xf32>
    %394 = vector.broadcast %393 : vector<1x64xf32> to vector<16x64xf32>
    %395 = arith.addf %391, %394 : vector<16x64xf32>
    %c1_67 = arith.constant 1 : index
    %c0_68 = arith.constant 0 : index
    %c0_69 = arith.constant 0 : index
    %396 = vector.load %arg7[%c1_67, %c0_68, %c0_69] : memref<2x2x64xf32, #tpu.memory_space<vmem>>, vector<1x2x64xf32>
    %397 = vector.shape_cast %396 : vector<1x2x64xf32> to vector<2x64xf32>
    %398 = arith.addf %234, %395 : vector<16x64xf32>
    %399 = vector.extract_strided_slice %397 {offsets = [0, 0], sizes = [1, 64], strides = [1, 1]} : vector<2x64xf32> to vector<1x64xf32>
    %400 = vector.extract_strided_slice %397 {offsets = [1, 0], sizes = [1, 64], strides = [1, 1]} : vector<2x64xf32> to vector<1x64xf32>
    %cst_70 = arith.constant dense<0.000000e+00> : vector<16xf32>
    %401 = vector.multi_reduction <add>, %398, %cst_70 [1] : vector<16x64xf32> to vector<16xf32>
    %402 = vector.shape_cast %401 : vector<16xf32> to vector<16x1xf32>
    %cst_71 = arith.constant 6.400000e+01 : f32
    %403 = vector.broadcast %cst_71 : f32 to vector<16x1xf32>
    %404 = arith.divf %402, %403 : vector<16x1xf32>
    %405 = vector.broadcast %404 : vector<16x1xf32> to vector<16x64xf32>
    %406 = arith.subf %398, %405 : vector<16x64xf32>
    %407 = arith.mulf %406, %406 : vector<16x64xf32>
    %cst_72 = arith.constant dense<0.000000e+00> : vector<16xf32>
    %408 = vector.multi_reduction <add>, %407, %cst_72 [1] : vector<16x64xf32> to vector<16xf32>
    %409 = vector.shape_cast %408 : vector<16xf32> to vector<16x1xf32>
    %cst_73 = arith.constant 6.400000e+01 : f32
    %410 = vector.broadcast %cst_73 : f32 to vector<16x1xf32>
    %411 = arith.divf %409, %410 : vector<16x1xf32>
    %412 = vector.broadcast %404 : vector<16x1xf32> to vector<16x64xf32>
    %413 = arith.subf %398, %412 : vector<16x64xf32>
    %cst_74 = arith.constant 9.99999974E-6 : f32
    %414 = vector.broadcast %cst_74 : f32 to vector<16x1xf32>
    %415 = arith.addf %411, %414 : vector<16x1xf32>
    %416 = math.rsqrt %415 : vector<16x1xf32>
    %417 = vector.broadcast %416 : vector<16x1xf32> to vector<16x64xf32>
    %418 = arith.mulf %413, %417 : vector<16x64xf32>
    %419 = vector.broadcast %399 : vector<1x64xf32> to vector<16x64xf32>
    %420 = arith.mulf %418, %419 : vector<16x64xf32>
    %421 = vector.broadcast %400 : vector<1x64xf32> to vector<16x64xf32>
    %422 = arith.addf %420, %421 : vector<16x64xf32>
    %423 = arith.truncf %422 : vector<16x64xf32> to vector<16x64xbf16>
    %c1_75 = arith.constant 1 : index
    %c0_76 = arith.constant 0 : index
    %c0_77 = arith.constant 0 : index
    %424 = vector.load %arg9[%c1_75, %c0_76, %c0_77] : memref<2x64x2048xbf16, #tpu.memory_space<vmem>>, vector<1x64x2048xbf16>
    %425 = vector.shape_cast %424 : vector<1x64x2048xbf16> to vector<64x2048xbf16>
    %cst_78 = arith.constant dense<0.000000e+00> : vector<16x2048xf32>
    %426 = tpu.matmul %423, %425, %cst_78 {dimension_numbers = #tpu.dot_dimension_numbers<[1], [0], [0], [1], [0, 0, 1, 1], [], []>} : vector<16x64xbf16>, vector<64x2048xbf16>, vector<16x2048xf32> -> vector<16x2048xf32>
    %c1_79 = arith.constant 1 : index
    %c0_80 = arith.constant 0 : index
    %c0_81 = arith.constant 0 : index
    %427 = vector.load %arg10[%c1_79, %c0_80, %c0_81] : memref<2x1x2048xf32, #tpu.memory_space<vmem>>, vector<1x1x2048xf32>
    %428 = vector.shape_cast %427 : vector<1x1x2048xf32> to vector<1x2048xf32>
    %429 = vector.broadcast %428 : vector<1x2048xf32> to vector<16x2048xf32>
    %430 = arith.addf %426, %429 : vector<16x2048xf32>
    %cst_82 = arith.constant 0.000000e+00 : f32
    %431 = vector.broadcast %cst_82 : f32 to vector<16x2048xf32>
    %432 = arith.maximumf %430, %431 : vector<16x2048xf32>
    %433 = arith.truncf %432 : vector<16x2048xf32> to vector<16x2048xbf16>
    %c1_83 = arith.constant 1 : index
    %c0_84 = arith.constant 0 : index
    %c0_85 = arith.constant 0 : index
    %434 = vector.load %arg11[%c1_83, %c0_84, %c0_85] : memref<2x2048x64xbf16, #tpu.memory_space<vmem>>, vector<1x2048x64xbf16>
    %435 = vector.shape_cast %434 : vector<1x2048x64xbf16> to vector<2048x64xbf16>
    %cst_86 = arith.constant dense<0.000000e+00> : vector<16x64xf32>
    %436 = tpu.matmul %433, %435, %cst_86 {dimension_numbers = #tpu.dot_dimension_numbers<[1], [0], [0], [1], [0, 0, 1, 1], [], []>} : vector<16x2048xbf16>, vector<2048x64xbf16>, vector<16x64xf32> -> vector<16x64xf32>
    %c1_87 = arith.constant 1 : index
    %c0_88 = arith.constant 0 : index
    %c0_89 = arith.constant 0 : index
    %437 = vector.load %arg12[%c1_87, %c0_88, %c0_89] : memref<2x1x64xf32, #tpu.memory_space<vmem>>, vector<1x1x64xf32>
    %438 = vector.shape_cast %437 : vector<1x1x64xf32> to vector<1x64xf32>
    %439 = vector.broadcast %438 : vector<1x64xf32> to vector<16x64xf32>
    %440 = arith.addf %436, %439 : vector<16x64xf32>
    %c1_90 = arith.constant 1 : index
    %c0_91 = arith.constant 0 : index
    %c0_92 = arith.constant 0 : index
    %441 = vector.load %arg8[%c1_90, %c0_91, %c0_92] : memref<2x2x64xf32, #tpu.memory_space<vmem>>, vector<1x2x64xf32>
    %442 = vector.shape_cast %441 : vector<1x2x64xf32> to vector<2x64xf32>
    %443 = arith.addf %422, %440 : vector<16x64xf32>
    %444 = vector.extract_strided_slice %442 {offsets = [0, 0], sizes = [1, 64], strides = [1, 1]} : vector<2x64xf32> to vector<1x64xf32>
    %445 = vector.extract_strided_slice %442 {offsets = [1, 0], sizes = [1, 64], strides = [1, 1]} : vector<2x64xf32> to vector<1x64xf32>
    %cst_93 = arith.constant dense<0.000000e+00> : vector<16xf32>
    %446 = vector.multi_reduction <add>, %443, %cst_93 [1] : vector<16x64xf32> to vector<16xf32>
    %447 = vector.shape_cast %446 : vector<16xf32> to vector<16x1xf32>
    %cst_94 = arith.constant 6.400000e+01 : f32
    %448 = vector.broadcast %cst_94 : f32 to vector<16x1xf32>
    %449 = arith.divf %447, %448 : vector<16x1xf32>
    %450 = vector.broadcast %449 : vector<16x1xf32> to vector<16x64xf32>
    %451 = arith.subf %443, %450 : vector<16x64xf32>
    %452 = arith.mulf %451, %451 : vector<16x64xf32>
    %cst_95 = arith.constant dense<0.000000e+00> : vector<16xf32>
    %453 = vector.multi_reduction <add>, %452, %cst_95 [1] : vector<16x64xf32> to vector<16xf32>
    %454 = vector.shape_cast %453 : vector<16xf32> to vector<16x1xf32>
    %cst_96 = arith.constant 6.400000e+01 : f32
    %455 = vector.broadcast %cst_96 : f32 to vector<16x1xf32>
    %456 = arith.divf %454, %455 : vector<16x1xf32>
    %457 = vector.broadcast %449 : vector<16x1xf32> to vector<16x64xf32>
    %458 = arith.subf %443, %457 : vector<16x64xf32>
    %cst_97 = arith.constant 9.99999974E-6 : f32
    %459 = vector.broadcast %cst_97 : f32 to vector<16x1xf32>
    %460 = arith.addf %456, %459 : vector<16x1xf32>
    %461 = math.rsqrt %460 : vector<16x1xf32>
    %462 = vector.broadcast %461 : vector<16x1xf32> to vector<16x64xf32>
    %463 = arith.mulf %458, %462 : vector<16x64xf32>
    %464 = vector.broadcast %444 : vector<1x64xf32> to vector<16x64xf32>
    %465 = arith.mulf %463, %464 : vector<16x64xf32>
    %466 = vector.broadcast %445 : vector<1x64xf32> to vector<16x64xf32>
    %467 = arith.addf %465, %466 : vector<16x64xf32>
    %468 = vector.extract_strided_slice %467 {offsets = [0, 0], sizes = [8, 64], strides = [1, 1]} : vector<16x64xf32> to vector<8x64xf32>
    %c0_98 = arith.constant 0 : index
    %c0_99 = arith.constant 0 : index
    %c0_100 = arith.constant 0 : index
    %469 = vector.load %arg2[%c0_98, %c0_99, %c0_100] : memref<2x1x64xf32, #tpu.memory_space<vmem>>, vector<1x1x64xf32>
    %470 = vector.shape_cast %469 : vector<1x1x64xf32> to vector<1x64xf32>
    %471 = vector.broadcast %470 : vector<1x64xf32> to vector<8x64xf32>
    %472 = arith.addf %468, %471 : vector<8x64xf32>
    %c0_101 = arith.constant 0 : index
    %c0_102 = arith.constant 0 : index
    %c0_103 = arith.constant 0 : index
    %473 = vector.load %arg13[%c0_101, %c0_102, %c0_103] : memref<2x8x64xf32, #tpu.memory_space<vmem>>, vector<1x8x64xf32>
    %474 = vector.shape_cast %473 : vector<1x8x64xf32> to vector<8x64xf32>
    %475 = vector.shape_cast %472 : vector<8x64xf32> to vector<1x8x64xf32>
    tpu.vector_store %arg13[%c0_101, %c0_102, %c0_103], %475 {strides = array<i32>} : memref<2x8x64xf32, #tpu.memory_space<vmem>>, vector<1x8x64xf32>,
    %cst_104 = arith.constant dense<0.000000e+00> : vector<64xf32>
    %476 = vector.multi_reduction <add>, %472, %cst_104 [0] : vector<8x64xf32> to vector<64xf32>
    %477 = vector.shape_cast %476 : vector<64xf32> to vector<1x64xf32>
    %cst_105 = arith.constant 8.000000e+00 : f32
    %478 = vector.broadcast %cst_105 : f32 to vector<1x64xf32>
    %479 = arith.divf %477, %478 : vector<1x64xf32>
    %c0_106 = arith.constant 0 : index
    %c0_107 = arith.constant 0 : index
    %c0_108 = arith.constant 0 : index
    %480 = vector.load %arg14[%c0_106, %c0_107, %c0_108] : memref<2x1x64xf32, #tpu.memory_space<vmem>>, vector<1x1x64xf32>
    %481 = vector.shape_cast %480 : vector<1x1x64xf32> to vector<1x64xf32>
    %482 = vector.shape_cast %479 : vector<1x64xf32> to vector<1x1x64xf32>
    tpu.vector_store %arg14[%c0_106, %c0_107, %c0_108], %482 {strides = array<i32>} : memref<2x1x64xf32, #tpu.memory_space<vmem>>, vector<1x1x64xf32>,
    %483 = vector.extract_strided_slice %467 {offsets = [8, 0], sizes = [8, 64], strides = [1, 1]} : vector<16x64xf32> to vector<8x64xf32>
    %c1_109 = arith.constant 1 : index
    %c0_110 = arith.constant 0 : index
    %c0_111 = arith.constant 0 : index
    %484 = vector.load %arg2[%c1_109, %c0_110, %c0_111] : memref<2x1x64xf32, #tpu.memory_space<vmem>>, vector<1x1x64xf32>
    %485 = vector.shape_cast %484 : vector<1x1x64xf32> to vector<1x64xf32>
    %486 = vector.broadcast %485 : vector<1x64xf32> to vector<8x64xf32>
    %487 = arith.addf %483, %486 : vector<8x64xf32>
    %c1_112 = arith.constant 1 : index
    %c0_113 = arith.constant 0 : index
    %c0_114 = arith.constant 0 : index
    %488 = vector.load %arg13[%c1_112, %c0_113, %c0_114] : memref<2x8x64xf32, #tpu.memory_space<vmem>>, vector<1x8x64xf32>
    %489 = vector.shape_cast %488 : vector<1x8x64xf32> to vector<8x64xf32>
    %490 = vector.shape_cast %487 : vector<8x64xf32> to vector<1x8x64xf32>
    tpu.vector_store %arg13[%c1_112, %c0_113, %c0_114], %490 {strides = array<i32>} : memref<2x8x64xf32, #tpu.memory_space<vmem>>, vector<1x8x64xf32>,
    %cst_115 = arith.constant dense<0.000000e+00> : vector<64xf32>
    %491 = vector.multi_reduction <add>, %487, %cst_115 [0] : vector<8x64xf32> to vector<64xf32>
    %492 = vector.shape_cast %491 : vector<64xf32> to vector<1x64xf32>
    %cst_116 = arith.constant 8.000000e+00 : f32
    %493 = vector.broadcast %cst_116 : f32 to vector<1x64xf32>
    %494 = arith.divf %492, %493 : vector<1x64xf32>
    %c1_117 = arith.constant 1 : index
    %c0_118 = arith.constant 0 : index
    %c0_119 = arith.constant 0 : index
    %495 = vector.load %arg14[%c1_117, %c0_118, %c0_119] : memref<2x1x64xf32, #tpu.memory_space<vmem>>, vector<1x1x64xf32>
    %496 = vector.shape_cast %495 : vector<1x1x64xf32> to vector<1x64xf32>
    %497 = vector.shape_cast %494 : vector<1x64xf32> to vector<1x1x64xf32>
    tpu.vector_store %arg14[%c1_117, %c0_118, %c0_119], %497 {strides = array<i32>} : memref<2x1x64xf32, #tpu.memory_space<vmem>>, vector<1x1x64xf32>,
    return
  }
  func.func @transform_0(%arg0: i32) -> (i32, i32, i32) {
    %c0_i32 = arith.constant 0 : i32
    %c0_i32_0 = arith.constant 0 : i32
    %c0_i32_1 = arith.constant 0 : i32
    return %arg0, %c0_i32, %c0_i32_0 : i32, i32, i32
  }
  func.func @transform_1(%arg0: i32) -> (i32, i32, i32) {
    %c0_i32 = arith.constant 0 : i32
    %c0_i32_0 = arith.constant 0 : i32
    %c0_i32_1 = arith.constant 0 : i32
    return %arg0, %c0_i32, %c0_i32_0 : i32, i32, i32
  }
  func.func @transform_2(%arg0: i32) -> (i32, i32, i32) {
    %c0_i32 = arith.constant 0 : i32
    %c0_i32_0 = arith.constant 0 : i32
    %c0_i32_1 = arith.constant 0 : i32
    %c0_i32_2 = arith.constant 0 : i32
    return %c0_i32, %c0_i32_0, %c0_i32_1 : i32, i32, i32
  }
  func.func @transform_3(%arg0: i32) -> (i32, i32, i32) {
    %c0_i32 = arith.constant 0 : i32
    %c0_i32_0 = arith.constant 0 : i32
    %c0_i32_1 = arith.constant 0 : i32
    %c0_i32_2 = arith.constant 0 : i32
    return %c0_i32, %c0_i32_0, %c0_i32_1 : i32, i32, i32
  }
  func.func @transform_4(%arg0: i32) -> (i32, i32, i32) {
    %c0_i32 = arith.constant 0 : i32
    %c0_i32_0 = arith.constant 0 : i32
    %c0_i32_1 = arith.constant 0 : i32
    %c0_i32_2 = arith.constant 0 : i32
    return %c0_i32, %c0_i32_0, %c0_i32_1 : i32, i32, i32
  }
  func.func @transform_5(%arg0: i32) -> (i32, i32, i32) {
    %c0_i32 = arith.constant 0 : i32
    %c0_i32_0 = arith.constant 0 : i32
    %c0_i32_1 = arith.constant 0 : i32
    %c0_i32_2 = arith.constant 0 : i32
    return %c0_i32, %c0_i32_0, %c0_i32_1 : i32, i32, i32
  }
  func.func @transform_6(%arg0: i32) -> (i32, i32, i32) {
    %c0_i32 = arith.constant 0 : i32
    %c0_i32_0 = arith.constant 0 : i32
    %c0_i32_1 = arith.constant 0 : i32
    %c0_i32_2 = arith.constant 0 : i32
    return %c0_i32, %c0_i32_0, %c0_i32_1 : i32, i32, i32
  }
  func.func @transform_7(%arg0: i32) -> (i32, i32, i32) {
    %c0_i32 = arith.constant 0 : i32
    %c0_i32_0 = arith.constant 0 : i32
    %c0_i32_1 = arith.constant 0 : i32
    %c0_i32_2 = arith.constant 0 : i32
    return %c0_i32, %c0_i32_0, %c0_i32_1 : i32, i32, i32
  }
  func.func @transform_8(%arg0: i32) -> (i32, i32, i32) {
    %c0_i32 = arith.constant 0 : i32
    %c0_i32_0 = arith.constant 0 : i32
    %c0_i32_1 = arith.constant 0 : i32
    %c0_i32_2 = arith.constant 0 : i32
    return %c0_i32, %c0_i32_0, %c0_i32_1 : i32, i32, i32
  }
  func.func @transform_9(%arg0: i32) -> (i32, i32, i32) {
    %c0_i32 = arith.constant 0 : i32
    %c0_i32_0 = arith.constant 0 : i32
    %c0_i32_1 = arith.constant 0 : i32
    %c0_i32_2 = arith.constant 0 : i32
    return %c0_i32, %c0_i32_0, %c0_i32_1 : i32, i32, i32
  }
  func.func @transform_10(%arg0: i32) -> (i32, i32, i32) {
    %c0_i32 = arith.constant 0 : i32
    %c0_i32_0 = arith.constant 0 : i32
    %c0_i32_1 = arith.constant 0 : i32
    %c0_i32_2 = arith.constant 0 : i32
    return %c0_i32, %c0_i32_0, %c0_i32_1 : i32, i32, i32
  }
  func.func @transform_11(%arg0: i32) -> (i32, i32, i32) {
    %c0_i32 = arith.constant 0 : i32
    %c0_i32_0 = arith.constant 0 : i32
    %c0_i32_1 = arith.constant 0 : i32
    %c0_i32_2 = arith.constant 0 : i32
    return %c0_i32, %c0_i32_0, %c0_i32_1 : i32, i32, i32
  }
  func.func @transform_12(%arg0: i32) -> (i32, i32, i32) {
    %c0_i32 = arith.constant 0 : i32
    %c0_i32_0 = arith.constant 0 : i32
    %c0_i32_1 = arith.constant 0 : i32
    return %arg0, %c0_i32, %c0_i32_0 : i32, i32, i32
  }
  func.func @transform_13(%arg0: i32) -> (i32, i32, i32) {
    %c0_i32 = arith.constant 0 : i32
    %c0_i32_0 = arith.constant 0 : i32
    %c0_i32_1 = arith.constant 0 : i32
    return %arg0, %c0_i32, %c0_i32_0 : i32, i32, i32
  }
}

</mosaic_0001>

<bundles_post_ra>
// kernel: tpu_custom_call.1
= control target key start
LH: loop header
LB: loop body
LE: loop exit
PB: predicated region body
PF: predicated region fallthrough
CT: control target
= control target key end

     0   :  { %19 = vsyncpa [#allocation3], 0  ;;  %v12822_v2 = vmov 0   ;;  %vm109_vm0 = vcmask 523264   ;;  %s15443_s0 = inlined_call_operand.vmem [shape: f32[2,8,64], index: 0, kind: input, shape index: {}]   ;;  %s15444_s1 = inlined_call_operand.vmem [shape: f32[2,1,64], index: 1, kind: input, shape index: {}]   ;;  %s15445_s2 = inlined_call_operand.vmem [shape: bf16[2,64,192], index: 2, kind: input, shape index: {}]   ;;  %s15446_s3 = inlined_call_operand.vmem [shape: f32[2,1,192], index: 3, kind: input, shape index: {}]   ;;  %s15447_s4 = inlined_call_operand.vmem [shape: bf16[2,64,64], index: 4, kind: input, shape index: {}]   ;;  %s15448_s5 = inlined_call_operand.vmem [shape: f32[2,1,64], index: 5, kind: input, shape index: {}]   ;;  %s15449_s6 = inlined_call_operand.vmem [shape: f32[2,2,64], index: 6, kind: input, shape index: {}]   ;;  %s15450_s7 = inlined_call_operand.vmem [shape: f32[2,2,64], index: 7, kind: input, shape index: {}]   ;;  %s15451_s8 = inlined_call_operand.vmem [shape: bf16[2,64,2048], index: 8, kind: input, shape index: {}]   ;;  %s15452_s9 = inlined_call_operand.vmem [shape: f32[2,1,2048], index: 9, kind: input, shape index: {}]   ;;  %s15453_s10 = inlined_call_operand.vmem [shape: bf16[2,2048,64], index: 10, kind: input, shape index: {}]   ;;  %s15454_s11 = inlined_call_operand.vmem [shape: f32[2,1,64], index: 11, kind: input, shape index: {}]   ;;  %s15455_s12 = inlined_call_operand.hbm [shape: f32[2,8,64], index: 12, kind: output, shape index: {0}]   ;;  %s15456_s13 = inlined_call_operand.hbm [shape: f32[2,1,64], index: 13, kind: output, shape index: {1}]  }
   0x1   :  { %v12340_v0 = vld [vmem:[%s15445_s2 + $0x4] ss:$8 sps:$4 sm:$0xff]   ;;  %v12342_v1 = vld [vmem:[%s15445_s2] ss:$8 sps:$4 sm:$0xff]   ;;  %145 = vmatprep.mubr.bf16.mxu0 %v12822_v2  ;;  %v12343_v3 = vld [vmem:[%s15445_s2 + $0x14] ss:$8 sps:$4 sm:$0xff]  }
   0x2   :  { %113 = vmatprep.subr.bf16.mxu0 %v12340_v0  ;;  %v12345_v4 = vld [vmem:[%s15445_s2 + $0x10] ss:$8 sps:$4 sm:$0xff]   ;;  %v12346_v5 = vld [vmem:[%s15445_s2 + $0x24] ss:$8 sps:$4 sm:$0xff]   ;;  %v12348_v6 = vld [vmem:[%s15445_s2 + $0x20] ss:$8 sps:$4 sm:$0xff]  }
   0x3   :  { %114 = vmatpush1.bf16.msra.mxu0 %v12342_v1  ;;  %v12349_v7 = vld [vmem:[%s15445_s2 + $0x34] ss:$8 sps:$4 sm:$0xff]   ;;  %v12351_v8 = vld [vmem:[%s15445_s2 + $0x30] ss:$8 sps:$4 sm:$0xff]   ;;  %v46_v9 = vld [vmem:[%s15443_s0] sm:$0xff] }
   0x4   :  { %115 = vmatprep.subr.bf16.mxu0 %v12343_v3  ;;  %v47_v10 = vld [vmem:[%s15443_s0 + $0x8] sm:$0xff] }
   0x5   :  { %v48_v11 = vpack.c.bf16 %v47_v10, %v46_v9 }
   0x7   :  { %116 = vmatpush1.bf16.msra.mxu0 %v12345_v4 }
   0x8   :  { %117 = vmatprep.subr.bf16.mxu0 %v12346_v5 }
   0xb   :  { %118 = vmatpush1.bf16.msra.mxu0 %v12348_v6 }
   0xc   :  { %119 = vmatprep.subr.bf16.mxu0 %v12349_v7 }
   0xf   :  { %120 = vmatpush1.bf16.msra.mxu0 %v12351_v8 }
  0x12   :  { %10548 = vmatmul.mubr.msk.bf16.vlgmr.msra.gmra.mrb[0].mxu0 %vm109_vm0, %v48_v11 }
  0x13   :  { %20 = vsyncpa [#allocation5], 0  ;;  %v59_v12 = vlaneseq  ;;  %v57_v15 = vld [vmem:[%s15446_s3] sm:$0x3]  ;;  %s12823_s30 = smov 104   ;;  %s12824_s14 = smov 120  }
  0x14   :  { %s12825_s15 = smov 96   ;;  %s12826_s16 = smov 112   ;;  %v12830_v26 = vmov 0.0   ;;  %vm12831_vm1 = vmmov 0   ;;  %vm232_vm2 = vcmask 64512   ;;  %vm2820_vm3 = vcmask 130048  }
  0x15   :  { %v12946_v13 = vshrl.u32 %v59_v12, 7  ;;  %s12827_s17 = smov 80   ;;  %s12828_s18 = smov 88   ;;  %11904 = vmatprep.subr.mxu0 %v12830_v26  ;;  %11909 = vmatprep.subr.mxu1 %v12830_v26  ;;  %vm2822_vm4 = vcmask 195584   ;;  %vm2824_vm5 = vcmask 261120   ;;  %vm2826_vm6 = vcmask 326656  }
  0x16   :  { %s12829_s19 = smov 72   ;;  %11906 = vmatprep.mubr.msk.f32.mxu0 %vm12831_vm1, %v12830_v26  ;;  %11911 = vmatprep.mubr.msk.f32.mxu1 %vm12831_vm1, %v12830_v26  ;;  %s12832_s20 = smov 64   ;;  %vm2828_vm7 = vcmask 392192   ;;  %vm2830_vm8 = vcmask 457728  }
  0x17   :  { %v12949_v14 = vsub.s32 0, %v12946_v13  ;;  %v12956_v17 = vsub.s32 1, %v12946_v13  ;;  %s15461_s21 = smov 16   ;;  %s15459_s24 = smov 32  }
  0x18   :  { %s15464_s29 = smov 8   ;;  %s15463_s22 = smov 24  }
  0x19   :  { %v62_v16 = vrot.slane %v57_v15, %v12949_v14  ;;  %v12963_v21 = vrot.slane %v57_v15, %v12956_v17  ;;  %s15460_s26 = smov 40   ;;  %s15457_s27 = smov 56  }
  0x1a   :  { %s15458_s28 = smov 48   ;;  %s15471_s25 = smov 48  }
  0xe5   :  { %v147_v18 = vpop.f32.mrb[0].mxu0 }
  0xe6   :  { %v12958_v19 = vadd.f32 %v147_v18, %v62_v16  ;;  %v12960_v20 = vpop.f32.mrb[1].mxu0 }
  0xe7   :  { %v151_v22 = vpop.f32.mrb[2].mxu0  ;;  %v13053_v42 = vadd.f32 %v12960_v20, %v12963_v21 }
  0xe8   :  { %v153_v23 = vpop.f32.mrb[3].mxu0  ;;  %161 = vrot.lane.b32.xlu1 %v12958_v19, %s12823_s30  ;;  %157 = vrot.lane.b32.xlu0 %v12958_v19, %s12824_s14  ;;  %v12980_v25 = vadd.f32 %v151_v22, %v62_v16 }
  0xe9   :  { %v12970_v24 = vadd.f32 %v153_v23, %v12963_v21 }
  0xec   :  { %163 = vrot.lane.b32.xlu1 %v12958_v19, %s12825_s15  ;;  %159 = vrot.lane.b32.xlu0 %v12958_v19, %s12826_s16 }
  0xf0   :  { %167 = vrot.lane.b32.xlu1 %v12958_v19, %s12827_s17  ;;  %165 = vrot.lane.b32.xlu0 %v12958_v19, %s12828_s18 }
  0xf4   :  { %172 = vrot.lane.b32.xlu1 %v12980_v25, %s12824_s14  ;;  %169 = vrot.lane.b32.xlu0 %v12958_v19, %s12829_s19 }
  0xf8   :  { %176 = vrot.lane.b32.xlu1 %v12980_v25, %s12823_s30  ;;  %174 = vrot.lane.b32.xlu0 %v12980_v25, %s12826_s16 }
  0xfc   :  { %180 = vrot.lane.b32.xlu1 %v12980_v25, %s12828_s18  ;;  %178 = vrot.lane.b32.xlu0 %v12980_v25, %s12825_s15 }
 0x100   :  { %184 = vrot.lane.b32.xlu1 %v12980_v25, %s12829_s19  ;;  %182 = vrot.lane.b32.xlu0 %v12980_v25, %s12827_s17 }
 0x104   :  { %230 = vrot.lane.b32.xlu1 %v12958_v19, %s12832_s20 }
 0x15a   :  { %v162_v27 = vpop.permute.xlu1 %161  ;;  %v158_v28 = vpop.permute.xlu0 %157 }
 0x15b   :  { %459 = vrot.lane.b32.xlu1 %v162_v27, %s12832_s20  ;;  %307 = vrot.lane.b32.xlu0 %v158_v28, %s12832_s20 }
 0x15e   :  { %v13008_v29 = vpop.permute.xlu1 %163  ;;  %v160_v30 = vpop.permute.xlu0 %159 }
 0x15f   :  { %383 = vrot.lane.b32.xlu0 %v160_v30, %s12832_s20 }
 0x162   :  { %v13011_v31 = vpop.permute.xlu1 %167  ;;  %v166_v32 = vpop.permute.xlu0 %165 }
 0x163   :  { %535 = vrot.lane.b32.xlu0 %v13008_v29, %s12832_s20  ;;  %611 = vrot.lane.b32.xlu1 %v166_v32, %s12832_s20 }
 0x166   :  { %v13016_v33 = vpop.permute.xlu1 %172  ;;  %v170_v34 = vpop.permute.xlu0 %169 }
 0x167   :  { %687 = vrot.lane.b32.xlu0 %v13011_v31, %s12832_s20  ;;  %763 = vrot.lane.b32.xlu1 %v170_v34, %s12832_s20 }
 0x16a   :  { %v13021_v35 = vpop.permute.xlu1 %176  ;;  %v13023_v36 = vpop.permute.xlu0 %174 }
 0x16b   :  { %839 = vrot.lane.b32.xlu0 %v12980_v25, %s12832_s20  ;;  %915 = vrot.lane.b32.xlu1 %v13016_v33, %s12832_s20 }
 0x16e   :  { %v13029_v37 = vpop.permute.xlu1 %180  ;;  %v13035_v38 = vpop.permute.xlu0 %178 }
 0x16f   :  { %1067 = vrot.lane.b32.xlu1 %v13021_v35, %s12832_s20  ;;  %991 = vrot.lane.b32.xlu0 %v13023_v36, %s12832_s20 }
 0x172   :  { %v13037_v39 = vpop.permute.xlu1 %184  ;;  %v13043_v41 = vpop.permute.xlu0 %182 }
 0x173   :  { %1219 = vrot.lane.b32.xlu1 %v13029_v37, %s12832_s20  ;;  %1143 = vrot.lane.b32.xlu0 %v13035_v38, %s12832_s20 }
 0x176   :  { %v231_v40 = vpop.permute.xlu1 %230 }
 0x177   :  { %11905 = vmatpush3.xpose.msk.msra.mxu0 %vm232_vm2, %v231_v40  ;;  %1371 = vrot.lane.b32.xlu1 %v13037_v39, %s12832_s20 }
 0x178   :  { %1295 = vrot.lane.b32.xlu0 %v13043_v41, %s12832_s20  ;;  %11929 = vmatprep.subr.mxu0 %v12830_v26 }
 0x17a   :  { %11907 = vmatmul.mubr.msk.f32.vlgmr.msra.gmra.mrb[4].mxu0 %vm232_vm2, %v12958_v19 }
 0x17b   :  { %187 = vrot.lane.b32.xlu1 %v13053_v42, %s12824_s14  ;;  %11931 = vmatprep.mubr.msk.f32.mxu0 %vm12831_vm1, %v12830_v26 }
 0x17c   :  { %190 = vrot.lane.b32.xlu0 %v13053_v42, %s12826_s16 }
 0x17f   :  { %193 = vrot.lane.b32.xlu1 %v13053_v42, %s12823_s30 }
 0x180   :  { %205 = vrot.lane.b32.xlu0 %v13053_v42, %s12829_s19 }
 0x183   :  { %196 = vrot.lane.b32.xlu1 %v13053_v42, %s12825_s15 }
 0x187   :  { %199 = vrot.lane.b32.xlu1 %v13053_v42, %s12828_s18 }
 0x18b   :  { %202 = vrot.lane.b32.xlu1 %v13053_v42, %s12827_s17 }
 0x1cd   :  { %v308_v43 = vpop.permute.xlu0 %307  ;;  %v460_v44 = vpop.permute.xlu1 %459 }
 0x1ce   :  { %11910 = vmatpush3.xpose.msk.msra.mxu1 %vm232_vm2, %v308_v43 }
 0x1cf   :  { %11914 = vmatprep.subr.mxu1 %v12830_v26 }
 0x1d1   :  { %11912 = vmatmul.mubr.msk.f32.vlgmr.msra.gmra.mrb[0].mxu1 %vm232_vm2, %v158_v28  ;;  %v384_v45 = vpop.permute.xlu0 %383 }
 0x1d2   :  { %11915 = vmatpush3.xpose.msk.msra.mxu1 %vm232_vm2, %v384_v45  ;;  %11916 = vmatprep.mubr.msk.f32.mxu1 %vm12831_vm1, %v12830_v26 }
 0x1d3   :  { %11919 = vmatprep.subr.mxu1 %v12830_v26 }
 0x1d5   :  { %v612_v46 = vpop.permute.xlu1 %611  ;;  %11917 = vmatmul.mubr.msk.f32.vlgmr.msra.gmra.mrb[2].mxu1 %vm232_vm2, %v160_v30  ;;  %v536_v47 = vpop.permute.xlu0 %535 }
 0x1d6   :  { %11920 = vmatpush3.xpose.msk.msra.mxu1 %vm232_vm2, %v460_v44  ;;  %11930 = vmatpush3.xpose.msk.msra.mxu0 %vm232_vm2, %v612_v46 }
 0x1d7   :  { %11921 = vmatprep.mubr.msk.f32.mxu1 %vm12831_vm1, %v12830_v26  ;;  %11939 = vmatprep.subr.mxu0 %v12830_v26 }
 0x1d8   :  { %11924 = vmatprep.subr.mxu1 %v12830_v26 }
 0x1d9   :  { %11932 = vmatmul.mubr.msk.f32.vlgmr.msra.gmra.mrb[6].mxu0 %vm232_vm2, %v166_v32  ;;  %v764_v48 = vpop.permute.xlu1 %763  ;;  %11922 = vmatmul.mubr.msk.f32.vlgmr.msra.gmra.mrb[4].mxu1 %vm232_vm2, %v162_v27  ;;  %v688_v49 = vpop.permute.xlu0 %687 }
 0x1da   :  { %11925 = vmatpush3.xpose.msk.msra.mxu1 %vm232_vm2, %v536_v47  ;;  %11940 = vmatpush3.xpose.msk.msra.mxu0 %vm232_vm2, %v764_v48 }
 0x1db   :  { %11926 = vmatprep.mubr.msk.f32.mxu1 %vm12831_vm1, %v12830_v26  ;;  %11941 = vmatprep.mubr.msk.f32.mxu0 %vm12831_vm1, %v12830_v26 }
 0x1dc   :  { %11949 = vmatprep.subr.mxu0 %v12830_v26  ;;  %11934 = vmatprep.subr.mxu1 %v12830_v26 }
 0x1dd   :  { %11942 = vmatmul.mubr.msk.f32.vlgmr.msra.gmra.mrb[8].mxu0 %vm232_vm2, %v170_v34  ;;  %v916_v50 = vpop.permute.xlu1 %915  ;;  %11927 = vmatmul.mubr.msk.f32.vlgmr.msra.gmra.mrb[6].mxu1 %vm232_vm2, %v13008_v29  ;;  %v840_v51 = vpop.permute.xlu0 %839 }
 0x1de   :  { %11935 = vmatpush3.xpose.msk.msra.mxu1 %vm232_vm2, %v688_v49  ;;  %11950 = vmatpush3.xpose.msk.msra.mxu0 %vm232_vm2, %v916_v50 }
 0x1df   :  { %11936 = vmatprep.mubr.msk.f32.mxu1 %vm12831_vm1, %v12830_v26  ;;  %11951 = vmatprep.mubr.msk.f32.mxu0 %vm12831_vm1, %v12830_v26 }
 0x1e0   :  { %11959 = vmatprep.subr.mxu0 %v12830_v26  ;;  %11944 = vmatprep.subr.mxu1 %v12830_v26 }
 0x1e1   :  { %11952 = vmatmul.mubr.msk.f32.vlgmr.msra.gmra.mrb[10].mxu0 %vm232_vm2, %v13016_v33  ;;  %v1068_v52 = vpop.permute.xlu1 %1067  ;;  %11937 = vmatmul.mubr.msk.f32.vlgmr.msra.gmra.mrb[8].mxu1 %vm232_vm2, %v13011_v31  ;;  %v992_v53 = vpop.permute.xlu0 %991 }
 0x1e2   :  { %11945 = vmatpush3.xpose.msk.msra.mxu1 %vm232_vm2, %v840_v51  ;;  %11960 = vmatpush3.xpose.msk.msra.mxu0 %vm232_vm2, %v1068_v52 }
 0x1e3   :  { %11946 = vmatprep.mubr.msk.f32.mxu1 %vm12831_vm1, %v12830_v26  ;;  %11961 = vmatprep.mubr.msk.f32.mxu0 %vm12831_vm1, %v12830_v26 }
 0x1e4   :  { %11969 = vmatprep.subr.mxu0 %v12830_v26  ;;  %11954 = vmatprep.subr.mxu1 %v12830_v26 }
 0x1e5   :  { %11962 = vmatmul.mubr.msk.f32.vlgmr.msra.gmra.mrb[12].mxu0 %vm232_vm2, %v13021_v35  ;;  %v1220_v54 = vpop.permute.xlu1 %1219  ;;  %11947 = vmatmul.mubr.msk.f32.vlgmr.msra.gmra.mrb[10].mxu1 %vm232_vm2, %v12980_v25  ;;  %v1144_v55 = vpop.permute.xlu0 %1143 }
 0x1e6   :  { %11955 = vmatpush3.xpose.msk.msra.mxu1 %vm232_vm2, %v992_v53  ;;  %11970 = vmatpush3.xpose.msk.msra.mxu0 %vm232_vm2, %v1220_v54 }
 0x1e7   :  { %11956 = vmatprep.mubr.msk.f32.mxu1 %vm12831_vm1, %v12830_v26  ;;  %11971 = vmatprep.mubr.msk.f32.mxu0 %vm12831_vm1, %v12830_v26 }
 0x1e8   :  { %11979 = vmatprep.subr.mxu0 %v12830_v26  ;;  %11964 = vmatprep.subr.mxu1 %v12830_v26 }
 0x1e9   :  { %11972 = vmatmul.mubr.msk.f32.vlgmr.msra.gmra.mrb[14].mxu0 %vm232_vm2, %v13029_v37  ;;  %v1372_v56 = vpop.permute.xlu1 %1371  ;;  %11957 = vmatmul.mubr.msk.f32.vlgmr.msra.gmra.mrb[12].mxu1 %vm232_vm2, %v13023_v36 }
 0x1ea   :  { %11965 = vmatpush3.xpose.msk.msra.mxu1 %vm232_vm2, %v1144_v55  ;;  %11980 = vmatpush3.xpose.msk.msra.mxu0 %vm232_vm2, %v1372_v56  ;;  %v1296_v57 = vpop.permute.xlu0 %1295 }
 0x1eb   :  { %11966 = vmatprep.mubr.msk.f32.mxu1 %vm12831_vm1, %v12830_v26  ;;  %11981 = vmatprep.mubr.msk.f32.mxu0 %vm12831_vm1, %v12830_v26 }
 0x1ec   :  { %11989 = vmatprep.subr.mxu0 %v12830_v26  ;;  %11974 = vmatprep.subr.mxu1 %v12830_v26 }
 0x1ed   :  { %11982 = vmatmul.mubr.msk.f32.vlgmr.msra.gmra.mrb[16].mxu0 %vm232_vm2, %v13037_v39  ;;  %v188_v58 = vpop.permute.xlu1 %187  ;;  %11967 = vmatmul.mubr.msk.f32.vlgmr.msra.gmra.mrb[14].mxu1 %vm232_vm2, %v13035_v38 }
 0x1ee   :  { %11975 = vmatpush3.xpose.msk.msra.mxu1 %vm232_vm2, %v1296_v57  ;;  %11990 = vmatpush3.msra.mxu0 %v188_v58  ;;  %v13233_v49 = vpop.permute.xlu0 %190 }
 0x1ef   :  { %11976 = vmatprep.mubr.msk.f32.mxu1 %vm12831_vm1, %v12830_v26  ;;  %11984 = vmatprep.subr.mxu1 %v12830_v26 }
 0x1f0   :  { %11991 = vmatprep.mubr.msk.f32.mxu0 %vm12831_vm1, %v12830_v26  ;;  %11999 = vmatprep.subr.mxu0 %v12830_v26 }
 0x1f1   :  { %11977 = vmatmul.mubr.msk.f32.vlgmr.msra.gmra.mrb[16].mxu1 %vm232_vm2, %v13043_v41  ;;  %v13240_v54 = vpop.permute.xlu1 %193 }
 0x1f2   :  { %11985 = vmatpush3.msra.mxu1 %v13053_v42  ;;  %11986 = vmatprep.mubr.msk.f32.mxu1 %vm12831_vm1, %v12830_v26  ;;  %v13235_v50 = vpop.permute.xlu0 %205 }
 0x1f3   :  { %11994 = vmatprep.subr.mxu1 %v12830_v26 }
 0x1f5   :  { %v13242_v55 = vpop.permute.xlu1 %196 }
 0x1f9   :  { %v13248_v58 = vpop.permute.xlu1 %199 }
 0x24d   :  { %v13161_v59 = vpop.f32.mrb[4].mxu0 }
 0x24e   :  { %v11908_v60 = vpop.f32.mrb[5].mxu0  ;;  %v1447_v61 = vsel %vm232_vm2, %v13161_v59, -inf }
 0x24f   :  { %1448 = vmax.xlane.f32.xlu0 %v1447_v61  ;;  %v13250_v60 = vpop.permute.xlu1 %202 }
 0x2a4   :  { %v13165_v62 = vpop.f32.mrb[0].mxu1 }
 0x2a5   :  { %v11913_v63 = vpop.f32.mrb[1].mxu1  ;;  %v1450_v0 = vsel %vm232_vm2, %v13165_v62, -inf }
 0x2a6   :  { %1451 = vmax.xlane.f32.xlu1 %v1450_v0 }
 0x2a8   :  { %v13169_v1 = vpop.f32.mrb[2].mxu1 }
 0x2a9   :  { %v11918_v3 = vpop.f32.mrb[3].mxu1  ;;  %v1453_v15 = vsel %vm232_vm2, %v13169_v1, -inf }
 0x2ac   :  { %v13171_v4 = vpop.f32.mrb[4].mxu1  ;;  %v13173_v5 = vpop.f32.mrb[6].mxu0 }
 0x2ad   :  { %v11923_v6 = vpop.f32.mrb[5].mxu1  ;;  %v11933_v7 = vpop.f32.mrb[7].mxu0  ;;  %v1462_v8 = vsel %vm232_vm2, %v13173_v5, -inf  ;;  %v1456_v28 = vsel %vm232_vm2, %v13171_v4, -inf }
 0x2ae   :  { %1463 = vmax.xlane.f32.xlu0 %v1462_v8 }
 0x2b0   :  { %v13177_v9 = vpop.f32.mrb[6].mxu1  ;;  %v13179_v10 = vpop.f32.mrb[8].mxu0 }
 0x2b1   :  { %v11928_v11 = vpop.f32.mrb[7].mxu1  ;;  %v11943_v12 = vpop.f32.mrb[9].mxu0  ;;  %v1468_v21 = vsel %vm232_vm2, %v13179_v10, -inf  ;;  %v1459_v39 = vsel %vm232_vm2, %v13177_v9, -inf }
 0x2b2   :  { %1454 = vmax.xlane.f32.xlu0 %v1453_v15 }
 0x2b4   :  { %v13183_v16 = vpop.f32.mrb[8].mxu1  ;;  %v13185_v18 = vpop.f32.mrb[10].mxu0 }
 0x2b5   :  { %v11938_v19 = vpop.f32.mrb[9].mxu1  ;;  %v11953_v20 = vpop.f32.mrb[11].mxu0  ;;  %v1465_v40 = vsel %vm232_vm2, %v13183_v16, -inf  ;;  %v1474_v44 = vsel %vm232_vm2, %v13185_v18, -inf }
 0x2b6   :  { %1469 = vmax.xlane.f32.xlu0 %v1468_v21 }
 0x2b7   :  { %209 = vrot.lane.b32.xlu1 %v12970_v24, %s12824_s14 }
 0x2b8   :  { %v13191_v22 = vpop.f32.mrb[10].mxu1  ;;  %v13193_v23 = vpop.f32.mrb[12].mxu0 }
 0x2b9   :  { %v11948_v25 = vpop.f32.mrb[11].mxu1  ;;  %v11963_v27 = vpop.f32.mrb[13].mxu0  ;;  %v1471_v41 = vsel %vm232_vm2, %v13191_v22, -inf  ;;  %v1480_v46 = vsel %vm232_vm2, %v13193_v23, -inf }
 0x2ba   :  { %1457 = vmax.xlane.f32.xlu0 %v1456_v28 }
 0x2bc   :  { %v13197_v29 = vpop.f32.mrb[12].mxu1  ;;  %v13199_v30 = vpop.f32.mrb[14].mxu0 }
 0x2bd   :  { %v11958_v31 = vpop.f32.mrb[13].mxu1  ;;  %v11973_v32 = vpop.f32.mrb[15].mxu0  ;;  %v1477_v42 = vsel %vm232_vm2, %v13197_v29, -inf  ;;  %v1486_v47 = vsel %vm232_vm2, %v13199_v30, -inf }
 0x2c0   :  { %v13201_v33 = vpop.f32.mrb[14].mxu1  ;;  %v13203_v34 = vpop.f32.mrb[16].mxu0 }
 0x2c1   :  { %v11968_v35 = vpop.f32.mrb[15].mxu1  ;;  %v11983_v36 = vpop.f32.mrb[17].mxu0  ;;  %v1483_v43 = vsel %vm232_vm2, %v13201_v33, -inf  ;;  %v1492_v48 = vsel %vm232_vm2, %v13203_v34, -inf }
 0x2c4   :  { %v13205_v37 = vpop.f32.mrb[16].mxu1 }
 0x2c5   :  { %v11978_v38 = vpop.f32.mrb[17].mxu1  ;;  %v1489_v45 = vsel %vm232_vm2, %v13205_v37, -inf }
 0x2d0   :  { %212 = vrot.lane.b32.xlu0 %v12970_v24, %s12826_s16 }
 0x2db   :  { %1460 = vmax.xlane.f32.xlu1 %v1459_v39 }
 0x2dc   :  { %v1449_v51 = vpop.xlane.xlu0 %1448 }
 0x2dd   :  { %v1495_v52 = vsub.f32 %v13161_v59, %v1449_v51 }
 0x2df   :  { %1466 = vmax.xlane.f32.xlu1 %v1465_v40  ;;  %v1511_v53 = vmul.f32 1.442695, %v1495_v52 }
 0x2e1   :  { %12628 = vpow2.f32 %v1511_v53 }
 0x2e3   :  { %1472 = vmax.xlane.f32.xlu1 %v1471_v41 }
 0x2e7   :  { %1478 = vmax.xlane.f32.xlu1 %v1477_v42 }
 0x2eb   :  { %1484 = vmax.xlane.f32.xlu1 %v1483_v43  ;;  %v13244_v56 = vpop.eup %12628 }
 0x2ec   :  { %v1543_v57 = vsel %vm232_vm2, %v13244_v56, 0.0 }
 0x2ef   :  { %1475 = vmax.xlane.f32.xlu0 %v1474_v44  ;;  %1490 = vmax.xlane.f32.xlu1 %v1489_v45 }
 0x2f3   :  { %1481 = vmax.xlane.f32.xlu0 %v1480_v46 }
 0x2f7   :  { %1487 = vmax.xlane.f32.xlu0 %v1486_v47 }
 0x2fb   :  { %1493 = vmax.xlane.f32.xlu0 %v1492_v48 }
 0x300   :  { %215 = vrot.lane.b32.xlu1 %v12970_v24, %s12823_s30 }
 0x304   :  { %221 = vrot.lane.b32.xlu1 %v12970_v24, %s12828_s18 }
 0x311   :  { %218 = vrot.lane.b32.xlu0 %v12970_v24, %s12825_s15 }
 0x328   :  { %1544 = vadd.xlane.f32.xlu1 %v1543_v57 }
 0x333   :  { %v1452_v61 = vpop.xlane.xlu1 %1451 }
 0x334   :  { %v1496_v63 = vsub.f32 %v13165_v62, %v1452_v61 }
 0x336   :  { %v1513_v59 = vmul.f32 1.442695, %v1496_v63 }
 0x337   :  { %v13277_v36 = vpop.permute.xlu1 %209 }
 0x338   :  { %12630 = vpow2.f32 %v1513_v59 }
 0x33b   :  { %v1464_v0 = vpop.xlane.xlu0 %1463 }
 0x33c   :  { %v1500_v3 = vsub.f32 %v13173_v5, %v1464_v0 }
 0x33e   :  { %v1521_v6 = vmul.f32 1.442695, %v1500_v3 }
 0x33f   :  { %v1455_v7 = vpop.xlane.xlu0 %1454 }
 0x340   :  { %12632 = vpow2.f32 %v1521_v6  ;;  %v1497_v8 = vsub.f32 %v13169_v1, %v1455_v7 }
 0x342   :  { %v13255_v11 = vpop.eup %12630  ;;  %v1515_v12 = vmul.f32 1.442695, %v1497_v8 }
 0x343   :  { %v1470_v15 = vpop.xlane.xlu0 %1469  ;;  %v1546_v19 = vsel %vm232_vm2, %v13255_v11, 0.0 }
 0x344   :  { %12634 = vpow2.f32 %v1515_v12  ;;  %v1502_v62 = vsub.f32 %v13179_v10, %v1470_v15  ;;  %1547 = vadd.xlane.f32.xlu0 %v1546_v19 }
 0x346   :  { %v1525_v20 = vmul.f32 1.442695, %v1502_v62 }
 0x347   :  { %v1458_v21 = vpop.xlane.xlu0 %1457 }
 0x348   :  { %12636 = vpow2.f32 %v1525_v20  ;;  %v1498_v5 = vsub.f32 %v13171_v4, %v1458_v21 }
 0x34a   :  { %v13261_v25 = vpop.eup %12632  ;;  %v1517_v27 = vmul.f32 1.442695, %v1498_v5 }
 0x34b   :  { %v1558_v1 = vsel %vm232_vm2, %v13261_v25, 0.0  ;;  %v13285_v53 = vpop.permute.xlu0 %212 }
 0x34c   :  { %12638 = vpow2.f32 %v1517_v27  ;;  %1559 = vadd.xlane.f32.xlu0 %v1558_v1 }
 0x34e   :  { %v13265_v28 = vpop.eup %12634 }
 0x34f   :  { %v1549_v31 = vsel %vm232_vm2, %v13265_v28, 0.0 }
 0x350   :  { %1550 = vadd.xlane.f32.xlu1 %v1549_v31 }
 0x352   :  { %v13269_v10 = vpop.eup %12636 }
 0x353   :  { %v1564_v32 = vsel %vm232_vm2, %v13269_v10, 0.0 }
 0x354   :  { %1565 = vadd.xlane.f32.xlu0 %v1564_v32 }
 0x356   :  { %v13273_v4 = vpop.eup %12638 }
 0x357   :  { %v1552_v35 = vsel %vm232_vm2, %v13273_v4, 0.0 }
 0x358   :  { %1553 = vadd.xlane.f32.xlu0 %v1552_v35 }
 0x368   :  { %v1461_v38 = vpop.xlane.xlu1 %1460 }
 0x369   :  { %v1499_v39 = vsub.f32 %v13177_v9, %v1461_v38 }
 0x36b   :  { %v1519_v40 = vmul.f32 1.442695, %v1499_v39 }
 0x36c   :  { %v1467_v41 = vpop.xlane.xlu1 %1466 }
 0x36d   :  { %12640 = vpow2.f32 %v1519_v40  ;;  %v1501_v42 = vsub.f32 %v13183_v16, %v1467_v41 }
 0x36f   :  { %v1523_v43 = vmul.f32 1.442695, %v1501_v42 }
 0x370   :  { %v1473_v44 = vpop.xlane.xlu1 %1472 }
 0x371   :  { %12642 = vpow2.f32 %v1523_v43  ;;  %v1503_v45 = vsub.f32 %v13191_v22, %v1473_v44 }
 0x373   :  { %v1527_v46 = vmul.f32 1.442695, %v1503_v45 }
 0x374   :  { %v1479_v47 = vpop.xlane.xlu1 %1478 }
 0x375   :  { %12644 = vpow2.f32 %v1527_v46  ;;  %v1505_v48 = vsub.f32 %v13197_v29, %v1479_v47 }
 0x377   :  { %v13283_v51 = vpop.eup %12640  ;;  %v1531_v52 = vmul.f32 1.442695, %v1505_v48 }
 0x378   :  { %v1485_v9 = vpop.xlane.xlu1 %1484  ;;  %v1555_v57 = vsel %vm232_vm2, %v13283_v51, 0.0 }
 0x379   :  { %12646 = vpow2.f32 %v1531_v52  ;;  %v1507_v16 = vsub.f32 %v13201_v33, %v1485_v9  ;;  %1556 = vadd.xlane.f32.xlu1 %v1555_v57 }
 0x37b   :  { %v13290_v61 = vpop.eup %12642  ;;  %v1535_v22 = vmul.f32 1.442695, %v1507_v16 }
 0x37c   :  { %v1476_v63 = vpop.xlane.xlu0 %1475  ;;  %v1561_v29 = vsel %vm232_vm2, %v13290_v61, 0.0 }
 0x37d   :  { %12648 = vpow2.f32 %v1535_v22  ;;  %v1504_v59 = vsub.f32 %v13185_v18, %v1476_v63  ;;  %1562 = vadd.xlane.f32.xlu1 %v1561_v29  ;;  %v1491_v18 = vpop.xlane.xlu1 %1490 }
 0x37e   :  { %v1509_v5 = vsub.f32 %v13205_v37, %v1491_v18 }
 0x37f   :  { %v13295_v0 = vpop.eup %12644  ;;  %v1529_v3 = vmul.f32 1.442695, %v1504_v59 }
 0x380   :  { %v1482_v6 = vpop.xlane.xlu0 %1481  ;;  %v1567_v7 = vsel %vm232_vm2, %v13295_v0, 0.0  ;;  %v1539_v35 = vmul.f32 1.442695, %v1509_v5 }
 0x381   :  { %v1506_v33 = vsub.f32 %v13193_v23, %v1482_v6  ;;  %1568 = vadd.xlane.f32.xlu1 %v1567_v7  ;;  %12650 = vpow2.f32 %v1529_v3  ;;  %v13333_v44 = vpop.permute.xlu1 %215 }
 0x383   :  { %v13300_v8 = vpop.eup %12646  ;;  %v1533_v12 = vmul.f32 1.442695, %v1506_v33 }
 0x384   :  { %v1488_v15 = vpop.xlane.xlu0 %1487  ;;  %v1573_v19 = vsel %vm232_vm2, %v13300_v8, 0.0 }
 0x385   :  { %12652 = vpow2.f32 %v1533_v12  ;;  %v1508_v62 = vsub.f32 %v13199_v30, %v1488_v15  ;;  %1574 = vadd.xlane.f32.xlu1 %v1573_v19  ;;  %v13335_v45 = vpop.permute.xlu1 %221 }
 0x387   :  { %v13305_v20 = vpop.eup %12648  ;;  %v1537_v21 = vmul.f32 1.442695, %v1508_v62 }
 0x388   :  { %v1494_v23 = vpop.xlane.xlu0 %1493  ;;  %v1579_v27 = vsel %vm232_vm2, %v13305_v20, 0.0 }
 0x389   :  { %12654 = vpow2.f32 %v1537_v21  ;;  %v1510_v1 = vsub.f32 %v13203_v34, %v1494_v23  ;;  %1580 = vadd.xlane.f32.xlu1 %v1579_v27 }
 0x38b   :  { %v1541_v31 = vmul.f32 1.442695, %v1510_v1  ;;  %v13311_v32 = vpop.eup %12650 }
 0x38c   :  { %v1570_v30 = vsel %vm232_vm2, %v13311_v32, 0.0  ;;  %v13345_v52 = vpop.permute.xlu0 %218 }
 0x38d   :  { %12656 = vpow2.f32 %v1541_v31  ;;  %1571 = vadd.xlane.f32.xlu0 %v1570_v30 }
 0x38e   :  { %12658 = vpow2.f32 %v1539_v35 }
 0x38f   :  { %v13315_v38 = vpop.eup %12652 }
 0x390   :  { %v1576_v37 = vsel %vm232_vm2, %v13315_v38, 0.0 }
 0x391   :  { %1577 = vadd.xlane.f32.xlu0 %v1576_v37 }
 0x393   :  { %v13319_v39 = vpop.eup %12654 }
 0x394   :  { %v1582_v34 = vsel %vm232_vm2, %v13319_v39, 0.0 }
 0x395   :  { %1583 = vadd.xlane.f32.xlu0 %v1582_v34 }
 0x397   :  { %v13323_v40 = vpop.eup %12656 }
 0x398   :  { %v1588_v41 = vsel %vm232_vm2, %v13323_v40, 0.0  ;;  %v13327_v42 = vpop.eup %12658 }
 0x399   :  { %1589 = vadd.xlane.f32.xlu0 %v1588_v41  ;;  %v1585_v43 = vsel %vm232_vm2, %v13327_v42, 0.0 }
 0x39a   :  { %227 = vrot.lane.b32.xlu1 %v12970_v24, %s12829_s19 }
 0x39d   :  { %1586 = vadd.xlane.f32.xlu0 %v1585_v43 }
 0x3b3   :  { %224 = vrot.lane.b32.xlu0 %v12970_v24, %s12827_s17 }
 0x3b5   :  { %v1545_v46 = vpop.xlane.xlu1 %1544 }
 0x3b6   :  { %12660 = vrcp.f32 %v1545_v46 }
 0x3c0   :  { %v12661_v47 = vpop.eup %12660 }
 0x3c1   :  { %v1592_v48 = vmul.f32 %v12661_v47, %v13244_v56 }
 0x3c3   :  { %11987 = vmatmul.mubr.msk.f32.vlgmr.msra.gmra.mrb[18].mxu1 %vm232_vm2, %v1592_v48 }
 0x3c4   :  { %11995 = vmatpush3.msra.mxu1 %v13233_v49  ;;  %11996 = vmatprep.mubr.msk.f32.mxu1 %vm12831_vm1, %v12830_v26 }
 0x3c5   :  { %12004 = vmatprep.subr.mxu1 %v12830_v26 }
 0x3d1   :  { %v1548_v9 = vpop.xlane.xlu0 %1547 }
 0x3d2   :  { %12662 = vrcp.f32 %v1548_v9 }
 0x3d9   :  { %v1560_v16 = vpop.xlane.xlu0 %1559 }
 0x3dc   :  { %v12663_v57 = vpop.eup %12662 }
 0x3dd   :  { %v1551_v22 = vpop.xlane.xlu1 %1550  ;;  %v1594_v63 = vmul.f32 %v12663_v57, %v13255_v11 }
 0x3de   :  { %12664 = vrcp.f32 %v1551_v22 }
 0x3df   :  { %11992 = vmatmul.mubr.msk.f32.vlgmr.msra.gmra.mrb[18].mxu0 %vm232_vm2, %v1594_v63 }
 0x3e0   :  { %12000 = vmatpush3.msra.mxu0 %v13240_v54  ;;  %12001 = vmatprep.mubr.msk.f32.mxu0 %vm12831_vm1, %v12830_v26 }
 0x3e1   :  { %v1566_v49 = vpop.xlane.xlu0 %1565  ;;  %12009 = vmatprep.subr.mxu0 %v12830_v26 }
 0x3e5   :  { %v1554_v56 = vpop.xlane.xlu0 %1553 }
 0x3e6   :  { %12666 = vrcp.f32 %v1554_v56 }
 0x3e7   :  { %12668 = vrcp.f32 %v1560_v16 }
 0x3e8   :  { %v12665_v29 = vpop.eup %12664  ;;  %12670 = vrcp.f32 %v1566_v49 }
 0x3e9   :  { %v1596_v59 = vmul.f32 %v12665_v29, %v13265_v28 }
 0x3eb   :  { %11997 = vmatmul.mubr.msk.f32.vlgmr.msra.gmra.mrb[20].mxu1 %vm232_vm2, %v1596_v59 }
 0x3ec   :  { %12005 = vmatpush3.msra.mxu1 %v13242_v55  ;;  %12006 = vmatprep.mubr.msk.f32.mxu1 %vm12831_vm1, %v12830_v26 }
 0x3ed   :  { %12014 = vmatprep.subr.mxu1 %v12830_v26 }
 0x3f0   :  { %v12667_v54 = vpop.eup %12666 }
 0x3f1   :  { %v1598_v11 = vmul.f32 %v12667_v54, %v13273_v4  ;;  %v12669_v3 = vpop.eup %12668 }
 0x3f2   :  { %v1602_v55 = vmul.f32 %v12669_v3, %v13261_v25  ;;  %v12671_v28 = vpop.eup %12670 }
 0x3f3   :  { %12002 = vmatmul.mubr.msk.f32.vlgmr.msra.gmra.mrb[20].mxu0 %vm232_vm2, %v1598_v11  ;;  %v1606_v4 = vmul.f32 %v12671_v28, %v13269_v10 }
 0x3f4   :  { %12010 = vmatpush3.msra.mxu0 %v13248_v58  ;;  %12011 = vmatprep.mubr.msk.f32.mxu0 %vm12831_vm1, %v12830_v26 }
 0x3f5   :  { %12019 = vmatprep.subr.mxu0 %v12830_v26 }
 0x3f7   :  { %12012 = vmatmul.mubr.msk.f32.vlgmr.msra.gmra.mrb[22].mxu0 %vm232_vm2, %v1602_v55  ;;  %v12352_v55 = vld [vmem:[%s15447_s4] sm:$0xff]  }
 0x3f8   :  { %12020 = vmatpush3.msra.mxu0 %v13235_v50  ;;  %12021 = vmatprep.mubr.msk.f32.mxu0 %vm12831_vm1, %v12830_v26 }
 0x3f9   :  { %12029 = vmatprep.subr.mxu0 %v12830_v26 }
 0x3fb   :  { %12022 = vmatmul.mubr.msk.f32.vlgmr.msra.gmra.mrb[24].mxu0 %vm232_vm2, %v1606_v4  ;;  %v12353_v4 = vld [vmem:[%s15447_s4 + $0x8] sm:$0xff]  }
 0x3fc   :  { %12030 = vmatpush3.msra.mxu0 %v13277_v36  ;;  %12031 = vmatprep.mubr.msk.f32.mxu0 %vm12831_vm1, %v12830_v26 }
 0x3fd   :  { %12039 = vmatprep.subr.mxu0 %v12830_v26 }
 0x406   :  { %v1557_v58 = vpop.xlane.xlu1 %1556 }
 0x407   :  { %12672 = vrcp.f32 %v1557_v58 }
 0x40a   :  { %v1563_v25 = vpop.xlane.xlu1 %1562 }
 0x40b   :  { %12674 = vrcp.f32 %v1563_v25 }
 0x40e   :  { %v1569_v50 = vpop.xlane.xlu1 %1568 }
 0x40f   :  { %12676 = vrcp.f32 %v1569_v50  ;;  %v12354_v50 = vld [vmem:[%s15447_s4 + $0x10] sm:$0xff]  }
 0x411   :  { %v12673_v6 = vpop.eup %12672 }
 0x412   :  { %v1575_v7 = vpop.xlane.xlu1 %1574  ;;  %v1600_v33 = vmul.f32 %v12673_v6, %v13283_v51 }
 0x413   :  { %12678 = vrcp.f32 %v1575_v7 }
 0x414   :  { %12007 = vmatmul.mubr.msk.f32.vlgmr.msra.gmra.mrb[22].mxu1 %vm232_vm2, %v1600_v33 }
 0x415   :  { %v12675_v10 = vpop.eup %12674  ;;  %12015 = vmatpush3.msra.mxu1 %v13250_v60  ;;  %12016 = vmatprep.mubr.msk.f32.mxu1 %vm12831_vm1, %v12830_v26 }
 0x416   :  { %v1581_v36 = vpop.xlane.xlu1 %1580  ;;  %12024 = vmatprep.subr.mxu1 %v12830_v26  ;;  %v1604_v12 = vmul.f32 %v12675_v10, %v13290_v61 }
 0x417   :  { %12680 = vrcp.f32 %v1581_v36  ;;  %v12355_v36 = vld [vmem:[%s15447_s4 + $0x18] sm:$0xff]  }
 0x418   :  { %12017 = vmatmul.mubr.msk.f32.vlgmr.msra.gmra.mrb[24].mxu1 %vm232_vm2, %v1604_v12 }
 0x419   :  { %v12677_v15 = vpop.eup %12676  ;;  %12025 = vmatpush3.msra.mxu1 %v12970_v24  ;;  %12026 = vmatprep.mubr.msk.f32.mxu1 %vm12831_vm1, %v12830_v26 }
 0x41a   :  { %12034 = vmatprep.subr.mxu1 %v12830_v26  ;;  %v1608_v60 = vmul.f32 %v12677_v15, %v13295_v0  ;;  %v1572_v51 = vpop.xlane.xlu0 %1571 }
 0x41b   :  { %12682 = vrcp.f32 %v1572_v51 }
 0x41c   :  { %12027 = vmatmul.mubr.msk.f32.vlgmr.msra.gmra.mrb[26].mxu1 %vm232_vm2, %v1608_v60 }
 0x41d   :  { %v12679_v19 = vpop.eup %12678  ;;  %12035 = vmatpush3.msra.mxu1 %v13285_v53  ;;  %12036 = vmatprep.mubr.msk.f32.mxu1 %vm12831_vm1, %v12830_v26 }
 0x41e   :  { %12044 = vmatprep.subr.mxu1 %v12830_v26  ;;  %v1612_v24 = vmul.f32 %v12679_v19, %v13300_v8  ;;  %v1578_v61 = vpop.xlane.xlu0 %1577 }
 0x41f   :  { %12684 = vrcp.f32 %v1578_v61 }
 0x420   :  { %12037 = vmatmul.mubr.msk.f32.vlgmr.msra.gmra.mrb[28].mxu1 %vm232_vm2, %v1612_v24 }
 0x421   :  { %v12681_v18 = vpop.eup %12680  ;;  %12045 = vmatpush3.msra.mxu1 %v13345_v52  ;;  %12046 = vmatprep.mubr.msk.f32.mxu1 %vm12831_vm1, %v12830_v26 }
 0x422   :  { %v1616_v0 = vmul.f32 %v12681_v18, %v13305_v20  ;;  %12054 = vmatprep.subr.mxu1 %v12830_v26  ;;  %v1584_v53 = vpop.xlane.xlu0 %1583 }
 0x423   :  { %12686 = vrcp.f32 %v1584_v53 }
 0x424   :  { %12047 = vmatmul.mubr.msk.f32.vlgmr.msra.gmra.mrb[30].mxu1 %vm232_vm2, %v1616_v0 }
 0x425   :  { %12056 = vmatprep.mubr.msk.f32.mxu1 %vm12831_vm1, %v12830_v26  ;;  %v12683_v8 = vpop.eup %12682 }
 0x426   :  { %v1590_v62 = vpop.xlane.xlu0 %1589  ;;  %v1610_v21 = vmul.f32 %v12683_v8, %v13311_v32  ;;  %v228_v32 = vpop.permute.xlu1 %227 }
 0x427   :  { %12688 = vrcp.f32 %v1590_v62 }
 0x428   :  { %12032 = vmatmul.mubr.msk.f32.vlgmr.msra.gmra.mrb[26].mxu0 %vm232_vm2, %v1610_v21 }
 0x429   :  { %v12685_v5 = vpop.eup %12684  ;;  %12040 = vmatpush3.msra.mxu0 %v13333_v44  ;;  %12041 = vmatprep.mubr.msk.f32.mxu0 %vm12831_vm1, %v12830_v26 }
 0x42a   :  { %v1587_v20 = vpop.xlane.xlu0 %1586  ;;  %12049 = vmatprep.subr.mxu0 %v12830_v26  ;;  %v1614_v23 = vmul.f32 %v12685_v5, %v13315_v38 }
 0x42b   :  { %12690 = vrcp.f32 %v1587_v20 }
 0x42c   :  { %12042 = vmatmul.mubr.msk.f32.vlgmr.msra.gmra.mrb[28].mxu0 %vm232_vm2, %v1614_v23 }
 0x42d   :  { %v12687_v27 = vpop.eup %12686  ;;  %12050 = vmatpush3.msra.mxu0 %v13335_v45  ;;  %12051 = vmatprep.mubr.msk.f32.mxu0 %vm12831_vm1, %v12830_v26 }
 0x42e   :  { %v225_v1 = vpop.permute.xlu0 %224  ;;  %12059 = vmatprep.subr.mxu0 %v12830_v26  ;;  %v1618_v31 = vmul.f32 %v12687_v27, %v13319_v39 }
 0x42f   :  { %12055 = vmatpush3.msra.mxu1 %v225_v1 }
 0x430   :  { %12052 = vmatmul.mubr.msk.f32.vlgmr.msra.gmra.mrb[30].mxu0 %vm232_vm2, %v1618_v31  ;;  %12064 = vmatprep.subr.bf16.mxu1 %v12830_v26 }
 0x431   :  { %v12689_v35 = vpop.eup %12688  ;;  %12060 = vmatpush3.msra.mxu0 %v228_v32  ;;  %12061 = vmatprep.mubr.msk.f32.mxu0 %vm12831_vm1, %v12830_v26 }
 0x432   :  { %v1622_v30 = vmul.f32 %v12689_v35, %v13323_v40 }
 0x434   :  { %12062 = vmatmul.mubr.msk.f32.vlgmr.msra.gmra.mrb[32].mxu0 %vm232_vm2, %v1622_v30 }
 0x435   :  { %v12691_v38 = vpop.eup %12690  ;;  %3497 = vmatprep.mubr.bf16.mxu0 %v12822_v2 }
 0x436   :  { %v1620_v37 = vmul.f32 %v12691_v38, %v13327_v42 }
 0x438   :  { %12057 = vmatmul.mubr.msk.f32.vlgmr.msra.gmra.mrb[32].mxu1 %vm232_vm2, %v1620_v37 }
 0x439   :  { %12072 = vmatprep.mubr.msk.bf16.mxu1 %vm12831_vm1, %v12830_v26  ;;  %12065 = vmatpush3.bf16.msra.mxu1 %v12352_v55 }
 0x43a   :  { %12066 = vmatprep.subr.bf16.mxu1 %v12830_v26 }
 0x43d   :  { %12067 = vmatpush3.bf16.msra.mxu1 %v12353_v4 }
 0x43e   :  { %12068 = vmatprep.subr.bf16.mxu1 %v12830_v26 }
 0x441   :  { %12069 = vmatpush3.bf16.msra.mxu1 %v12354_v50 }
 0x442   :  { %12070 = vmatprep.subr.bf16.mxu1 %v12830_v26 }
 0x445   :  { %12071 = vmatpush3.bf16.msra.mxu1 %v12355_v36 }
 0x496   :  { %v13429_v39 = vpop.f32.mrb[18].mxu1 }
 0x497   :  { %v11988_v34 = vpop.f32.mrb[19].mxu1 }
 0x4b2   :  { %v1765_v41 = vpop.f32.mrb[18].mxu0 }
 0x4b3   :  { %v11993_v43 = vpop.f32.mrb[19].mxu0 }
 0x4be   :  { %v1838_v44 = vpop.f32.mrb[20].mxu1 }
 0x4bf   :  { %v11998_v45 = vpop.f32.mrb[21].mxu1 }
 0x4c6   :  { %v1911_v40 = vpop.f32.mrb[20].mxu0 }
 0x4c7   :  { %v12003_v46 = vpop.f32.mrb[21].mxu0 }
 0x4ca   :  { %v2057_v47 = vpop.f32.mrb[22].mxu0 }
 0x4cb   :  { %v12013_v48 = vpop.f32.mrb[23].mxu0 }
 0x4ce   :  { %v2203_v52 = vpop.f32.mrb[24].mxu0 }
 0x4cf   :  { %v12023_v9 = vpop.f32.mrb[25].mxu0 }
 0x4e7   :  { %v1984_v57 = vpop.f32.mrb[22].mxu1 }
 0x4e8   :  { %v12008_v42 = vpop.f32.mrb[23].mxu1 }
 0x4eb   :  { %v2130_v16 = vpop.f32.mrb[24].mxu1 }
 0x4ec   :  { %v12018_v22 = vpop.f32.mrb[25].mxu1 }
 0x4ef   :  { %v2276_v63 = vpop.f32.mrb[26].mxu1 }
 0x4f0   :  { %v12028_v49 = vpop.f32.mrb[27].mxu1 }
 0x4f3   :  { %v2422_v56 = vpop.f32.mrb[28].mxu1 }
 0x4f4   :  { %v12275_v29 = vpack.i.bf16 %v2422_v56, %v1838_v44  ;;  %v12038_v59 = vpop.f32.mrb[29].mxu1 }
 0x4f5   :  { %v10597_v59 = vld [vmem:[%s15448_s5] ss:$0 sm:$0xff] }
 0x4f6   :  { %12276 = vrot.lane.b32.xlu1 %v12275_v29, %s15461_s21 }
 0x4f7   :  { %v2568_v54 = vpop.f32.mrb[30].mxu1 }
 0x4f8   :  { %v12285_v11 = vpack.i.bf16 %v2568_v54, %v1984_v57  ;;  %v12048_v3 = vpop.f32.mrb[31].mxu1 }
 0x4fa   :  { %12286 = vrot.lane.b32.xlu1 %v12285_v11, %s15459_s24 }
 0x4fb   :  { %v2349_v28 = vpop.f32.mrb[26].mxu0 }
 0x4fc   :  { %v12270_v58 = vpack.i.bf16 %v2349_v28, %v1765_v41  ;;  %v12033_v25 = vpop.f32.mrb[27].mxu0 }
 0x4fe   :  { %12271 = vrot.lane.b32.xlu0 %v12270_v58, %s15464_s29  ;;  %v12772_v58 = vld [vmem:[%s15443_s0] sm:$0xff]  ;;  %s15472_s29 = smov 56  }
 0x4ff   :  { %v2495_v6 = vpop.f32.mrb[28].mxu0 }
 0x500   :  { %v12280_v7 = vpack.i.bf16 %v2495_v6, %v1911_v40  ;;  %v12043_v33 = vpop.f32.mrb[29].mxu0  ;;  %v12773_v6 = vld [vmem:[%s15443_s0 + $0x8] sm:$0xff] }
 0x502   :  { %12281 = vrot.lane.b32.xlu0 %v12280_v7, %s15463_s22 }
 0x503   :  { %v2641_v10 = vpop.f32.mrb[30].mxu0 }
 0x504   :  { %v12290_v12 = vpack.i.bf16 %v2641_v10, %v2057_v47  ;;  %v12053_v15 = vpop.f32.mrb[31].mxu0 }
 0x506   :  { %12291 = vrot.lane.b32.xlu0 %v12290_v12, %s15460_s26 }
 0x507   :  { %v2787_v60 = vpop.f32.mrb[32].mxu0 }
 0x508   :  { %v12300_v51 = vpack.i.bf16 %v2787_v60, %v2203_v52  ;;  %v12063_v19 = vpop.f32.mrb[33].mxu0 }
 0x50a   :  { %12301 = vrot.lane.b32.xlu0 %v12300_v51, %s15457_s27 }
 0x50b   :  { %v2714_v24 = vpop.f32.mrb[32].mxu1 }
 0x50c   :  { %v12295_v61 = vpack.i.bf16 %v2714_v24, %v2130_v16  ;;  %v12058_v18 = vpop.f32.mrb[33].mxu1 }
 0x50e   :  { %12296 = vrot.lane.b32.xlu1 %v12295_v61, %s15458_s28 }
 0x568   :  { %v12277_v8 = vpop.permute.xlu1 %12276 }
 0x569   :  { %v12279_v31 = vunpack.i.h.bf16 %v12277_v8  ;;  %v12278_v32 = vunpack.i.l.bf16 %v12277_v8  ;;  %v2995_v8 = vld [vmem:[%s15451_s8 + $0x8] sm:$0xff] }
 0x56c   :  { %v12287_v35 = vpop.permute.xlu1 %12286 }
 0x56d   :  { %v12289_v44 = vunpack.i.h.bf16 %v12287_v35  ;;  %v12288_v45 = vunpack.i.l.bf16 %v12287_v35  ;;  %v3019_v35 = vld [vmem:[%s15451_s8 + $0xc8] sm:$0xff] }
 0x570   :  { %v12272_v0 = vpop.permute.xlu0 %12271 }
 0x571   :  { %v12274_v62 = vunpack.i.h.bf16 %v12272_v0  ;;  %v12273_v21 = vunpack.i.l.bf16 %v12272_v0  ;;  %v2994_v0 = vld [vmem:[%s15451_s8] sm:$0xff] }
 0x573   :  { %v2860_v20 = vsel %vm232_vm2, %v2276_v63, %v12274_v62  ;;  %v2819_v23 = vsel %vm232_vm2, %v13429_v39, %v12273_v21  ;;  %v3003_v21 = vld [vmem:[%s15451_s8 + $0x48] sm:$0xff] }
 0x574   :  { %v12282_v53 = vpop.permute.xlu0 %12281  ;;  %v2821_v30 = vsel %vm2820_vm3, %v2819_v23, %v12278_v32  ;;  %v2861_v38 = vsel %vm2820_vm3, %v2860_v20, %v12279_v31  ;;  %v10605_v20 = vcombine.low %v2995_v8, %v3003_v21  ;;  %v10606_v23 = vcombine.high %v2995_v8, %v3003_v21  ;;  %v3011_v31 = vld [vmem:[%s15451_s8 + $0x88] sm:$0xff] }
 0x575   :  { %v12284_v27 = vunpack.i.h.bf16 %v12282_v53  ;;  %v12283_v1 = vunpack.i.l.bf16 %v12282_v53  ;;  %v3002_v53 = vld [vmem:[%s15451_s8 + $0x40] sm:$0xff] }
 0x576   :  { %v10604_v62 = vcombine.high %v2994_v0, %v3002_v53  ;;  %3508 = vmatprep.subr.bf16.mxu1 %v10606_v23  ;;  %v3029_v23 = vld [vmem:[%s15451_s8 + $0x118] sm:$0xff] }
 0x577   :  { %v2823_v37 = vsel %vm2822_vm4, %v2821_v30, %v12283_v1  ;;  %v2862_v34 = vsel %vm2822_vm4, %v2861_v38, %v12284_v27  ;;  %v3010_v27 = vld [vmem:[%s15451_s8 + $0x80] sm:$0xff]  ;;  %v10621_v38 = vcombine.low %v3011_v31, %v3019_v35 }
 0x578   :  { %v12292_v5 = vpop.permute.xlu0 %12291  ;;  %v2825_v46 = vsel %vm2824_vm5, %v2823_v37, %v12288_v45  ;;  %v2863_v47 = vsel %vm2824_vm5, %v2862_v34, %v12289_v44  ;;  %3465 = vmatprep.subr.bf16.mxu0 %v10604_v62  ;;  %v3018_v1 = vld [vmem:[%s15451_s8 + $0xc0] sm:$0xff]  ;;  %v10622_v37 = vcombine.high %v3011_v31, %v3019_v35  ;;  %v3035_v45 = vld [vmem:[%s15451_s8 + $0x148] sm:$0xff] }
 0x579   :  { %v12294_v41 = vunpack.i.h.bf16 %v12292_v5  ;;  %v12293_v43 = vunpack.i.l.bf16 %v12292_v5  ;;  %v10603_v5 = vcombine.low %v2994_v0, %v3002_v53  ;;  %v10620_v32 = vcombine.high %v3010_v27, %v3018_v1  ;;  %v3026_v34 = vld [vmem:[%s15451_s8 + $0x100] sm:$0xff]  ;;  %v3013_v0 = vld [vmem:[%s15451_s8 + $0x98] sm:$0xff] }
 0x57a   :  { %v10619_v30 = vcombine.low %v3010_v27, %v3018_v1  ;;  %v3037_v27 = vld [vmem:[%s15451_s8 + $0x158] sm:$0xff] }
 0x57b   :  { %v2827_v9 = vsel %vm2826_vm6, %v2825_v46, %v12293_v43  ;;  %v2864_v57 = vsel %vm2826_vm6, %v2863_v47, %v12294_v41  ;;  %3466 = vmatpush1.bf16.msra.mxu0 %v10603_v5  ;;  %v3034_v41 = vld [vmem:[%s15451_s8 + $0x140] sm:$0xff]  ;;  %v3027_v43 = vld [vmem:[%s15451_s8 + $0x108] sm:$0xff]  ;;  %v3028_v5 = vld [vmem:[%s15451_s8 + $0x110] sm:$0xff]  ;;  %v10642_v35 = vcombine.high %v3029_v23, %v3037_v27 }
 0x57c   :  { %v12302_v39 = vpop.permute.xlu0 %12301  ;;  %3467 = vmatprep.subr.bf16.mxu0 %v10620_v32  ;;  %v10636_v44 = vcombine.high %v3026_v34, %v3034_v41  ;;  %v10638_v46 = vcombine.high %v3027_v43, %v3035_v45  ;;  %v3042_v47 = vld [vmem:[%s15451_s8 + $0x180] sm:$0xff] }
 0x57d   :  { %v12304_v42 = vunpack.i.h.bf16 %v12302_v39  ;;  %v12303_v16 = vunpack.i.l.bf16 %v12302_v39  ;;  %v10635_v39 = vcombine.low %v3026_v34, %v3034_v41  ;;  %v3053_v34 = vld [vmem:[%s15451_s8 + $0x1d8] sm:$0xff] }
 0x57f   :  { %3468 = vmatpush1.bf16.msra.mxu0 %v10619_v30  ;;  %v3044_v30 = vld [vmem:[%s15451_s8 + $0x190] sm:$0xff] }
 0x580   :  { %v12297_v40 = vpop.permute.xlu1 %12296  ;;  %3469 = vmatprep.subr.bf16.mxu0 %v10636_v44 }
 0x581   :  { %v12299_v48 = vunpack.i.h.bf16 %v12297_v40  ;;  %v12298_v52 = vunpack.i.l.bf16 %v12297_v40  ;;  %v10637_v40 = vcombine.low %v3027_v43, %v3035_v45  ;;  %v10641_v43 = vcombine.low %v3029_v23, %v3037_v27  ;;  %v3017_v23 = vld [vmem:[%s15451_s8 + $0xb8] sm:$0xff] }
 0x582   :  { %v3025_v27 = vld [vmem:[%s15451_s8 + $0xf8] sm:$0xff] }
 0x583   :  { %v2829_v22 = vsel %vm2828_vm7, %v2827_v9, %v12298_v52  ;;  %v2865_v63 = vsel %vm2828_vm7, %v2864_v57, %v12299_v48  ;;  %3470 = vmatpush1.bf16.msra.mxu0 %v10635_v39  ;;  %v3050_v48 = vld [vmem:[%s15451_s8 + $0x1c0] sm:$0xff]  ;;  %v3043_v52 = vld [vmem:[%s15451_s8 + $0x188] sm:$0xff] }
 0x584   :  { %v2831_v49 = vsel %vm2830_vm8, %v2829_v22, %v12303_v16  ;;  %v2866_v56 = vsel %vm2830_vm8, %v2865_v63, %v12304_v42  ;;  %v10652_v9 = vcombine.high %v3042_v47, %v3050_v48  ;;  %v3051_v57 = vld [vmem:[%s15451_s8 + $0x1c8] sm:$0xff]  ;;  %v10651_v42 = vcombine.low %v3042_v47, %v3050_v48  ;;  %v2996_v63 = vld [vmem:[%s15451_s8 + $0x10] sm:$0xff]  ;;  %v2998_v39 = vld [vmem:[%s15451_s8 + $0x20] sm:$0xff] }
 0x585   :  { %v2867_v29 = vpack.c.bf16 %v2866_v56, %v2831_v49  ;;  %v10653_v16 = vcombine.low %v3043_v52, %v3051_v57  ;;  %v10654_v22 = vcombine.high %v3043_v52, %v3051_v57  ;;  %v3004_v49 = vld [vmem:[%s15451_s8 + $0x50] sm:$0xff]  ;;  %v2997_v56 = vld [vmem:[%s15451_s8 + $0x18] sm:$0xff]  ;;  %v3007_v47 = vld [vmem:[%s15451_s8 + $0x68] sm:$0xff] }
 0x586   :  { %3471 = vmatprep.subr.bf16.mxu0 %v10652_v9 }
 0x587   :  { %12073 = vmatmul.mubr.msk.bf16.vlgmr.msra.gmra.mrb[36].mxu1 %vm109_vm0, %v2867_v29  ;;  %3472 = vmatpush1.bf16.msra.mxu0 %v10651_v42  ;;  %v10607_v29 = vcombine.low %v2996_v63, %v3004_v49  ;;  %v3014_v42 = vld [vmem:[%s15451_s8 + $0xa0] sm:$0xff] }
 0x588   :  { %3540 = vmatprep.mubr.bf16.mxu1 %v12822_v2  ;;  %3509 = vmatpush1.bf16.msra.mxu1 %v10605_v20  ;;  %v3036_v20 = vld [vmem:[%s15451_s8 + $0x150] sm:$0xff] }
 0x589   :  { %3510 = vmatprep.subr.bf16.mxu1 %v10622_v37  ;;  %v10640_v32 = vcombine.high %v3028_v5, %v3036_v20  ;;  %v3045_v37 = vld [vmem:[%s15451_s8 + $0x198] sm:$0xff]  ;;  %v10639_v41 = vcombine.low %v3028_v5, %v3036_v20  ;;  %v3016_v5 = vld [vmem:[%s15451_s8 + $0xb0] sm:$0xff] }
 0x58a   :  { %v10658_v45 = vcombine.high %v3045_v37, %v3053_v34  ;;  %v10657_v52 = vcombine.low %v3045_v37, %v3053_v34  ;;  %v3024_v20 = vld [vmem:[%s15451_s8 + $0xf0] sm:$0xff]  ;;  %v3033_v37 = vld [vmem:[%s15451_s8 + $0x138] sm:$0xff] }
 0x58b   :  { %v3041_v34 = vld [vmem:[%s15451_s8 + $0x178] sm:$0xff] }
 0x58c   :  { %3511 = vmatpush1.bf16.msra.mxu1 %v10621_v38  ;;  %v3052_v38 = vld [vmem:[%s15451_s8 + $0x1d0] sm:$0xff] }
 0x58d   :  { %3512 = vmatprep.subr.bf16.mxu1 %v10638_v46  ;;  %v10656_v44 = vcombine.high %v3044_v30, %v3052_v38  ;;  %v2999_v46 = vld [vmem:[%s15451_s8 + $0x28] sm:$0xff]  ;;  %v10655_v48 = vcombine.low %v3044_v30, %v3052_v38  ;;  %v3032_v30 = vld [vmem:[%s15451_s8 + $0x130] sm:$0xff] }
 0x58e   :  { %v10614_v57 = vcombine.high %v2999_v46, %v3007_v47  ;;  %v3040_v38 = vld [vmem:[%s15451_s8 + $0x170] sm:$0xff] }
 0x590   :  { %3513 = vmatpush1.bf16.msra.mxu1 %v10637_v40  ;;  %v3006_v40 = vld [vmem:[%s15451_s8 + $0x60] sm:$0xff] }
 0x591   :  { %3514 = vmatprep.subr.bf16.mxu1 %v10654_v22  ;;  %v10612_v9 = vcombine.high %v2998_v39, %v3006_v40  ;;  %v3015_v22 = vld [vmem:[%s15451_s8 + $0xa8] sm:$0xff] }
 0x594   :  { %3515 = vmatpush1.bf16.msra.mxu1 %v10653_v16  ;;  %v3022_v16 = vld [vmem:[%s15451_s8 + $0xe0] sm:$0xff] }
 0x65a   :  { %v2944_v54 = vpop.f32.mrb[36].mxu1 }
 0x65b   :  { %v2945_v11 = vadd.f32 %v10597_v59, %v2944_v54  ;;  %v12074_v3 = vpop.f32.mrb[37].mxu1  ;;  %v3005_v54 = vld [vmem:[%s15451_s8 + $0x58] sm:$0xff] }
 0x65c   :  { %v2947_v55 = vpop.f32.mrb[38].mxu1  ;;  %v10610_v3 = vcombine.high %v2997_v56, %v3005_v54 }
 0x65d   :  { %v2948_v28 = vadd.f32 %v10597_v59, %v2947_v55  ;;  %v12075_v4 = vpop.f32.mrb[39].mxu1  ;;  %v2952_v25 = vadd.f32 %v12772_v58, %v2945_v11  ;;  %v10608_v59 = vcombine.high %v2996_v63, %v3004_v49  ;;  %v10609_v11 = vcombine.low %v2997_v56, %v3005_v54  ;;  %v3023_v63 = vld [vmem:[%s15451_s8 + $0xe8] sm:$0xff]  ;;  %v3030_v54 = vld [vmem:[%s15451_s8 + $0x120] sm:$0xff] }
 0x65e   :  { %3594 = vmatprep.subr.bf16.mxu1 %v10610_v3  ;;  %v10611_v49 = vcombine.low %v2998_v39, %v3006_v40  ;;  %v10613_v56 = vcombine.low %v2999_v46, %v3007_v47  ;;  %v3031_v3 = vld [vmem:[%s15451_s8 + $0x128] sm:$0xff]  ;;  %v3048_v39 = vld [vmem:[%s15451_s8 + $0x1b0] sm:$0xff]  ;;  %v3049_v46 = vld [vmem:[%s15451_s8 + $0x1b8] sm:$0xff] }
 0x65f   :  { %v2954_v50 = vsel %vm109_vm0, %v2952_v25, 0.0  ;;  %v2953_v7 = vadd.f32 %v12773_v6, %v2948_v28  ;;  %3551 = vmatprep.subr.bf16.mxu0 %v10608_v59  ;;  %v2951_v6 = vld [vmem:[%s15449_s6] sm:$0x3]  ;;  %v10630_v59 = vcombine.high %v3015_v22, %v3023_v63  ;;  %v3056_v40 = vld [vmem:[%s15451_s8 + $0x1f0] sm:$0xff]  ;;  %v3057_v47 = vld [vmem:[%s15451_s8 + $0x1f8] sm:$0xff] }
 0x660   :  { %2955 = vadd.xlane.f32.xlu1 %v2954_v50 }
 0x661   :  { %v2957_v33 = vsel %vm109_vm0, %v2953_v7, 0.0 }
 0x662   :  { %2958 = vadd.xlane.f32.xlu0 %v2957_v33 }
 0x6ed   :  { %v2956_v10 = vpop.xlane.xlu1 %2955 }
 0x6ee   :  { %v2961_v36 = vmul.f32 0.015625, %v2956_v10 }
 0x6ef   :  { %v2959_v12 = vpop.xlane.xlu0 %2958 }
 0x6f0   :  { %v13481_v15 = vsub.f32 %v2952_v25, %v2961_v36  ;;  %v2962_v60 = vmul.f32 0.015625, %v2959_v12  ;;  %v2990_v12 = vrot.slane %v2951_v6, %v12956_v17 }
 0x6f2   :  { %v13483_v51 = vsub.f32 %v2953_v7, %v2962_v60  ;;  %v2965_v19 = vmul.f32 %v13481_v15, %v13481_v15  ;;  %v2984_v7 = vrot.slane %v2951_v6, %v12949_v14  ;;  %v3054_v6 = vld [vmem:[%s15451_s8 + $0x1e0] sm:$0xff] }
 0x6f4   :  { %v2967_v24 = vsel %vm109_vm0, %v2965_v19, 0.0  ;;  %v2966_v61 = vmul.f32 %v13483_v51, %v13483_v51 }
 0x6f5   :  { %2968 = vadd.xlane.f32.xlu0 %v2967_v24 }
 0x6f6   :  { %v2970_v18 = vsel %vm109_vm0, %v2966_v61, 0.0  ;;  %v3012_v61 = vld [vmem:[%s15451_s8 + $0x90] sm:$0xff] }
 0x6f7   :  { %2971 = vadd.xlane.f32.xlu1 %v2970_v18  ;;  %v3020_v18 = vld [vmem:[%s15451_s8 + $0xd0] sm:$0xff] }
 0x6f8   :  { %v10624_v62 = vcombine.high %v3012_v61, %v3020_v18  ;;  %v10623_v1 = vcombine.low %v3012_v61, %v3020_v18  ;;  %v3001_v61 = vld [vmem:[%s15451_s8 + $0x38] sm:$0xff] }
 0x6f9   :  { %v3009_v18 = vld [vmem:[%s15451_s8 + $0x78] sm:$0xff] }
 0x782   :  { %v2969_v55 = vpop.xlane.xlu0 %2968 }
 0x783   :  { %v2973_v28 = vmul.f32 0.015625, %v2969_v55  ;;  %v3039_v55 = vld [vmem:[%s15451_s8 + $0x168] sm:$0xff] }
 0x784   :  { %v2972_v4 = vpop.xlane.xlu1 %2971 }
 0x785   :  { %v2975_v58 = vadd.f32 1e-05, %v2973_v28  ;;  %v2974_v25 = vmul.f32 0.015625, %v2972_v4  ;;  %v10627_v28 = vcombine.low %v3014_v42, %v3022_v16  ;;  %v10629_v4 = vcombine.low %v3015_v22, %v3023_v63  ;;  %v12356_v22 = vld [vmem:[%s15453_s10 + $0x40] sm:$0xff]  }
 0x786   :  { %v12357_v63 = vld [vmem:[%s15453_s10 + $0xc0] sm:$0xff]  }
 0x787   :  { %12692 = vrsqrt.f32 %v2975_v58  ;;  %v2976_v50 = vadd.f32 1e-05, %v2974_v25  ;;  %v10646_v25 = vcombine.high %v3031_v3, %v3039_v55 }
 0x789   :  { %12694 = vrsqrt.f32 %v2976_v50  ;;  %v3046_v50 = vld [vmem:[%s15451_s8 + $0x1a0] sm:$0xff] }
 0x791   :  { %v12693_v33 = vpop.eup %12692 }
 0x792   :  { %v2979_v10 = vmul.f32 %v12693_v33, %v13481_v15  ;;  %v3021_v15 = vld [vmem:[%s15451_s8 + $0xd8] sm:$0xff]  ;;  %v3055_v33 = vld [vmem:[%s15451_s8 + $0x1e8] sm:$0xff] }
 0x793   :  { %v12695_v36 = vpop.eup %12694  ;;  %v10626_v21 = vcombine.high %v3013_v0, %v3021_v15  ;;  %v10625_v31 = vcombine.low %v3013_v0, %v3021_v15  ;;  %v10659_v0 = vcombine.low %v3046_v50, %v3054_v6 }
 0x794   :  { %v2985_v60 = vmul.f32 %v2984_v7, %v2979_v10  ;;  %v2980_v19 = vmul.f32 %v12695_v36, %v13483_v51  ;;  %v10645_v36 = vcombine.low %v3031_v3, %v3039_v55  ;;  %v12364_v3 = vld [vmem:[%s15453_s10 + $0x50] sm:$0xff]  }
 0x795   :  { %v12366_v55 = vld [vmem:[%s15453_s10 + $0x10] sm:$0xff]  }
 0x796   :  { %v2986_v24 = vmul.f32 %v2984_v7, %v2980_v19  ;;  %v13570_v53 = vadd.f32 %v2990_v12, %v2985_v60  ;;  %v3047_v7 = vld [vmem:[%s15451_s8 + $0x1a8] sm:$0xff]  ;;  %v3000_v19 = vld [vmem:[%s15451_s8 + $0x30] sm:$0xff] }
 0x797   :  { %v10662_v60 = vcombine.high %v3047_v7, %v3055_v33  ;;  %v10661_v15 = vcombine.low %v3047_v7, %v3055_v33  ;;  %v12373_v7 = vld [vmem:[%s15453_s10 + $0xe0] sm:$0xff]  }
 0x798   :  { %v13572_v51 = vadd.f32 %v2990_v12, %v2986_v24  ;;  %v10660_v12 = vcombine.high %v3046_v50, %v3054_v6  ;;  %v3008_v24 = vld [vmem:[%s15451_s8 + $0x70] sm:$0xff]  ;;  %v12371_v50 = vld [vmem:[%s15453_s10 + $0x98] sm:$0xff]   ;;  %v12372_v6 = vld [vmem:[%s15453_s10 + $0x60] sm:$0xff]  }
 0x799   :  { %v12374_v33 = vld [vmem:[%s15453_s10 + $0x20] sm:$0xff]  }
 0x79a   :  { %v13576_v8 = vpack.c.bf16 %v13572_v51, %v13570_v53 }
 0x79c   :  { %10667 = vmatmul.mubr.msk.bf16.vlgmr.msra.gmra.mrb[36].mxu0 %vm109_vm0, %v13576_v8  ;;  %10668 = vmatmul.mubr.msk.bf16.vlgmr.msra.gmra.mrb[40].mxu1 %vm109_vm0, %v13576_v8 }
 0x79d   :  { %3552 = vmatpush1.bf16.msra.mxu0 %v10607_v29  ;;  %3595 = vmatpush1.bf16.msra.mxu1 %v10609_v11  ;;  %v10628_v29 = vcombine.high %v3014_v42, %v3022_v16  ;;  %v3038_v11 = vld [vmem:[%s15451_s8 + $0x160] sm:$0xff]  ;;  %v10663_v42 = vcombine.low %v3048_v39, %v3056_v40  ;;  %v10665_v16 = vcombine.low %v3049_v46, %v3057_v47 }
 0x79e   :  { %3553 = vmatprep.subr.bf16.mxu0 %v10624_v62  ;;  %3596 = vmatprep.subr.bf16.mxu1 %v10626_v21  ;;  %v10644_v58 = vcombine.high %v3030_v54, %v3038_v11  ;;  %v10643_v10 = vcombine.low %v3030_v54, %v3038_v11  ;;  %v10616_v62 = vcombine.high %v3000_v19, %v3008_v24  ;;  %v12362_v54 = vld [vmem:[%s15453_s10 + $0x8] sm:$0xff]  }
 0x79f   :  { %3583 = vmatprep.mubr.bf16.mxu0 %v12822_v2  ;;  %3626 = vmatprep.mubr.bf16.mxu1 %v12822_v2  ;;  %v10618_v21 = vcombine.high %v3001_v61, %v3009_v18  ;;  %v12363_v11 = vld [vmem:[%s15453_s10 + $0x88] sm:$0xff]  }
 0x7a1   :  { %3554 = vmatpush1.bf16.msra.mxu0 %v10623_v1  ;;  %3597 = vmatpush1.bf16.msra.mxu1 %v10625_v31  ;;  %v10615_v1 = vcombine.low %v3000_v19, %v3008_v24  ;;  %v10617_v31 = vcombine.low %v3001_v61, %v3009_v18  ;;  %v12379_v19 = vld [vmem:[%s15453_s10 + $0xa8] sm:$0xff]   ;;  %v12380_v24 = vld [vmem:[%s15453_s10 + $0x70] sm:$0xff]  }
 0x7a2   :  { %3555 = vmatprep.subr.bf16.mxu0 %v10640_v32  ;;  %3598 = vmatprep.subr.bf16.mxu1 %v10642_v35  ;;  %v10632_v32 = vcombine.high %v3016_v5, %v3024_v20  ;;  %v10634_v35 = vcombine.high %v3017_v23, %v3025_v27  ;;  %v12381_v61 = vld [vmem:[%s15453_s10 + $0xf0] sm:$0xff]  }
 0x7a3   :  { %v12382_v18 = vld [vmem:[%s15453_s10 + $0x30] sm:$0xff]  }
 0x7a5   :  { %3556 = vmatpush1.bf16.msra.mxu0 %v10639_v41  ;;  %3599 = vmatpush1.bf16.msra.mxu1 %v10641_v43  ;;  %v10631_v41 = vcombine.low %v3016_v5, %v3024_v20  ;;  %v10633_v43 = vcombine.low %v3017_v23, %v3025_v27  ;;  %v12387_v5 = vld [vmem:[%s15453_s10 + $0xb8] sm:$0xff]   ;;  %v12388_v20 = vld [vmem:[%s15453_s10 + $0x140] sm:$0xff]   ;;  %v13823_v27 = vsub.s32 2, %v12946_v13 }
 0x7a6   :  { %3557 = vmatprep.subr.bf16.mxu0 %v10656_v44  ;;  %3600 = vmatprep.subr.bf16.mxu1 %v10658_v45  ;;  %v10648_v44 = vcombine.high %v3032_v30, %v3040_v38  ;;  %v10650_v45 = vcombine.high %v3033_v37, %v3041_v34  ;;  %v12389_v23 = vld [vmem:[%s15453_s10 + $0x1c0] sm:$0xff]  }
 0x7a9   :  { %3558 = vmatpush1.bf16.msra.mxu0 %v10655_v48  ;;  %3601 = vmatpush1.bf16.msra.mxu1 %v10657_v52  ;;  %v10647_v48 = vcombine.low %v3032_v30, %v3040_v38  ;;  %v10649_v52 = vcombine.low %v3033_v37, %v3041_v34 }
 0x7aa   :  { %3637 = vmatprep.subr.bf16.mxu0 %v10612_v9  ;;  %3680 = vmatprep.subr.bf16.mxu1 %v10614_v57  ;;  %v10664_v9 = vcombine.high %v3048_v39, %v3056_v40  ;;  %v10666_v57 = vcombine.high %v3049_v46, %v3057_v47 }
 0x7ac   :  { %10669 = vmatmul.mubr.msk.bf16.vlgmr.msra.gmra.mrb[40].mxu0 %vm109_vm0, %v13576_v8  ;;  %10670 = vmatmul.mubr.msk.bf16.vlgmr.msra.gmra.mrb[44].mxu1 %vm109_vm0, %v13576_v8 }
 0x7ad   :  { %3638 = vmatpush1.bf16.msra.mxu0 %v10611_v49  ;;  %3681 = vmatpush1.bf16.msra.mxu1 %v10613_v56  ;;  %v12358_v49 = vld [vmem:[%s15453_s10] sm:$0xff]  }
 0x7ae   :  { %3639 = vmatprep.subr.bf16.mxu0 %v10628_v29  ;;  %3682 = vmatprep.subr.bf16.mxu1 %v10630_v59  ;;  %v12359_v56 = vld [vmem:[%s15453_s10 + $0x80] sm:$0xff]   ;;  %v12360_v29 = vld [vmem:[%s15453_s10 + $0x48] sm:$0xff]  }
 0x7af   :  { %3669 = vmatprep.mubr.bf16.mxu0 %v12822_v2  ;;  %3712 = vmatprep.mubr.bf16.mxu1 %v12822_v2  ;;  %v12361_v59 = vld [vmem:[%s15453_s10 + $0xc8] sm:$0xff]  }
 0x7b1   :  { %3640 = vmatpush1.bf16.msra.mxu0 %v10627_v28  ;;  %3683 = vmatpush1.bf16.msra.mxu1 %v10629_v4  ;;  %v12367_v28 = vld [vmem:[%s15453_s10 + $0x90] sm:$0xff]   ;;  %v12368_v4 = vld [vmem:[%s15453_s10 + $0x58] sm:$0xff]  }
 0x7b2   :  { %3641 = vmatprep.subr.bf16.mxu0 %v10644_v58  ;;  %3684 = vmatprep.subr.bf16.mxu1 %v10646_v25  ;;  %v12369_v58 = vld [vmem:[%s15453_s10 + $0xd8] sm:$0xff]  }
 0x7b3   :  { %v12370_v25 = vld [vmem:[%s15453_s10 + $0x18] sm:$0xff]  }
 0x7b5   :  { %3642 = vmatpush1.bf16.msra.mxu0 %v10643_v10  ;;  %3685 = vmatpush1.bf16.msra.mxu1 %v10645_v36  ;;  %v12375_v10 = vld [vmem:[%s15453_s10 + $0xa0] sm:$0xff]   ;;  %v12376_v36 = vld [vmem:[%s15453_s10 + $0x68] sm:$0xff]  }
 0x7b6   :  { %3643 = vmatprep.subr.bf16.mxu0 %v10660_v12  ;;  %3686 = vmatprep.subr.bf16.mxu1 %v10662_v60  ;;  %v12377_v12 = vld [vmem:[%s15453_s10 + $0xe8] sm:$0xff]  }
 0x7b7   :  { %v12378_v60 = vld [vmem:[%s15453_s10 + $0x28] sm:$0xff]  }
 0x7b9   :  { %3644 = vmatpush1.bf16.msra.mxu0 %v10659_v0  ;;  %3687 = vmatpush1.bf16.msra.mxu1 %v10661_v15  ;;  %v12383_v0 = vld [vmem:[%s15453_s10 + $0xb0] sm:$0xff]   ;;  %v12384_v15 = vld [vmem:[%s15453_s10 + $0x78] sm:$0xff]  }
 0x7ba   :  { %3723 = vmatprep.subr.bf16.mxu0 %v10616_v62  ;;  %3766 = vmatprep.subr.bf16.mxu1 %v10618_v21  ;;  %v12385_v62 = vld [vmem:[%s15453_s10 + $0xf8] sm:$0xff]  }
 0x7bb   :  { %v12386_v21 = vld [vmem:[%s15453_s10 + $0x38] sm:$0xff]  }
 0x7bc   :  { %10671 = vmatmul.mubr.msk.bf16.vlgmr.msra.gmra.mrb[44].mxu0 %vm109_vm0, %v13576_v8  ;;  %10672 = vmatmul.mubr.msk.bf16.vlgmr.msra.gmra.mrb[48].mxu1 %vm109_vm0, %v13576_v8 }
 0x7bd   :  { %3724 = vmatpush1.bf16.msra.mxu0 %v10615_v1  ;;  %3767 = vmatpush1.bf16.msra.mxu1 %v10617_v31  ;;  %v3058_v1 = vld [vmem:[%s15452_s9] sm:$0xff]  ;;  %v13829_v31 = vsub.s32 3, %v12946_v13 }
 0x7be   :  { %3725 = vmatprep.subr.bf16.mxu0 %v10632_v32  ;;  %3768 = vmatprep.subr.bf16.mxu1 %v10634_v35  ;;  %v3065_v32 = vrot.slane %v3058_v1, %v12949_v14  ;;  %v3073_v35 = vrot.slane %v3058_v1, %v13823_v27  ;;  %v3069_v30 = vrot.slane %v3058_v1, %v12956_v17 }
 0x7bf   :  { %3755 = vmatprep.mubr.bf16.mxu0 %v12822_v2  ;;  %3798 = vmatprep.mubr.bf16.mxu1 %v12822_v2  ;;  %v3077_v38 = vrot.slane %v3058_v1, %v13829_v31 }
 0x7c1   :  { %3726 = vmatpush1.bf16.msra.mxu0 %v10631_v41  ;;  %3769 = vmatpush1.bf16.msra.mxu1 %v10633_v43 }
 0x7c2   :  { %3727 = vmatprep.subr.bf16.mxu0 %v10648_v44  ;;  %3770 = vmatprep.subr.bf16.mxu1 %v10650_v45 }
 0x7c5   :  { %3728 = vmatpush1.bf16.msra.mxu0 %v10647_v48  ;;  %3771 = vmatpush1.bf16.msra.mxu1 %v10649_v52 }
 0x7c6   :  { %3729 = vmatprep.subr.bf16.mxu0 %v10664_v9  ;;  %3772 = vmatprep.subr.bf16.mxu1 %v10666_v57 }
 0x7c9   :  { %3730 = vmatpush1.bf16.msra.mxu0 %v10663_v42  ;;  %3773 = vmatpush1.bf16.msra.mxu1 %v10665_v16 }
 0x7ca   :  { %11483 = vmatprep.subr.bf16.mxu0 %v12356_v22  ;;  %11505 = vmatprep.subr.bf16.mxu1 %v12357_v63 }
 0x7cc   :  { %10673 = vmatmul.mubr.msk.bf16.vlgmr.msra.gmra.mrb[48].mxu0 %vm109_vm0, %v13576_v8  ;;  %10674 = vmatmul.mubr.msk.bf16.vlgmr.msra.gmra.mrb[52].mxu1 %vm109_vm0, %v13576_v8  ;;  %v12365_v8 = vld [vmem:[%s15453_s10 + $0xd0] sm:$0xff]  }
 0x7cd   :  { %11484 = vmatpush3.bf16.msra.mxu0 %v12358_v49  ;;  %11506 = vmatpush3.bf16.msra.mxu1 %v12359_v56 }
 0x7ce   :  { %11485 = vmatprep.subr.bf16.mxu0 %v12360_v29  ;;  %11507 = vmatprep.subr.bf16.mxu1 %v12361_v59 }
 0x7d1   :  { %11486 = vmatpush3.bf16.msra.mxu0 %v12362_v54  ;;  %11508 = vmatpush3.bf16.msra.mxu1 %v12363_v11 }
 0x7d2   :  { %11487 = vmatprep.subr.bf16.mxu0 %v12364_v3  ;;  %11509 = vmatprep.subr.bf16.mxu1 %v12365_v8 }
 0x7d5   :  { %11488 = vmatpush3.bf16.msra.mxu0 %v12366_v55  ;;  %11510 = vmatpush3.bf16.msra.mxu1 %v12367_v28 }
 0x7d6   :  { %11489 = vmatprep.subr.bf16.mxu0 %v12368_v4  ;;  %11511 = vmatprep.subr.bf16.mxu1 %v12369_v58  ;;  %v12390_v4 = vld [vmem:[%s15453_s10 + $0x100] sm:$0xff]  }
 0x7d7   :  { %v12391_v58 = vld [vmem:[%s15453_s10 + $0x180] sm:$0xff]  }
 0x7d9   :  { %11490 = vmatpush3.bf16.msra.mxu0 %v12370_v25  ;;  %11512 = vmatpush3.bf16.msra.mxu1 %v12371_v50  ;;  %v12392_v25 = vld [vmem:[%s15453_s10 + $0x148] sm:$0xff]  }
 0x7da   :  { %11491 = vmatprep.subr.bf16.mxu0 %v12372_v6  ;;  %11513 = vmatprep.subr.bf16.mxu1 %v12373_v7  ;;  %v12393_v50 = vld [vmem:[%s15453_s10 + $0x1c8] sm:$0xff]   ;;  %v13848_v6 = vsub.s32 4, %v12946_v13  ;;  %v13851_v7 = vsub.s32 6, %v12946_v13 }
 0x7dd   :  { %11492 = vmatpush3.bf16.msra.mxu0 %v12374_v33  ;;  %11514 = vmatpush3.bf16.msra.mxu1 %v12375_v10  ;;  %v13854_v33 = vsub.s32 5, %v12946_v13  ;;  %v13857_v10 = vsub.s32 7, %v12946_v13  ;;  %v12396_v13 = vld [vmem:[%s15453_s10 + $0x150] sm:$0xff]  }
 0x7de   :  { %11493 = vmatprep.subr.bf16.mxu0 %v12376_v36  ;;  %11515 = vmatprep.subr.bf16.mxu1 %v12377_v12  ;;  %v12394_v36 = vld [vmem:[%s15453_s10 + $0x108] sm:$0xff]  }
 0x7df   :  { %v12395_v12 = vld [vmem:[%s15453_s10 + $0x188] sm:$0xff]  }
 0x7e1   :  { %11494 = vmatpush3.bf16.msra.mxu0 %v12378_v60  ;;  %11516 = vmatpush3.bf16.msra.mxu1 %v12379_v19  ;;  %v3081_v60 = vrot.slane %v3058_v1, %v13848_v6  ;;  %v3089_v19 = vrot.slane %v3058_v1, %v13851_v7 }
 0x7e2   :  { %11495 = vmatprep.subr.bf16.mxu0 %v12380_v24  ;;  %11517 = vmatprep.subr.bf16.mxu1 %v12381_v61  ;;  %v12397_v24 = vld [vmem:[%s15453_s10 + $0x1d0] sm:$0xff]   ;;  %v3085_v61 = vrot.slane %v3058_v1, %v13854_v33 }
 0x7e5   :  { %11496 = vmatpush3.bf16.msra.mxu0 %v12382_v18  ;;  %11518 = vmatpush3.bf16.msra.mxu1 %v12383_v0  ;;  %v3093_v18 = vrot.slane %v3058_v1, %v13857_v10  ;;  %v12400_v1 = vld [vmem:[%s15453_s10 + $0x158] sm:$0xff]  }
 0x7e6   :  { %11497 = vmatprep.subr.bf16.mxu0 %v12384_v15  ;;  %11519 = vmatprep.subr.bf16.mxu1 %v12385_v62  ;;  %v12398_v62 = vld [vmem:[%s15453_s10 + $0x110] sm:$0xff]  }
 0x7e9   :  { %11498 = vmatpush3.bf16.msra.mxu0 %v12386_v21  ;;  %11520 = vmatpush3.bf16.msra.mxu1 %v12387_v5  ;;  %v12399_v21 = vld [vmem:[%s15453_s10 + $0x190] sm:$0xff]  }
 0x7ea   :  { %11527 = vmatprep.subr.bf16.mxu0 %v12388_v20  ;;  %11549 = vmatprep.subr.bf16.mxu1 %v12389_v23 }
 0x86f   :  { %v3499_v37 = vpop.f32.mrb[36].mxu0  ;;  %v3542_v34 = vpop.f32.mrb[40].mxu1 }
 0x870   :  { %v3500_v41 = vadd.f32 %v3499_v37, %v3065_v32  ;;  %v3543_v43 = vadd.f32 %v3542_v34, %v3073_v35  ;;  %v3501_v44 = vpop.f32.mrb[37].mxu0  ;;  %v3544_v45 = vpop.f32.mrb[41].mxu1 }
 0x871   :  { %v3502_v39 = vadd.f32 %v3501_v44, %v3069_v30  ;;  %v3545_v40 = vadd.f32 %v3544_v45, %v3077_v38  ;;  %v3503_v46 = vpop.f32.mrb[38].mxu0  ;;  %v3546_v47 = vpop.f32.mrb[42].mxu1 }
 0x872   :  { %v3504_v48 = vadd.f32 %v3503_v46, %v3065_v32  ;;  %v3547_v52 = vadd.f32 %v3546_v47, %v3073_v35  ;;  %v3505_v9 = vpop.f32.mrb[39].mxu0  ;;  %v3548_v57 = vpop.f32.mrb[43].mxu1  ;;  %v3809_v22 = vmax.f32 %v3500_v41, 0.0  ;;  %v3811_v63 = vmax.f32 %v3543_v43, 0.0  ;;  %v12401_v35 = vld [vmem:[%s15453_s10 + $0x1d8] sm:$0xff]  }
 0x873   :  { %v3506_v42 = vadd.f32 %v3505_v9, %v3069_v30  ;;  %v3549_v16 = vadd.f32 %v3548_v57, %v3077_v38  ;;  %v3810_v29 = vmax.f32 %v3502_v39, 0.0  ;;  %v3812_v59 = vmax.f32 %v3545_v40, 0.0  ;;  %v12402_v46 = vld [vmem:[%s15453_s10 + $0x118] sm:$0xff]  }
 0x874   :  { %v3825_v49 = vmax.f32 %v3504_v48, 0.0  ;;  %v3827_v56 = vmax.f32 %v3547_v52, 0.0  ;;  %v12403_v47 = vld [vmem:[%s15453_s10 + $0x198] sm:$0xff]  }
 0x875   :  { %v3826_v54 = vmax.f32 %v3506_v42, 0.0  ;;  %v3828_v11 = vmax.f32 %v3549_v16, 0.0  ;;  %v12404_v42 = vld [vmem:[%s15453_s10 + $0x160] sm:$0xff]  }
 0x876   :  { %v3841_v3 = vpack.c.bf16 %v3825_v49, %v3809_v22  ;;  %v3843_v8 = vpack.c.bf16 %v3827_v56, %v3811_v63  ;;  %v12405_v16 = vld [vmem:[%s15453_s10 + $0x1e0] sm:$0xff]  }
 0x877   :  { %v3842_v55 = vpack.c.bf16 %v3826_v54, %v3810_v29  ;;  %v3844_v28 = vpack.c.bf16 %v3828_v11, %v3812_v59 }
 0x879   :  { %4920 = vmatprep.mubr.bf16.mxu0 %v3842_v55  ;;  %4961 = vmatprep.mubr.bf16.mxu1 %v3844_v28  ;;  %v12408_v55 = vld [vmem:[%s15453_s10 + $0x168] sm:$0xff]  }
 0x87a   :  { %4921 = vmatmul.mubr.bf16.vlgmr.msra.gmra.mrb[52].mxu0 %v3841_v3  ;;  %4962 = vmatmul.mubr.bf16.vlgmr.msra.gmra.mrb[56].mxu1 %v3843_v8  ;;  %v12406_v3 = vld [vmem:[%s15453_s10 + $0x120] sm:$0xff]   ;;  %v12409_v28 = vld [vmem:[%s15453_s10 + $0x1e8] sm:$0xff]  }
 0x87b   :  { %11528 = vmatpush3.bf16.msra.mxu0 %v12390_v4  ;;  %11550 = vmatpush3.bf16.msra.mxu1 %v12391_v58  ;;  %v12407_v8 = vld [vmem:[%s15453_s10 + $0x1a0] sm:$0xff]   ;;  %v13918_v4 = vld [vmem:[%s15452_s9 + $0x8] sm:$0xff] }
 0x87c   :  { %11529 = vmatprep.subr.bf16.mxu0 %v12392_v25  ;;  %11551 = vmatprep.subr.bf16.mxu1 %v12393_v50  ;;  %v12410_v58 = vld [vmem:[%s15453_s10 + $0x128] sm:$0xff]   ;;  %v3097_v50 = vrot.slane %v13918_v4, %v12949_v14 }
 0x87d   :  { %v12411_v25 = vld [vmem:[%s15453_s10 + $0x1a8] sm:$0xff]  }
 0x87f   :  { %v3585_v0 = vpop.f32.mrb[40].mxu0  ;;  %v3628_v15 = vpop.f32.mrb[44].mxu1  ;;  %11530 = vmatpush3.bf16.msra.mxu0 %v12394_v36  ;;  %11552 = vmatpush3.bf16.msra.mxu1 %v12395_v12  ;;  %v3105_v36 = vrot.slane %v13918_v4, %v13823_v27  ;;  %v12412_v12 = vld [vmem:[%s15453_s10 + $0x170] sm:$0xff]  }
 0x880   :  { %v3586_v5 = vadd.f32 %v3585_v0, %v3081_v60  ;;  %v3629_v20 = vadd.f32 %v3628_v15, %v3089_v19  ;;  %v3587_v23 = vpop.f32.mrb[41].mxu0  ;;  %v3630_v32 = vpop.f32.mrb[45].mxu1  ;;  %11531 = vmatprep.subr.bf16.mxu0 %v12396_v13  ;;  %11553 = vmatprep.subr.bf16.mxu1 %v12397_v24  ;;  %v3109_v13 = vrot.slane %v13918_v4, %v13829_v31  ;;  %v12415_v0 = vld [vmem:[%s15453_s10 + $0x1b0] sm:$0xff]  }
 0x881   :  { %v3588_v30 = vadd.f32 %v3587_v23, %v3085_v61  ;;  %v3631_v38 = vadd.f32 %v3630_v32, %v3093_v18  ;;  %v3589_v37 = vpop.f32.mrb[42].mxu0  ;;  %v3632_v34 = vpop.f32.mrb[46].mxu1  ;;  %v12417_v23 = vld [vmem:[%s15453_s10 + $0x1f8] sm:$0xff]  }
 0x882   :  { %v3590_v41 = vadd.f32 %v3589_v37, %v3081_v60  ;;  %v3633_v43 = vadd.f32 %v3632_v34, %v3089_v19  ;;  %v3591_v44 = vpop.f32.mrb[43].mxu0  ;;  %v3634_v45 = vpop.f32.mrb[47].mxu1  ;;  %v3813_v48 = vmax.f32 %v3586_v5, 0.0  ;;  %v3815_v52 = vmax.f32 %v3629_v20, 0.0  ;;  %v12413_v60 = vld [vmem:[%s15453_s10 + $0x1f0] sm:$0xff]   ;;  %v12416_v20 = vld [vmem:[%s15453_s10 + $0x178] sm:$0xff]  }
 0x883   :  { %v3592_v39 = vadd.f32 %v3591_v44, %v3085_v61  ;;  %v3635_v40 = vadd.f32 %v3634_v45, %v3093_v18  ;;  %11532 = vmatpush3.bf16.msra.mxu0 %v12398_v62  ;;  %11554 = vmatpush3.bf16.msra.mxu1 %v12399_v21  ;;  %v3814_v22 = vmax.f32 %v3588_v30, 0.0  ;;  %v3816_v63 = vmax.f32 %v3631_v38, 0.0  ;;  %v12414_v18 = vld [vmem:[%s15453_s10 + $0x130] sm:$0xff]   ;;  %v12418_v45 = vld [vmem:[%s15453_s10 + $0x138] sm:$0xff]  }
 0x884   :  { %v3829_v9 = vmax.f32 %v3590_v41, 0.0  ;;  %v3831_v57 = vmax.f32 %v3633_v43, 0.0  ;;  %11533 = vmatprep.subr.bf16.mxu0 %v12400_v1  ;;  %11555 = vmatprep.subr.bf16.mxu1 %v12401_v35  ;;  %v3101_v19 = vrot.slane %v13918_v4, %v12956_v17 }
 0x885   :  { %v3830_v49 = vmax.f32 %v3592_v39, 0.0  ;;  %v3832_v56 = vmax.f32 %v3635_v40, 0.0  ;;  %v12419_v39 = vld [vmem:[%s15453_s10 + $0x1b8] sm:$0xff]  }
 0x886   :  { %v13899_v29 = vpack.c.bf16 %v3829_v9, %v3813_v48  ;;  %v13901_v59 = vpack.c.bf16 %v3831_v57, %v3815_v52  ;;  %v12420_v52 = vld [vmem:[%s15453_s10 + $0x240] sm:$0xff]  }
 0x887   :  { %v3846_v54 = vpack.c.bf16 %v3830_v49, %v3814_v22  ;;  %v3848_v11 = vpack.c.bf16 %v3832_v56, %v3816_v63  ;;  %11534 = vmatpush3.bf16.msra.mxu0 %v12402_v46  ;;  %11556 = vmatpush3.bf16.msra.mxu1 %v12403_v47  ;;  %v12421_v9 = vld [vmem:[%s15453_s10 + $0x2c0] sm:$0xff]  }
 0x888   :  { %11535 = vmatprep.subr.bf16.mxu0 %v12404_v42  ;;  %11557 = vmatprep.subr.bf16.mxu1 %v12405_v16 }
 0x889   :  { %5002 = vmatprep.mubr.bf16.mxu0 %v3846_v54  ;;  %5043 = vmatprep.mubr.bf16.mxu1 %v3848_v11  ;;  %v12422_v11 = vld [vmem:[%s15453_s10 + $0x200] sm:$0xff]  }
 0x88b   :  { %11536 = vmatpush3.bf16.msra.mxu0 %v12406_v3  ;;  %11558 = vmatpush3.bf16.msra.mxu1 %v12407_v8  ;;  %v12423_v3 = vld [vmem:[%s15453_s10 + $0x280] sm:$0xff]   ;;  %v12424_v8 = vld [vmem:[%s15453_s10 + $0x248] sm:$0xff]  }
 0x88c   :  { %11537 = vmatprep.subr.bf16.mxu0 %v12408_v55  ;;  %11559 = vmatprep.subr.bf16.mxu1 %v12409_v28  ;;  %v12425_v55 = vld [vmem:[%s15453_s10 + $0x2c8] sm:$0xff]  }
 0x88d   :  { %v12426_v28 = vld [vmem:[%s15453_s10 + $0x208] sm:$0xff]  }
 0x88f   :  { %v3671_v24 = vpop.f32.mrb[44].mxu0  ;;  %v3714_v61 = vpop.f32.mrb[48].mxu1  ;;  %11538 = vmatpush3.bf16.msra.mxu0 %v12410_v58  ;;  %11560 = vmatpush3.bf16.msra.mxu1 %v12411_v25  ;;  %v3113_v58 = vrot.slane %v13918_v4, %v13848_v6  ;;  %v3121_v25 = vrot.slane %v13918_v4, %v13851_v7 }
 0x890   :  { %v3672_v15 = vadd.f32 %v3671_v24, %v3097_v50  ;;  %v3715_v62 = vadd.f32 %v3714_v61, %v3105_v36  ;;  %v3673_v21 = vpop.f32.mrb[45].mxu0  ;;  %v3716_v5 = vpop.f32.mrb[49].mxu1  ;;  %11539 = vmatprep.subr.bf16.mxu0 %v12412_v12  ;;  %11561 = vmatprep.subr.bf16.mxu1 %v12413_v60  ;;  %v12429_v12 = vld [vmem:[%s15453_s10 + $0x2d0] sm:$0xff]  }
 0x891   :  { %v3674_v32 = vadd.f32 %v3673_v21, %v3101_v19  ;;  %v3717_v1 = vadd.f32 %v3716_v5, %v3109_v13  ;;  %v3675_v35 = vpop.f32.mrb[46].mxu0  ;;  %v3718_v30 = vpop.f32.mrb[50].mxu1 }
 0x892   :  { %v3676_v38 = vadd.f32 %v3675_v35, %v3097_v50  ;;  %v3719_v37 = vadd.f32 %v3718_v30, %v3105_v36  ;;  %v3677_v34 = vpop.f32.mrb[47].mxu0  ;;  %v3720_v41 = vpop.f32.mrb[51].mxu1  ;;  %v3817_v40 = vmax.f32 %v3672_v15, 0.0  ;;  %v3819_v46 = vmax.f32 %v3715_v62, 0.0  ;;  %v12432_v15 = vld [vmem:[%s15453_s10 + $0x258] sm:$0xff]  }
 0x893   :  { %v3678_v43 = vadd.f32 %v3677_v34, %v3101_v19  ;;  %v3721_v44 = vadd.f32 %v3720_v41, %v3109_v13  ;;  %11540 = vmatpush3.bf16.msra.mxu0 %v12414_v18  ;;  %11562 = vmatpush3.bf16.msra.mxu1 %v12415_v0  ;;  %v3818_v57 = vmax.f32 %v3674_v32, 0.0  ;;  %v3820_v42 = vmax.f32 %v3717_v1, 0.0  ;;  %v12430_v13 = vld [vmem:[%s15453_s10 + $0x210] sm:$0xff]   ;;  %v12434_v34 = vld [vmem:[%s15453_s10 + $0x218] sm:$0xff]  }
 0x894   :  { %v3833_v47 = vmax.f32 %v3676_v38, 0.0  ;;  %v3835_v48 = vmax.f32 %v3719_v37, 0.0  ;;  %11541 = vmatprep.subr.bf16.mxu0 %v12416_v20  ;;  %11563 = vmatprep.subr.bf16.mxu1 %v12417_v23  ;;  %v3117_v50 = vrot.slane %v13918_v4, %v13854_v33  ;;  %v3125_v36 = vrot.slane %v13918_v4, %v13857_v10  ;;  %v12431_v4 = vld [vmem:[%s15453_s10 + $0x290] sm:$0xff]   ;;  %v12433_v23 = vld [vmem:[%s15453_s10 + $0x2d8] sm:$0xff]  }
 0x895   :  { %v3834_v16 = vmax.f32 %v3678_v43, 0.0  ;;  %v3836_v22 = vmax.f32 %v3721_v44, 0.0 }
 0x896   :  { %v13964_v63 = vpack.c.bf16 %v3833_v47, %v3817_v40  ;;  %v13966_v49 = vpack.c.bf16 %v3835_v48, %v3819_v46  ;;  %v12436_v40 = vld [vmem:[%s15453_s10 + $0x260] sm:$0xff]  }
 0x897   :  { %v3850_v56 = vpack.c.bf16 %v3834_v16, %v3818_v57  ;;  %v3852_v54 = vpack.c.bf16 %v3836_v22, %v3820_v42  ;;  %11542 = vmatpush3.bf16.msra.mxu0 %v12418_v45  ;;  %11564 = vmatpush3.bf16.msra.mxu1 %v12419_v39  ;;  %v12435_v39 = vld [vmem:[%s15453_s10 + $0x298] sm:$0xff]  }
 0x898   :  { %11571 = vmatprep.subr.bf16.mxu0 %v12420_v52  ;;  %11593 = vmatprep.subr.bf16.mxu1 %v12421_v9  ;;  %v12437_v9 = vld [vmem:[%s15453_s10 + $0x2e0] sm:$0xff]  }
 0x89a   :  { %5003 = vmatmul.mubr.bf16.vlgmr.msra.gmra.mrb[56].mxu0 %v13899_v29  ;;  %5044 = vmatmul.mubr.bf16.vlgmr.msra.gmra.mrb[60].mxu1 %v13901_v59  ;;  %v12427_v29 = vld [vmem:[%s15453_s10 + $0x288] sm:$0xff]   ;;  %v12428_v59 = vld [vmem:[%s15453_s10 + $0x250] sm:$0xff]  }
 0x89b   :  { %11572 = vmatpush3.bf16.msra.mxu0 %v12422_v11  ;;  %5084 = vmatprep.mubr.bf16.mxu0 %v3850_v56  ;;  %v12438_v56 = vld [vmem:[%s15453_s10 + $0x220] sm:$0xff]   ;;  %v12440_v11 = vld [vmem:[%s15453_s10 + $0x268] sm:$0xff]  }
 0x89c   :  { %11594 = vmatpush3.bf16.msra.mxu1 %v12423_v3  ;;  %5125 = vmatprep.mubr.bf16.mxu1 %v3852_v54  ;;  %v12439_v54 = vld [vmem:[%s15453_s10 + $0x2a0] sm:$0xff]   ;;  %v12441_v3 = vld [vmem:[%s15453_s10 + $0x2e8] sm:$0xff]  }
 0x89d   :  { %11573 = vmatprep.subr.bf16.mxu0 %v12424_v8  ;;  %11595 = vmatprep.subr.bf16.mxu1 %v12425_v55  ;;  %v12442_v8 = vld [vmem:[%s15453_s10 + $0x228] sm:$0xff]  }
 0x89e   :  { %v12443_v55 = vld [vmem:[%s15453_s10 + $0x2a8] sm:$0xff]  }
 0x89f   :  { %v3757_v60 = vpop.f32.mrb[48].mxu0  ;;  %v3800_v19 = vpop.f32.mrb[52].mxu1  ;;  %11574 = vmatpush3.bf16.msra.mxu0 %v12426_v28  ;;  %v12444_v28 = vld [vmem:[%s15453_s10 + $0x270] sm:$0xff]  }
 0x8a0   :  { %v3758_v24 = vadd.f32 %v3757_v60, %v3113_v58  ;;  %v3801_v61 = vadd.f32 %v3800_v19, %v3121_v25  ;;  %11596 = vmatpush3.bf16.msra.mxu1 %v12427_v29  ;;  %v3759_v18 = vpop.f32.mrb[49].mxu0  ;;  %v3802_v0 = vpop.f32.mrb[53].mxu1  ;;  %11575 = vmatprep.subr.bf16.mxu0 %v12428_v59  ;;  %v12447_v29 = vld [vmem:[%s15453_s10 + $0x2b0] sm:$0xff]   ;;  %v12448_v59 = vld [vmem:[%s15453_s10 + $0x278] sm:$0xff]   ;;  %v12452_v60 = vld [vmem:[%s15453_s10 + $0x340] sm:$0xff]  }
 0x8a1   :  { %v3760_v62 = vadd.f32 %v3759_v18, %v3117_v50  ;;  %v3803_v21 = vadd.f32 %v3802_v0, %v3125_v36  ;;  %v3761_v5 = vpop.f32.mrb[50].mxu0  ;;  %v3804_v20 = vpop.f32.mrb[54].mxu1  ;;  %11597 = vmatprep.subr.bf16.mxu1 %v12429_v12  ;;  %v12451_v12 = vld [vmem:[%s15453_s10 + $0x2b8] sm:$0xff]   ;;  %v12453_v19 = vld [vmem:[%s15453_s10 + $0x3c0] sm:$0xff]   ;;  %v12457_v18 = vld [vmem:[%s15453_s10 + $0x3c8] sm:$0xff]  }
 0x8a2   :  { %v3762_v32 = vadd.f32 %v3761_v5, %v3113_v58  ;;  %v3805_v1 = vadd.f32 %v3804_v20, %v3121_v25  ;;  %v3763_v35 = vpop.f32.mrb[51].mxu0  ;;  %v3806_v30 = vpop.f32.mrb[55].mxu1  ;;  %v3821_v41 = vmax.f32 %v3758_v24, 0.0  ;;  %v3823_v43 = vmax.f32 %v3801_v61, 0.0  ;;  %v12445_v58 = vld [vmem:[%s15453_s10 + $0x2f0] sm:$0xff]   ;;  %v12455_v24 = vld [vmem:[%s15453_s10 + $0x380] sm:$0xff]  }
 0x8a3   :  { %v3764_v38 = vadd.f32 %v3763_v35, %v3117_v50  ;;  %v3807_v37 = vadd.f32 %v3806_v30, %v3125_v36  ;;  %11576 = vmatpush3.bf16.msra.mxu0 %v12430_v13  ;;  %v3822_v46 = vmax.f32 %v3760_v62, 0.0  ;;  %v3824_v47 = vmax.f32 %v3803_v21, 0.0  ;;  %v12446_v25 = vld [vmem:[%s15453_s10 + $0x230] sm:$0xff]   ;;  %v12449_v50 = vld [vmem:[%s15453_s10 + $0x2f8] sm:$0xff]   ;;  %v12454_v13 = vld [vmem:[%s15453_s10 + $0x300] sm:$0xff]  }
 0x8a4   :  { %v3837_v44 = vmax.f32 %v3762_v32, 0.0  ;;  %v3839_v45 = vmax.f32 %v3805_v1, 0.0  ;;  %11598 = vmatpush3.bf16.msra.mxu1 %v12431_v4  ;;  %11577 = vmatprep.subr.bf16.mxu0 %v12432_v15  ;;  %v12450_v36 = vld [vmem:[%s15453_s10 + $0x238] sm:$0xff]   ;;  %v12456_v61 = vld [vmem:[%s15453_s10 + $0x348] sm:$0xff]   ;;  %v12462_v15 = vld [vmem:[%s15453_s10 + $0x310] sm:$0xff]  }
 0x8a5   :  { %v3838_v48 = vmax.f32 %v3764_v38, 0.0  ;;  %v3840_v52 = vmax.f32 %v3807_v37, 0.0  ;;  %11599 = vmatprep.subr.bf16.mxu1 %v12433_v23  ;;  %v12458_v0 = vld [vmem:[%s15453_s10 + $0x308] sm:$0xff]   ;;  %v12463_v62 = vld [vmem:[%s15453_s10 + $0x390] sm:$0xff]   ;;  %v12464_v21 = vld [vmem:[%s15453_s10 + $0x358] sm:$0xff]  }
 0x8a6   :  { %v14026_v57 = vpack.c.bf16 %v3837_v44, %v3821_v41  ;;  %v14028_v42 = vpack.c.bf16 %v3839_v45, %v3823_v43  ;;  %v12459_v4 = vld [vmem:[%s15453_s10 + $0x388] sm:$0xff]   ;;  %v12465_v5 = vld [vmem:[%s15453_s10 + $0x3d8] sm:$0xff]   ;;  %v12468_v32 = vld [vmem:[%s15453_s10 + $0x360] sm:$0xff]  }
 0x8a7   :  { %v3854_v16 = vpack.c.bf16 %v3838_v48, %v3822_v46  ;;  %v3856_v22 = vpack.c.bf16 %v3840_v52, %v3824_v47  ;;  %11578 = vmatpush3.bf16.msra.mxu0 %v12434_v34  ;;  %v12466_v20 = vld [vmem:[%s15453_s10 + $0x318] sm:$0xff]   ;;  %v12469_v1 = vld [vmem:[%s15453_s10 + $0x3e0] sm:$0xff]   ;;  %v12472_v38 = vld [vmem:[%s15453_s10 + $0x368] sm:$0xff]  }
 0x8a8   :  { %11600 = vmatpush3.bf16.msra.mxu1 %v12435_v39  ;;  %11579 = vmatprep.subr.bf16.mxu0 %v12436_v40  ;;  %v12467_v23 = vld [vmem:[%s15453_s10 + $0x398] sm:$0xff]   ;;  %v12470_v35 = vld [vmem:[%s15453_s10 + $0x320] sm:$0xff]   ;;  %v12473_v37 = vld [vmem:[%s15453_s10 + $0x3e8] sm:$0xff]  }
 0x8a9   :  { %11601 = vmatprep.subr.bf16.mxu1 %v12437_v9  ;;  %v12471_v30 = vld [vmem:[%s15453_s10 + $0x3a0] sm:$0xff]   ;;  %v12474_v34 = vld [vmem:[%s15453_s10 + $0x328] sm:$0xff]   ;;  %v12476_v43 = vld [vmem:[%s15453_s10 + $0x370] sm:$0xff]  }
 0x8aa   :  { %v12475_v41 = vld [vmem:[%s15453_s10 + $0x3a8] sm:$0xff]   ;;  %v12477_v44 = vld [vmem:[%s15453_s10 + $0x3f0] sm:$0xff]   ;;  %v12480_v40 = vld [vmem:[%s15453_s10 + $0x378] sm:$0xff]  }
 0x8ab   :  { %11580 = vmatpush3.bf16.msra.mxu0 %v12438_v56  ;;  %v12478_v45 = vld [vmem:[%s15453_s10 + $0x330] sm:$0xff]   ;;  %v12481_v46 = vld [vmem:[%s15453_s10 + $0x3f8] sm:$0xff]  }
 0x8ac   :  { %11602 = vmatpush3.bf16.msra.mxu1 %v12439_v54  ;;  %11581 = vmatprep.subr.bf16.mxu0 %v12440_v11  ;;  %v12479_v39 = vld [vmem:[%s15453_s10 + $0x3b0] sm:$0xff]   ;;  %v12482_v47 = vld [vmem:[%s15453_s10 + $0x338] sm:$0xff]  }
 0x8ad   :  { %11603 = vmatprep.subr.bf16.mxu1 %v12441_v3  ;;  %v12483_v48 = vld [vmem:[%s15453_s10 + $0x3b8] sm:$0xff]  }
 0x8af   :  { %11582 = vmatpush3.bf16.msra.mxu0 %v12442_v8 }
 0x8b0   :  { %11604 = vmatpush3.bf16.msra.mxu1 %v12443_v55  ;;  %11583 = vmatprep.subr.bf16.mxu0 %v12444_v28 }
 0x8b1   :  { %11605 = vmatprep.subr.bf16.mxu1 %v12445_v58 }
 0x8b3   :  { %11584 = vmatpush3.bf16.msra.mxu0 %v12446_v25 }
 0x8b4   :  { %11606 = vmatpush3.bf16.msra.mxu1 %v12447_v29  ;;  %11585 = vmatprep.subr.bf16.mxu0 %v12448_v59 }
 0x8b5   :  { %11607 = vmatprep.subr.bf16.mxu1 %v12449_v50 }
 0x8b7   :  { %11586 = vmatpush3.bf16.msra.mxu0 %v12450_v36 }
 0x8b8   :  { %11608 = vmatpush3.bf16.msra.mxu1 %v12451_v12  ;;  %11615 = vmatprep.subr.bf16.mxu0 %v12452_v60 }
 0x8b9   :  { %11637 = vmatprep.subr.bf16.mxu1 %v12453_v19 }
 0x8ba   :  { %5085 = vmatmul.mubr.bf16.vlgmr.msra.gmra.mrb[60].mxu0 %v13964_v63  ;;  %v12460_v63 = vld [vmem:[%s15453_s10 + $0x350] sm:$0xff]  }
 0x8bb   :  { %5126 = vmatmul.mubr.bf16.vlgmr.msra.gmra.mrb[64].mxu1 %v13966_v49  ;;  %11616 = vmatpush3.bf16.msra.mxu0 %v12454_v13  ;;  %v12461_v49 = vld [vmem:[%s15453_s10 + $0x3d0] sm:$0xff]  }
 0x8bc   :  { %5166 = vmatprep.mubr.bf16.mxu0 %v3854_v16  ;;  %11638 = vmatpush3.bf16.msra.mxu1 %v12455_v24  ;;  %v10675_v16 = vld [vmem:[%s15454_s11] ss:$0 sm:$0xff] }
 0x8bd   :  { %5207 = vmatprep.mubr.bf16.mxu1 %v3856_v22  ;;  %11617 = vmatprep.subr.bf16.mxu0 %v12456_v61 }
 0x8be   :  { %11639 = vmatprep.subr.bf16.mxu1 %v12457_v18 }
 0x8bf   :  { %11618 = vmatpush3.bf16.msra.mxu0 %v12458_v0 }
 0x8c0   :  { %11640 = vmatpush3.bf16.msra.mxu1 %v12459_v4  ;;  %11619 = vmatprep.subr.bf16.mxu0 %v12460_v63 }
 0x8c1   :  { %11641 = vmatprep.subr.bf16.mxu1 %v12461_v49 }
 0x8c3   :  { %11620 = vmatpush3.bf16.msra.mxu0 %v12462_v15 }
 0x8c4   :  { %11642 = vmatpush3.bf16.msra.mxu1 %v12463_v62  ;;  %11621 = vmatprep.subr.bf16.mxu0 %v12464_v21 }
 0x8c5   :  { %11643 = vmatprep.subr.bf16.mxu1 %v12465_v5 }
 0x8c7   :  { %11622 = vmatpush3.bf16.msra.mxu0 %v12466_v20 }
 0x8c8   :  { %11644 = vmatpush3.bf16.msra.mxu1 %v12467_v23  ;;  %11623 = vmatprep.subr.bf16.mxu0 %v12468_v32 }
 0x8c9   :  { %11645 = vmatprep.subr.bf16.mxu1 %v12469_v1 }
 0x8cb   :  { %11624 = vmatpush3.bf16.msra.mxu0 %v12470_v35 }
 0x8cc   :  { %11646 = vmatpush3.bf16.msra.mxu1 %v12471_v30  ;;  %11625 = vmatprep.subr.bf16.mxu0 %v12472_v38 }
 0x8cd   :  { %11647 = vmatprep.subr.bf16.mxu1 %v12473_v37 }
 0x8cf   :  { %11626 = vmatpush3.bf16.msra.mxu0 %v12474_v34 }
 0x8d0   :  { %11648 = vmatpush3.bf16.msra.mxu1 %v12475_v41  ;;  %11627 = vmatprep.subr.bf16.mxu0 %v12476_v43 }
 0x8d1   :  { %11649 = vmatprep.subr.bf16.mxu1 %v12477_v44 }
 0x8d3   :  { %11628 = vmatpush3.bf16.msra.mxu0 %v12478_v45 }
 0x8d4   :  { %11650 = vmatpush3.bf16.msra.mxu1 %v12479_v39  ;;  %11629 = vmatprep.subr.bf16.mxu0 %v12480_v40 }
 0x8d5   :  { %11651 = vmatprep.subr.bf16.mxu1 %v12481_v46 }
 0x8d7   :  { %11630 = vmatpush3.bf16.msra.mxu0 %v12482_v47 }
 0x8d8   :  { %11652 = vmatpush3.bf16.msra.mxu1 %v12483_v48 }
 0x8d9   :  { %12076 = vmatprep.subr.mxu1 %v12830_v26 }
 0x8da   :  { %5167 = vmatmul.mubr.bf16.vlgmr.msra.gmra.mrb[64].mxu0 %v14026_v57 }
 0x8db   :  { %5208 = vmatmul.mubr.bf16.vlgmr.msra.gmra.mrb[68].mxu1 %v14028_v42  ;;  %5355 = vmatprep.mubr.bf16.mxu0 %v12822_v2 }
 0x8dc   :  { %12078 = vmatprep.mubr.msk.f32.mxu1 %vm12831_vm1, %v12830_v26 }
 0x94d   :  { %v11499_v52 = vpop.f32.mrb[52].mxu0  ;;  %v11521_v9 = vpop.f32.mrb[56].mxu1 }
 0x94e   :  { %v11500_v22 = vpop.f32.mrb[53].mxu0  ;;  %v11522_v56 = vpop.f32.mrb[57].mxu1 }
 0x94f   :  { %v11501_v54 = vadd.f32 %v11500_v22, %v11499_v52  ;;  %v11523_v11 = vadd.f32 %v11522_v56, %v11521_v9  ;;  %v11502_v3 = vpop.f32.mrb[54].mxu0  ;;  %v11524_v8 = vpop.f32.mrb[58].mxu1 }
 0x950   :  { %v11503_v57 = vpop.f32.mrb[55].mxu0  ;;  %v11525_v55 = vpop.f32.mrb[59].mxu1 }
 0x951   :  { %v4923_v42 = vadd.f32 %v11501_v54, %v10675_v16  ;;  %v11504_v28 = vadd.f32 %v11503_v57, %v11502_v3  ;;  %v11526_v58 = vadd.f32 %v11525_v55, %v11524_v8 }
 0x953   :  { %v4964_v25 = vadd.f32 %v11523_v11, %v4923_v42  ;;  %v4926_v29 = vadd.f32 %v11504_v28, %v10675_v16 }
 0x955   :  { %v4967_v59 = vadd.f32 %v11526_v58, %v4926_v29 }
 0x96d   :  { %v11543_v50 = vpop.f32.mrb[56].mxu0  ;;  %v11565_v36 = vpop.f32.mrb[60].mxu1 }
 0x96e   :  { %v11544_v12 = vpop.f32.mrb[57].mxu0  ;;  %v11566_v60 = vpop.f32.mrb[61].mxu1 }
 0x96f   :  { %v11545_v19 = vadd.f32 %v11544_v12, %v11543_v50  ;;  %v11567_v13 = vadd.f32 %v11566_v60, %v11565_v36  ;;  %v11546_v24 = vpop.f32.mrb[58].mxu0  ;;  %v11568_v61 = vpop.f32.mrb[62].mxu1 }
 0x970   :  { %v11547_v18 = vpop.f32.mrb[59].mxu0  ;;  %v11569_v0 = vpop.f32.mrb[63].mxu1 }
 0x971   :  { %v5005_v4 = vadd.f32 %v11545_v19, %v4964_v25  ;;  %v11548_v63 = vadd.f32 %v11547_v18, %v11546_v24  ;;  %v11570_v49 = vadd.f32 %v11569_v0, %v11568_v61  ;;  %v12484_v0 = vld [vmem:[%s15445_s2 + $0x40] ss:$8 sps:$4 sm:$0xff]  }
 0x973   :  { %v5046_v15 = vadd.f32 %v11567_v13, %v5005_v4  ;;  %v5008_v62 = vadd.f32 %v11548_v63, %v4967_v59  ;;  %v12489_v4 = vld [vmem:[%s15445_s2 + $0x54] ss:$8 sps:$4 sm:$0xff]   ;;  %v12487_v63 = vld [vmem:[%s15445_s2 + $0x50] ss:$8 sps:$4 sm:$0xff]  }
 0x975   :  { %v5049_v21 = vadd.f32 %v11570_v49, %v5008_v62  ;;  %v12492_v49 = vld [vmem:[%s15445_s2 + $0x64] ss:$8 sps:$4 sm:$0xff]   ;;  %v12495_v62 = vld [vmem:[%s15445_s2 + $0x74] ss:$8 sps:$4 sm:$0xff]  }
 0x98d   :  { %v11587_v5 = vpop.f32.mrb[60].mxu0 }
 0x98e   :  { %v11609_v20 = vpop.f32.mrb[64].mxu1  ;;  %v11588_v23 = vpop.f32.mrb[61].mxu0 }
 0x98f   :  { %v11589_v32 = vadd.f32 %v11588_v23, %v11587_v5  ;;  %v11610_v1 = vpop.f32.mrb[65].mxu1  ;;  %v11590_v35 = vpop.f32.mrb[62].mxu0 }
 0x990   :  { %v11611_v30 = vadd.f32 %v11610_v1, %v11609_v20  ;;  %v11612_v38 = vpop.f32.mrb[66].mxu1  ;;  %v11591_v37 = vpop.f32.mrb[63].mxu0 }
 0x991   :  { %v5087_v34 = vadd.f32 %v11589_v32, %v5046_v15  ;;  %v11592_v41 = vadd.f32 %v11591_v37, %v11590_v35  ;;  %v11613_v43 = vpop.f32.mrb[67].mxu1  ;;  %v12490_v15 = vld [vmem:[%s15445_s2 + $0x60] ss:$8 sps:$4 sm:$0xff]  }
 0x992   :  { %v11614_v44 = vadd.f32 %v11613_v43, %v11612_v38 }
 0x993   :  { %v5128_v45 = vadd.f32 %v11611_v30, %v5087_v34  ;;  %v5090_v39 = vadd.f32 %v11592_v41, %v5049_v21  ;;  %v12493_v21 = vld [vmem:[%s15445_s2 + $0x70] ss:$8 sps:$4 sm:$0xff]   ;;  %v5216_v30 = vld [vmem:[%s15450_s7] sm:$0x3] }
 0x994   :  { %v5248_v38 = vrot.slane %v5216_v30, %v12949_v14 }
 0x995   :  { %v5131_v40 = vadd.f32 %v11614_v44, %v5090_v39 }
 0x9ad   :  { %v11631_v46 = vpop.f32.mrb[64].mxu0 }
 0x9ae   :  { %v11653_v47 = vpop.f32.mrb[68].mxu1  ;;  %v11632_v48 = vpop.f32.mrb[65].mxu0 }
 0x9af   :  { %v11633_v52 = vadd.f32 %v11632_v48, %v11631_v46  ;;  %v11654_v9 = vpop.f32.mrb[69].mxu1  ;;  %v11634_v16 = vpop.f32.mrb[66].mxu0  ;;  %v10812_v48 = vld [vmem:[%s15446_s3 + $0x2] sm:$0x3] }
 0x9b0   :  { %v11655_v22 = vadd.f32 %v11654_v9, %v11653_v47  ;;  %v11656_v56 = vpop.f32.mrb[70].mxu1  ;;  %v11635_v54 = vpop.f32.mrb[67].mxu0 }
 0x9b1   :  { %v5169_v11 = vadd.f32 %v11633_v52, %v5128_v45  ;;  %v11636_v3 = vadd.f32 %v11635_v54, %v11634_v16  ;;  %v11657_v8 = vpop.f32.mrb[71].mxu1  ;;  %v5254_v45 = vrot.slane %v5216_v30, %v12956_v17  ;;  %v5273_v52 = vrot.slane %v10812_v48, %v12949_v14 }
 0x9b2   :  { %v11658_v57 = vadd.f32 %v11657_v8, %v11656_v56  ;;  %v5277_v56 = vrot.slane %v10812_v48, %v12956_v17 }
 0x9b3   :  { %v5210_v55 = vadd.f32 %v11655_v22, %v5169_v11  ;;  %v5172_v42 = vadd.f32 %v11636_v3, %v5131_v40 }
 0x9b5   :  { %v5213_v28 = vadd.f32 %v11658_v57, %v5172_v42  ;;  %v5217_v58 = vadd.f32 %v5210_v55, %v13570_v53 }
 0x9b7   :  { %v5219_v25 = vsel %vm109_vm0, %v5217_v58, 0.0  ;;  %v5218_v29 = vadd.f32 %v5213_v28, %v13572_v51  ;;  %v12486_v51 = vld [vmem:[%s15445_s2 + $0x44] ss:$8 sps:$4 sm:$0xff]  }
 0x9b8   :  { %5220 = vadd.xlane.f32.xlu0 %v5219_v25  ;;  %5323 = vmatprep.subr.bf16.mxu0 %v12486_v51 }
 0x9b9   :  { %v5222_v59 = vsel %vm109_vm0, %v5218_v29, 0.0  ;;  %5324 = vmatpush1.bf16.msra.mxu0 %v12484_v0 }
 0x9ba   :  { %5223 = vadd.xlane.f32.xlu1 %v5222_v59  ;;  %5325 = vmatprep.subr.bf16.mxu0 %v12489_v4 }
 0x9bd   :  { %5326 = vmatpush1.bf16.msra.mxu0 %v12487_v63 }
 0x9be   :  { %5327 = vmatprep.subr.bf16.mxu0 %v12492_v49 }
 0x9c1   :  { %5328 = vmatpush1.bf16.msra.mxu0 %v12490_v15 }
 0x9c2   :  { %5329 = vmatprep.subr.bf16.mxu0 %v12495_v62 }
 0x9c5   :  { %5330 = vmatpush1.bf16.msra.mxu0 %v12493_v21 }
 0x9c6   :  { %12081 = vmatprep.subr.mxu0 %v12830_v26 }
 0xa45   :  { %v5221_v50 = vpop.xlane.xlu0 %5220 }
 0xa46   :  { %v5225_v36 = vmul.f32 0.015625, %v5221_v50 }
 0xa47   :  { %v5224_v12 = vpop.xlane.xlu1 %5223 }
 0xa48   :  { %v5227_v60 = vsub.f32 %v5217_v58, %v5225_v36  ;;  %v5226_v19 = vmul.f32 0.015625, %v5224_v12 }
 0xa4a   :  { %v5228_v13 = vsub.f32 %v5218_v29, %v5226_v19  ;;  %v5229_v24 = vmul.f32 %v5227_v60, %v5227_v60 }
 0xa4c   :  { %v5231_v61 = vsel %vm109_vm0, %v5229_v24, 0.0  ;;  %v5230_v18 = vmul.f32 %v5228_v13, %v5228_v13 }
 0xa4d   :  { %5232 = vadd.xlane.f32.xlu0 %v5231_v61 }
 0xa4e   :  { %v5234_v53 = vsel %vm109_vm0, %v5230_v18, 0.0 }
 0xa4f   :  { %5235 = vadd.xlane.f32.xlu1 %v5234_v53 }
 0xada   :  { %v5233_v5 = vpop.xlane.xlu0 %5232 }
 0xadb   :  { %v5237_v20 = vmul.f32 0.015625, %v5233_v5 }
 0xadc   :  { %v5236_v23 = vpop.xlane.xlu1 %5235 }
 0xadd   :  { %v5239_v32 = vadd.f32 1e-05, %v5237_v20  ;;  %v5238_v1 = vmul.f32 0.015625, %v5236_v23 }
 0xadf   :  { %12696 = vrsqrt.f32 %v5239_v32  ;;  %v5240_v35 = vadd.f32 1e-05, %v5238_v1 }
 0xae1   :  { %12698 = vrsqrt.f32 %v5240_v35 }
 0xae9   :  { %v12697_v37 = vpop.eup %12696 }
 0xaea   :  { %v5243_v34 = vmul.f32 %v12697_v37, %v5227_v60 }
 0xaeb   :  { %v12699_v41 = vpop.eup %12698 }
 0xaec   :  { %v5249_v43 = vmul.f32 %v5248_v38, %v5243_v34  ;;  %v5244_v44 = vmul.f32 %v12699_v41, %v5228_v13 }
 0xaee   :  { %v5250_v39 = vmul.f32 %v5248_v38, %v5244_v44  ;;  %v14215_v40 = vadd.f32 %v5254_v45, %v5249_v43 }
 0xaf0   :  { %v14217_v46 = vadd.f32 %v5254_v45, %v5250_v39 }
 0xaf2   :  { %v5257_v47 = vpack.c.bf16 %v14217_v46, %v14215_v40 }
 0xaf4   :  { %10821 = vmatmul.mubr.msk.bf16.vlgmr.msra.gmra.mrb[68].mxu0 %vm109_vm0, %v5257_v47 }
 0xaf5   :  { %12083 = vmatprep.mubr.msk.f32.mxu0 %vm12831_vm1, %v12830_v26 }
 0xbc7   :  { %v5357_v9 = vpop.f32.mrb[68].mxu0 }
 0xbc8   :  { %v5358_v16 = vadd.f32 %v5357_v9, %v5273_v52  ;;  %v5359_v22 = vpop.f32.mrb[69].mxu0 }
 0xbc9   :  { %v5361_v54 = vpop.f32.mrb[70].mxu0  ;;  %v14291_v13 = vadd.f32 %v5359_v22, %v5277_v56 }
 0xbca   :  { %v5363_v11 = vpop.f32.mrb[71].mxu0  ;;  %5369 = vrot.lane.b32.xlu1 %v5358_v16, %s12826_s16  ;;  %5367 = vrot.lane.b32.xlu0 %v5358_v16, %s12824_s14  ;;  %v14237_v8 = vadd.f32 %v5361_v54, %v5273_v52 }
 0xbcb   :  { %v14231_v3 = vadd.f32 %v5363_v11, %v5277_v56 }
 0xbce   :  { %5371 = vrot.lane.b32.xlu1 %v5358_v16, %s12823_s30  ;;  %5373 = vrot.lane.b32.xlu0 %v5358_v16, %s12825_s15 }
 0xbd2   :  { %5375 = vrot.lane.b32.xlu1 %v5358_v16, %s12828_s18  ;;  %5377 = vrot.lane.b32.xlu0 %v5358_v16, %s12827_s17 }
 0xbd6   :  { %5379 = vrot.lane.b32.xlu1 %v5358_v16, %s12829_s19  ;;  %5382 = vrot.lane.b32.xlu0 %v14237_v8, %s12824_s14 }
 0xbda   :  { %5384 = vrot.lane.b32.xlu1 %v14237_v8, %s12826_s16  ;;  %5386 = vrot.lane.b32.xlu0 %v14237_v8, %s12823_s30 }
 0xbde   :  { %5388 = vrot.lane.b32.xlu1 %v14237_v8, %s12825_s15  ;;  %5390 = vrot.lane.b32.xlu0 %v14237_v8, %s12828_s18 }
 0xbe2   :  { %5392 = vrot.lane.b32.xlu1 %v14237_v8, %s12827_s17  ;;  %5394 = vrot.lane.b32.xlu0 %v14237_v8, %s12829_s19 }
 0xbe6   :  { %5440 = vrot.lane.b32.xlu1 %v5358_v16, %s12832_s20 }
 0xc3c   :  { %v5370_v57 = vpop.permute.xlu1 %5369  ;;  %v5368_v55 = vpop.permute.xlu0 %5367 }
 0xc3d   :  { %5592 = vrot.lane.b32.xlu1 %v5370_v57, %s12832_s20  ;;  %5516 = vrot.lane.b32.xlu0 %v5368_v55, %s12832_s20 }
 0xc40   :  { %v5372_v42 = vpop.permute.xlu1 %5371  ;;  %v5374_v28 = vpop.permute.xlu0 %5373 }
 0xc41   :  { %5668 = vrot.lane.b32.xlu0 %v5372_v42, %s12832_s20  ;;  %5744 = vrot.lane.b32.xlu1 %v5374_v28, %s12832_s20 }
 0xc44   :  { %v5376_v58 = vpop.permute.xlu1 %5375  ;;  %v5378_v25 = vpop.permute.xlu0 %5377 }
 0xc45   :  { %5820 = vrot.lane.b32.xlu0 %v5376_v58, %s12832_s20  ;;  %5896 = vrot.lane.b32.xlu1 %v5378_v25, %s12832_s20 }
 0xc48   :  { %v14261_v29 = vpop.permute.xlu1 %5379  ;;  %v14263_v59 = vpop.permute.xlu0 %5382 }
 0xc49   :  { %5972 = vrot.lane.b32.xlu0 %v14261_v29, %s12832_s20  ;;  %6048 = vrot.lane.b32.xlu1 %v14237_v8, %s12832_s20 }
 0xc4c   :  { %v14269_v50 = vpop.permute.xlu1 %5384  ;;  %v14271_v36 = vpop.permute.xlu0 %5386 }
 0xc4d   :  { %6200 = vrot.lane.b32.xlu1 %v14269_v50, %s12832_s20  ;;  %6124 = vrot.lane.b32.xlu0 %v14263_v59, %s12832_s20 }
 0xc50   :  { %v14277_v12 = vpop.permute.xlu1 %5388  ;;  %v14283_v60 = vpop.permute.xlu0 %5390 }
 0xc51   :  { %6352 = vrot.lane.b32.xlu1 %v14277_v12, %s12832_s20  ;;  %6276 = vrot.lane.b32.xlu0 %v14271_v36, %s12832_s20 }
 0xc54   :  { %v14285_v19 = vpop.permute.xlu1 %5392  ;;  %v14293_v61 = vpop.permute.xlu0 %5394 }
 0xc55   :  { %6504 = vrot.lane.b32.xlu1 %v14285_v19, %s12832_s20  ;;  %6428 = vrot.lane.b32.xlu0 %v14283_v60, %s12832_s20 }
 0xc58   :  { %v5441_v24 = vpop.permute.xlu1 %5440 }
 0xc59   :  { %12077 = vmatpush3.xpose.msk.msra.mxu1 %vm232_vm2, %v5441_v24  ;;  %5400 = vrot.lane.b32.xlu1 %v14291_v13, %s12826_s16 }
 0xc5a   :  { %6580 = vrot.lane.b32.xlu0 %v14293_v61, %s12832_s20  ;;  %12086 = vmatprep.subr.mxu1 %v12830_v26 }
 0xc5c   :  { %12079 = vmatmul.mubr.msk.f32.vlgmr.msra.gmra.mrb[34].mxu1 %vm232_vm2, %v5358_v16 }
 0xc5d   :  { %5409 = vrot.lane.b32.xlu1 %v14291_v13, %s12828_s18  ;;  %12088 = vmatprep.mubr.msk.f32.mxu1 %vm12831_vm1, %v12830_v26 }
 0xc5e   :  { %5397 = vrot.lane.b32.xlu0 %v14291_v13, %s12824_s14 }
 0xc61   :  { %5415 = vrot.lane.b32.xlu1 %v14291_v13, %s12829_s19 }
 0xc62   :  { %5403 = vrot.lane.b32.xlu0 %v14291_v13, %s12823_s30 }
 0xc66   :  { %5406 = vrot.lane.b32.xlu0 %v14291_v13, %s12825_s15 }
 0xc6a   :  { %5412 = vrot.lane.b32.xlu0 %v14291_v13, %s12827_s17 }
 0xcaf   :  { %v5593_v18 = vpop.permute.xlu1 %5592  ;;  %v5517_v53 = vpop.permute.xlu0 %5516 }
 0xcb0   :  { %12082 = vmatpush3.xpose.msk.msra.mxu0 %vm232_vm2, %v5517_v53  ;;  %12087 = vmatpush3.xpose.msk.msra.mxu1 %vm232_vm2, %v5593_v18 }
 0xcb1   :  { %12096 = vmatprep.subr.mxu1 %v12830_v26  ;;  %12091 = vmatprep.subr.mxu0 %v12830_v26 }
 0xcb3   :  { %12089 = vmatmul.mubr.msk.f32.vlgmr.msra.gmra.mrb[72].mxu1 %vm232_vm2, %v5370_v57  ;;  %v5745_v51 = vpop.permute.xlu1 %5744  ;;  %12084 = vmatmul.mubr.msk.f32.vlgmr.msra.gmra.mrb[34].mxu0 %vm232_vm2, %v5368_v55  ;;  %v5669_v0 = vpop.permute.xlu0 %5668 }
 0xcb4   :  { %12092 = vmatpush3.xpose.msk.msra.mxu0 %vm232_vm2, %v5669_v0  ;;  %12097 = vmatpush3.xpose.msk.msra.mxu1 %vm232_vm2, %v5745_v51 }
 0xcb5   :  { %12093 = vmatprep.mubr.msk.f32.mxu0 %vm12831_vm1, %v12830_v26  ;;  %12098 = vmatprep.mubr.msk.f32.mxu1 %vm12831_vm1, %v12830_v26 }
 0xcb6   :  { %12106 = vmatprep.subr.mxu1 %v12830_v26  ;;  %12101 = vmatprep.subr.mxu0 %v12830_v26 }
 0xcb7   :  { %12099 = vmatmul.mubr.msk.f32.vlgmr.msra.gmra.mrb[74].mxu1 %vm232_vm2, %v5374_v28  ;;  %v5897_v4 = vpop.permute.xlu1 %5896  ;;  %12094 = vmatmul.mubr.msk.f32.vlgmr.msra.gmra.mrb[72].mxu0 %vm232_vm2, %v5372_v42  ;;  %v5821_v63 = vpop.permute.xlu0 %5820 }
 0xcb8   :  { %12102 = vmatpush3.xpose.msk.msra.mxu0 %vm232_vm2, %v5821_v63  ;;  %12107 = vmatpush3.xpose.msk.msra.mxu1 %vm232_vm2, %v5897_v4 }
 0xcb9   :  { %12103 = vmatprep.mubr.msk.f32.mxu0 %vm12831_vm1, %v12830_v26  ;;  %12108 = vmatprep.mubr.msk.f32.mxu1 %vm12831_vm1, %v12830_v26 }
 0xcba   :  { %12116 = vmatprep.subr.mxu1 %v12830_v26  ;;  %12111 = vmatprep.subr.mxu0 %v12830_v26 }
 0xcbb   :  { %12109 = vmatmul.mubr.msk.f32.vlgmr.msra.gmra.mrb[76].mxu1 %vm232_vm2, %v5378_v25  ;;  %v6049_v49 = vpop.permute.xlu1 %6048  ;;  %12104 = vmatmul.mubr.msk.f32.vlgmr.msra.gmra.mrb[74].mxu0 %vm232_vm2, %v5376_v58  ;;  %v5973_v15 = vpop.permute.xlu0 %5972 }
 0xcbc   :  { %12112 = vmatpush3.xpose.msk.msra.mxu0 %vm232_vm2, %v5973_v15  ;;  %12117 = vmatpush3.xpose.msk.msra.mxu1 %vm232_vm2, %v6049_v49 }
 0xcbd   :  { %12113 = vmatprep.mubr.msk.f32.mxu0 %vm12831_vm1, %v12830_v26  ;;  %12118 = vmatprep.mubr.msk.f32.mxu1 %vm12831_vm1, %v12830_v26 }
 0xcbe   :  { %12126 = vmatprep.subr.mxu1 %v12830_v26  ;;  %12121 = vmatprep.subr.mxu0 %v12830_v26 }
 0xcbf   :  { %12119 = vmatmul.mubr.msk.f32.vlgmr.msra.gmra.mrb[78].mxu1 %vm232_vm2, %v14237_v8  ;;  %v6201_v62 = vpop.permute.xlu1 %6200  ;;  %12114 = vmatmul.mubr.msk.f32.vlgmr.msra.gmra.mrb[76].mxu0 %vm232_vm2, %v14261_v29  ;;  %v6125_v21 = vpop.permute.xlu0 %6124 }
 0xcc0   :  { %12122 = vmatpush3.xpose.msk.msra.mxu0 %vm232_vm2, %v6125_v21  ;;  %12127 = vmatpush3.xpose.msk.msra.mxu1 %vm232_vm2, %v6201_v62 }
 0xcc1   :  { %12123 = vmatprep.mubr.msk.f32.mxu0 %vm12831_vm1, %v12830_v26  ;;  %12128 = vmatprep.mubr.msk.f32.mxu1 %vm12831_vm1, %v12830_v26 }
 0xcc2   :  { %12136 = vmatprep.subr.mxu1 %v12830_v26  ;;  %12131 = vmatprep.subr.mxu0 %v12830_v26 }
 0xcc3   :  { %12129 = vmatmul.mubr.msk.f32.vlgmr.msra.gmra.mrb[80].mxu1 %vm232_vm2, %v14269_v50  ;;  %v6353_v5 = vpop.permute.xlu1 %6352  ;;  %12124 = vmatmul.mubr.msk.f32.vlgmr.msra.gmra.mrb[78].mxu0 %vm232_vm2, %v14263_v59  ;;  %v6277_v20 = vpop.permute.xlu0 %6276 }
 0xcc4   :  { %12132 = vmatpush3.xpose.msk.msra.mxu0 %vm232_vm2, %v6277_v20  ;;  %12137 = vmatpush3.xpose.msk.msra.mxu1 %vm232_vm2, %v6353_v5 }
 0xcc5   :  { %12133 = vmatprep.mubr.msk.f32.mxu0 %vm12831_vm1, %v12830_v26  ;;  %12138 = vmatprep.mubr.msk.f32.mxu1 %vm12831_vm1, %v12830_v26 }
 0xcc6   :  { %12146 = vmatprep.subr.mxu1 %v12830_v26  ;;  %12141 = vmatprep.subr.mxu0 %v12830_v26 }
 0xcc7   :  { %12139 = vmatmul.mubr.msk.f32.vlgmr.msra.gmra.mrb[82].mxu1 %vm232_vm2, %v14277_v12  ;;  %v6505_v23 = vpop.permute.xlu1 %6504  ;;  %12134 = vmatmul.mubr.msk.f32.vlgmr.msra.gmra.mrb[80].mxu0 %vm232_vm2, %v14271_v36  ;;  %v6429_v32 = vpop.permute.xlu0 %6428 }
 0xcc8   :  { %12142 = vmatpush3.xpose.msk.msra.mxu0 %vm232_vm2, %v6429_v32  ;;  %12147 = vmatpush3.xpose.msk.msra.mxu1 %vm232_vm2, %v6505_v23 }
 0xcc9   :  { %12143 = vmatprep.mubr.msk.f32.mxu0 %vm12831_vm1, %v12830_v26  ;;  %12148 = vmatprep.mubr.msk.f32.mxu1 %vm12831_vm1, %v12830_v26 }
 0xcca   :  { %12156 = vmatprep.subr.mxu1 %v12830_v26  ;;  %12151 = vmatprep.subr.mxu0 %v12830_v26 }
 0xccb   :  { %12149 = vmatmul.mubr.msk.f32.vlgmr.msra.gmra.mrb[84].mxu1 %vm232_vm2, %v14285_v19  ;;  %12144 = vmatmul.mubr.msk.f32.vlgmr.msra.gmra.mrb[82].mxu0 %vm232_vm2, %v14283_v60  ;;  %v14467_v23 = vpop.permute.xlu1 %5400 }
 0xccc   :  { %v6581_v1 = vpop.permute.xlu0 %6580  ;;  %12157 = vmatpush3.msra.mxu1 %v14291_v13  ;;  %12153 = vmatprep.mubr.msk.f32.mxu0 %vm12831_vm1, %v12830_v26 }
 0xccd   :  { %12152 = vmatpush3.xpose.msk.msra.mxu0 %vm232_vm2, %v6581_v1  ;;  %12158 = vmatprep.mubr.msk.f32.mxu1 %vm12831_vm1, %v12830_v26 }
 0xcce   :  { %12161 = vmatprep.subr.mxu0 %v12830_v26  ;;  %12166 = vmatprep.subr.mxu1 %v12830_v26 }
 0xccf   :  { %v14471_v32 = vpop.permute.xlu1 %5409 }
 0xcd0   :  { %12154 = vmatmul.mubr.msk.f32.vlgmr.msra.gmra.mrb[84].mxu0 %vm232_vm2, %v14293_v61  ;;  %v5398_v35 = vpop.permute.xlu0 %5397 }
 0xcd1   :  { %12162 = vmatpush3.msra.mxu0 %v5398_v35  ;;  %12163 = vmatprep.mubr.msk.f32.mxu0 %vm12831_vm1, %v12830_v26 }
 0xcd2   :  { %12171 = vmatprep.subr.mxu0 %v12830_v26 }
 0xcd3   :  { %v14477_v1 = vpop.permute.xlu1 %5415 }
 0xd2f   :  { %v14403_v30 = vpop.f32.mrb[34].mxu1 }
 0xd30   :  { %v12080_v38 = vpop.f32.mrb[35].mxu1  ;;  %v6656_v37 = vsel %vm232_vm2, %v14403_v30, -inf }
 0xd31   :  { %6657 = vmax.xlane.f32.xlu1 %v6656_v37 }
 0xd86   :  { %v14407_v34 = vpop.f32.mrb[34].mxu0  ;;  %v14409_v41 = vpop.f32.mrb[72].mxu1 }
 0xd87   :  { %v12085_v43 = vpop.f32.mrb[35].mxu0  ;;  %v12090_v44 = vpop.f32.mrb[73].mxu1  ;;  %v6659_v45 = vsel %vm232_vm2, %v14407_v34, -inf  ;;  %v6662_v9 = vsel %vm232_vm2, %v14409_v41, -inf }
 0xd88   :  { %6660 = vmax.xlane.f32.xlu0 %v6659_v45 }
 0xd8a   :  { %v14413_v39 = vpop.f32.mrb[72].mxu0  ;;  %v14415_v47 = vpop.f32.mrb[74].mxu1 }
 0xd8b   :  { %v12095_v48 = vpop.f32.mrb[73].mxu0  ;;  %v12100_v52 = vpop.f32.mrb[75].mxu1  ;;  %v6665_v16 = vsel %vm232_vm2, %v14413_v39, -inf  ;;  %v6668_v8 = vsel %vm232_vm2, %v14415_v47, -inf }
 0xd8c   :  { %6663 = vmax.xlane.f32.xlu0 %v6662_v9  ;;  %6666 = vmax.xlane.f32.xlu1 %v6665_v16  ;;  %v14488_v48 = vpop.permute.xlu0 %5403 }
 0xd8e   :  { %v14421_v22 = vpop.f32.mrb[74].mxu0  ;;  %v14423_v56 = vpop.f32.mrb[76].mxu1 }
 0xd8f   :  { %v12105_v54 = vpop.f32.mrb[75].mxu0  ;;  %v12110_v11 = vpop.f32.mrb[77].mxu1  ;;  %v6671_v57 = vsel %vm232_vm2, %v14421_v22, -inf  ;;  %v6674_v25 = vsel %vm232_vm2, %v14423_v56, -inf }
 0xd90   :  { %6669 = vmax.xlane.f32.xlu0 %v6668_v8  ;;  %6672 = vmax.xlane.f32.xlu1 %v6671_v57  ;;  %v14490_v52 = vpop.permute.xlu0 %5406 }
 0xd92   :  { %v14429_v55 = vpop.f32.mrb[76].mxu0  ;;  %v14431_v42 = vpop.f32.mrb[78].mxu1 }
 0xd93   :  { %v12115_v28 = vpop.f32.mrb[77].mxu0  ;;  %v12120_v58 = vpop.f32.mrb[79].mxu1  ;;  %v6677_v29 = vsel %vm232_vm2, %v14429_v55, -inf  ;;  %v6680_v60 = vsel %vm232_vm2, %v14431_v42, -inf }
 0xd94   :  { %6675 = vmax.xlane.f32.xlu0 %v6674_v25  ;;  %6678 = vmax.xlane.f32.xlu1 %v6677_v29 }
 0xd96   :  { %v14437_v59 = vpop.f32.mrb[78].mxu0  ;;  %v14439_v50 = vpop.f32.mrb[80].mxu1 }
 0xd97   :  { %v12125_v36 = vpop.f32.mrb[79].mxu0  ;;  %v12130_v12 = vpop.f32.mrb[81].mxu1  ;;  %v6683_v19 = vsel %vm232_vm2, %v14437_v59, -inf  ;;  %v6686_v53 = vsel %vm232_vm2, %v14439_v50, -inf }
 0xd98   :  { %6681 = vmax.xlane.f32.xlu0 %v6680_v60  ;;  %6684 = vmax.xlane.f32.xlu1 %v6683_v19 }
 0xd9a   :  { %v14445_v13 = vpop.f32.mrb[80].mxu0  ;;  %v14447_v24 = vpop.f32.mrb[82].mxu1 }
 0xd9b   :  { %v12135_v61 = vpop.f32.mrb[81].mxu0  ;;  %v12140_v18 = vpop.f32.mrb[83].mxu1  ;;  %v6689_v51 = vsel %vm232_vm2, %v14445_v13, -inf  ;;  %v6692_v15 = vsel %vm232_vm2, %v14447_v24, -inf }
 0xd9c   :  { %6687 = vmax.xlane.f32.xlu0 %v6686_v53  ;;  %6690 = vmax.xlane.f32.xlu1 %v6689_v51 }
 0xd9e   :  { %v14453_v0 = vpop.f32.mrb[82].mxu0  ;;  %v14455_v4 = vpop.f32.mrb[84].mxu1 }
 0xd9f   :  { %v12145_v63 = vpop.f32.mrb[83].mxu0  ;;  %v12150_v49 = vpop.f32.mrb[85].mxu1  ;;  %v6695_v62 = vsel %vm232_vm2, %v14453_v0, -inf  ;;  %v6698_v5 = vsel %vm232_vm2, %v14455_v4, -inf }
 0xda0   :  { %6693 = vmax.xlane.f32.xlu0 %v6692_v15  ;;  %6696 = vmax.xlane.f32.xlu1 %v6695_v62 }
 0xda3   :  { %v14461_v21 = vpop.f32.mrb[84].mxu0 }
 0xda4   :  { %v12155_v20 = vpop.f32.mrb[85].mxu0  ;;  %6699 = vmax.xlane.f32.xlu0 %v6698_v5  ;;  %v6701_v43 = vsel %vm232_vm2, %v14461_v21, -inf }
 0xdb1   :  { %5422 = vrot.lane.b32.xlu1 %v14231_v3, %s12826_s16  ;;  %s15468_s16 = smov 16  }
 0xdba   :  { %5419 = vrot.lane.b32.xlu0 %v14231_v3, %s12824_s14  ;;  %s15466_s14 = smov 8  }
 0xdbe   :  { %5425 = vrot.lane.b32.xlu0 %v14231_v3, %s12823_s30  ;;  %v6658_v35 = vpop.xlane.xlu1 %6657 }
 0xdbf   :  { %v6704_v38 = vsub.f32 %v14403_v30, %v6658_v35  ;;  %v14492_v30 = vpop.permute.xlu0 %5412 }
 0xdc1   :  { %v6720_v37 = vmul.f32 1.442695, %v6704_v38 }
 0xdc2   :  { %5431 = vrot.lane.b32.xlu0 %v14231_v3, %s12828_s18  ;;  %s15470_s18 = smov 32  }
 0xdc3   :  { %12700 = vpow2.f32 %v6720_v37 }
 0xdcd   :  { %v14482_v44 = vpop.eup %12700 }
 0xdce   :  { %v6752_v45 = vsel %vm232_vm2, %v14482_v44, 0.0 }
 0xdd5   :  { %6702 = vmax.xlane.f32.xlu1 %v6701_v43 }
 0xde1   :  { %6753 = vadd.xlane.f32.xlu0 %v6752_v45 }
 0xde6   :  { %5428 = vrot.lane.b32.xlu1 %v14231_v3, %s12825_s15  ;;  %s15467_s15 = smov 24  }
 0xe15   :  { %v6661_v9 = vpop.xlane.xlu0 %6660 }
 0xe16   :  { %v6705_v16 = vsub.f32 %v14407_v34, %v6661_v9 }
 0xe18   :  { %v6722_v54 = vmul.f32 1.442695, %v6705_v16 }
 0xe19   :  { %v6667_v11 = vpop.xlane.xlu1 %6666  ;;  %v6664_v8 = vpop.xlane.xlu0 %6663 }
 0xe1a   :  { %12702 = vpow2.f32 %v6722_v54  ;;  %v6707_v57 = vsub.f32 %v14413_v39, %v6667_v11  ;;  %v6706_v28 = vsub.f32 %v14409_v41, %v6664_v8 }
 0xe1c   :  { %v6726_v58 = vmul.f32 1.442695, %v6707_v57  ;;  %v6724_v25 = vmul.f32 1.442695, %v6706_v28 }
 0xe1d   :  { %v6673_v29 = vpop.xlane.xlu1 %6672  ;;  %v6670_v36 = vpop.xlane.xlu0 %6669 }
 0xe1e   :  { %12704 = vpow2.f32 %v6726_v58  ;;  %v6709_v12 = vsub.f32 %v14421_v22, %v6673_v29  ;;  %v6708_v60 = vsub.f32 %v14415_v47, %v6670_v36 }
 0xe1f   :  { %12706 = vpow2.f32 %v6724_v25 }
 0xe20   :  { %v6730_v19 = vmul.f32 1.442695, %v6709_v12  ;;  %v6728_v34 = vmul.f32 1.442695, %v6708_v60 }
 0xe21   :  { %v6679_v61 = vpop.xlane.xlu1 %6678  ;;  %v6676_v18 = vpop.xlane.xlu0 %6675 }
 0xe22   :  { %12708 = vpow2.f32 %v6730_v19  ;;  %v6711_v53 = vsub.f32 %v14429_v55, %v6679_v61  ;;  %v6710_v39 = vsub.f32 %v14423_v56, %v6676_v18 }
 0xe23   :  { %12710 = vpow2.f32 %v6728_v34 }
 0xe24   :  { %v14501_v41 = vpop.eup %12702  ;;  %v6734_v51 = vmul.f32 1.442695, %v6711_v53  ;;  %v6732_v63 = vmul.f32 1.442695, %v6710_v39 }
 0xe25   :  { %v6685_v49 = vpop.xlane.xlu1 %6684  ;;  %v6682_v15 = vpop.xlane.xlu0 %6681  ;;  %v6755_v47 = vsel %vm232_vm2, %v14501_v41, 0.0 }
 0xe26   :  { %12712 = vpow2.f32 %v6734_v51  ;;  %v6713_v22 = vsub.f32 %v14437_v59, %v6685_v49  ;;  %v6712_v62 = vsub.f32 %v14431_v42, %v6682_v15  ;;  %6756 = vadd.xlane.f32.xlu1 %v6755_v47 }
 0xe27   :  { %12714 = vpow2.f32 %v6732_v63 }
 0xe28   :  { %v14507_v55 = vpop.eup %12704  ;;  %v6738_v56 = vmul.f32 1.442695, %v6713_v22  ;;  %v6736_v5 = vmul.f32 1.442695, %v6712_v62 }
 0xe29   :  { %v14509_v20 = vpop.eup %12706  ;;  %v6691_v35 = vpop.xlane.xlu1 %6690  ;;  %v6761_v37 = vsel %vm232_vm2, %v14507_v55, 0.0 }
 0xe2a   :  { %v6688_v38 = vpop.xlane.xlu0 %6687  ;;  %12716 = vpow2.f32 %v6738_v56  ;;  %v6715_v43 = vsub.f32 %v14445_v13, %v6691_v35  ;;  %6762 = vadd.xlane.f32.xlu1 %v6761_v37  ;;  %v6758_v42 = vsel %vm232_vm2, %v14509_v20, 0.0 }
 0xe2b   :  { %v6714_v59 = vsub.f32 %v14439_v50, %v6688_v38  ;;  %12718 = vpow2.f32 %v6736_v5  ;;  %6759 = vadd.xlane.f32.xlu0 %v6758_v42 }
 0xe2c   :  { %v14517_v45 = vpop.eup %12708  ;;  %v6742_v9 = vmul.f32 1.442695, %v6715_v43 }
 0xe2d   :  { %v6740_v16 = vmul.f32 1.442695, %v6714_v59  ;;  %v14519_v54 = vpop.eup %12710  ;;  %v6697_v11 = vpop.xlane.xlu1 %6696  ;;  %v6767_v57 = vsel %vm232_vm2, %v14517_v45, 0.0 }
 0xe2e   :  { %v6694_v8 = vpop.xlane.xlu0 %6693  ;;  %12720 = vpow2.f32 %v6742_v9  ;;  %v6717_v50 = vsub.f32 %v14453_v0, %v6697_v11  ;;  %6768 = vadd.xlane.f32.xlu1 %v6767_v57  ;;  %v6764_v28 = vsel %vm232_vm2, %v14519_v54, 0.0 }
 0xe2f   :  { %v6716_v13 = vsub.f32 %v14447_v24, %v6694_v8  ;;  %12722 = vpow2.f32 %v6740_v16  ;;  %6765 = vadd.xlane.f32.xlu0 %v6764_v28 }
 0xe30   :  { %v14527_v58 = vpop.eup %12712  ;;  %v6746_v25 = vmul.f32 1.442695, %v6717_v50 }
 0xe31   :  { %v6744_v29 = vmul.f32 1.442695, %v6716_v13  ;;  %v14529_v36 = vpop.eup %12714  ;;  %v6773_v60 = vsel %vm232_vm2, %v14527_v58, 0.0  ;;  %v14566_v5 = vpop.permute.xlu1 %5422 }
 0xe32   :  { %v6700_v12 = vpop.xlane.xlu0 %6699  ;;  %12724 = vpow2.f32 %v6746_v25  ;;  %6774 = vadd.xlane.f32.xlu1 %v6773_v60  ;;  %v6770_v24 = vsel %vm232_vm2, %v14529_v36, 0.0 }
 0xe33   :  { %v6718_v0 = vsub.f32 %v14455_v4, %v6700_v12  ;;  %12726 = vpow2.f32 %v6744_v29  ;;  %6771 = vadd.xlane.f32.xlu0 %v6770_v24 }
 0xe34   :  { %v14536_v19 = vpop.eup %12716 }
 0xe35   :  { %v6748_v34 = vmul.f32 1.442695, %v6718_v0  ;;  %v14538_v61 = vpop.eup %12718  ;;  %v6779_v18 = vsel %vm232_vm2, %v14536_v19, 0.0 }
 0xe36   :  { %6780 = vadd.xlane.f32.xlu1 %v6779_v18  ;;  %v6776_v53 = vsel %vm232_vm2, %v14538_v61, 0.0  ;;  %v14568_v35 = vpop.permute.xlu0 %5419 }
 0xe37   :  { %12728 = vpow2.f32 %v6748_v34  ;;  %6777 = vadd.xlane.f32.xlu0 %v6776_v53 }
 0xe38   :  { %v14544_v4 = vpop.eup %12720 }
 0xe39   :  { %v14546_v39 = vpop.eup %12722  ;;  %v6785_v51 = vsel %vm232_vm2, %v14544_v4, 0.0 }
 0xe3a   :  { %6786 = vadd.xlane.f32.xlu1 %v6785_v51  ;;  %v6782_v63 = vsel %vm232_vm2, %v14546_v39, 0.0  ;;  %v14571_v43 = vpop.permute.xlu0 %5425 }
 0xe3b   :  { %6783 = vadd.xlane.f32.xlu0 %v6782_v63 }
 0xe3c   :  { %v14552_v49 = vpop.eup %12724 }
 0xe3d   :  { %v14554_v15 = vpop.eup %12726  ;;  %v6791_v47 = vsel %vm232_vm2, %v14552_v49, 0.0 }
 0xe3e   :  { %6792 = vadd.xlane.f32.xlu1 %v6791_v47  ;;  %v6788_v22 = vsel %vm232_vm2, %v14554_v15, 0.0  ;;  %v14573_v42 = vpop.permute.xlu0 %5431 }
 0xe3f   :  { %6789 = vadd.xlane.f32.xlu0 %v6788_v22 }
 0xe41   :  { %v14560_v62 = vpop.eup %12728 }
 0xe42   :  { %v6794_v56 = vsel %vm232_vm2, %v14560_v62, 0.0 }
 0xe43   :  { %6795 = vadd.xlane.f32.xlu1 %v6794_v56 }
 0xe55   :  { %5437 = vrot.lane.b32.xlu0 %v14231_v3, %s12829_s19 }
 0xe62   :  { %v6703_v38 = vpop.xlane.xlu1 %6702 }
 0xe63   :  { %v6719_v37 = vsub.f32 %v14461_v21, %v6703_v38 }
 0xe65   :  { %v6750_v59 = vmul.f32 1.442695, %v6719_v37 }
 0xe66   :  { %v14587_v21 = vpop.permute.xlu1 %5428 }
 0xe67   :  { %12730 = vpow2.f32 %v6750_v59 }
 0xe6e   :  { %v6754_v9 = vpop.xlane.xlu0 %6753 }
 0xe6f   :  { %12732 = vrcp.f32 %v6754_v9 }
 0xe71   :  { %v14575_v16 = vpop.eup %12730 }
 0xe72   :  { %v6797_v11 = vsel %vm232_vm2, %v14575_v16, 0.0 }
 0xe73   :  { %6798 = vadd.xlane.f32.xlu1 %v6797_v11 }
 0xe79   :  { %v12733_v8 = vpop.eup %12732 }
 0xe7a   :  { %v6801_v57 = vmul.f32 %v12733_v8, %v14482_v44 }
 0xe7c   :  { %12159 = vmatmul.mubr.msk.f32.vlgmr.msra.gmra.mrb[86].mxu1 %vm232_vm2, %v6801_v57 }
 0xe7d   :  { %12167 = vmatpush3.msra.mxu1 %v14467_v23  ;;  %12168 = vmatprep.mubr.msk.f32.mxu1 %vm12831_vm1, %v12830_v26 }
 0xe7e   :  { %12176 = vmatprep.subr.mxu1 %v12830_v26 }
 0xe84   :  { %5434 = vrot.lane.b32.xlu1 %v14231_v3, %s12827_s17  ;;  %s15469_s17 = smov 40  }
 0xeb3   :  { %v6757_v50 = vpop.xlane.xlu1 %6756 }
 0xeb4   :  { %12734 = vrcp.f32 %v6757_v50 }
 0xeb7   :  { %v6763_v13 = vpop.xlane.xlu1 %6762 }
 0xeb8   :  { %12736 = vrcp.f32 %v6763_v13  ;;  %v6760_v28 = vpop.xlane.xlu0 %6759 }
 0xeb9   :  { %12738 = vrcp.f32 %v6760_v28 }
 0xebb   :  { %v6769_v44 = vpop.xlane.xlu1 %6768 }
 0xebc   :  { %12740 = vrcp.f32 %v6769_v44  ;;  %v6766_v25 = vpop.xlane.xlu0 %6765 }
 0xebd   :  { %12742 = vrcp.f32 %v6766_v25 }
 0xebe   :  { %v12735_v23 = vpop.eup %12734 }
 0xebf   :  { %v6803_v29 = vmul.f32 %v12735_v23, %v14501_v41  ;;  %v6775_v12 = vpop.xlane.xlu1 %6774 }
 0xec0   :  { %12744 = vrcp.f32 %v6775_v12  ;;  %v6772_v60 = vpop.xlane.xlu0 %6771 }
 0xec1   :  { %12746 = vrcp.f32 %v6772_v60  ;;  %12164 = vmatmul.mubr.msk.f32.vlgmr.msra.gmra.mrb[86].mxu0 %vm232_vm2, %v6803_v29 }
 0xec2   :  { %v12737_v0 = vpop.eup %12736  ;;  %12172 = vmatpush3.msra.mxu0 %v14488_v48  ;;  %12173 = vmatprep.mubr.msk.f32.mxu0 %vm12831_vm1, %v12830_v26 }
 0xec3   :  { %v12739_v24 = vpop.eup %12738  ;;  %v6807_v34 = vmul.f32 %v12737_v0, %v14507_v55  ;;  %v6781_v18 = vpop.xlane.xlu1 %6780  ;;  %12181 = vmatprep.subr.mxu0 %v12830_v26 }
 0xec4   :  { %v6805_v41 = vmul.f32 %v12739_v24, %v14509_v20  ;;  %12748 = vrcp.f32 %v6781_v18  ;;  %v6778_v53 = vpop.xlane.xlu0 %6777 }
 0xec5   :  { %12750 = vrcp.f32 %v6778_v53  ;;  %12174 = vmatmul.mubr.msk.f32.vlgmr.msra.gmra.mrb[88].mxu0 %vm232_vm2, %v6807_v34 }
 0xec6   :  { %v12741_v51 = vpop.eup %12740  ;;  %12169 = vmatmul.mubr.msk.f32.vlgmr.msra.gmra.mrb[88].mxu1 %vm232_vm2, %v6805_v41  ;;  %12182 = vmatpush3.msra.mxu0 %v14471_v32 }
 0xec7   :  { %v12743_v48 = vpop.eup %12742  ;;  %v6811_v63 = vmul.f32 %v12741_v51, %v14517_v45  ;;  %12177 = vmatpush3.msra.mxu1 %v14490_v52  ;;  %v6787_v55 = vpop.xlane.xlu1 %6786  ;;  %12178 = vmatprep.mubr.msk.f32.mxu1 %vm12831_vm1, %v12830_v26  ;;  %v12496_v51 = vld [vmem:[%s15447_s4 + $0x20] sm:$0xff]  }
 0xec8   :  { %v6809_v20 = vmul.f32 %v12743_v48, %v14519_v54  ;;  %12752 = vrcp.f32 %v6787_v55  ;;  %v6784_v47 = vpop.xlane.xlu0 %6783  ;;  %12183 = vmatprep.mubr.msk.f32.mxu0 %vm12831_vm1, %v12830_v26  ;;  %12186 = vmatprep.subr.mxu1 %v12830_v26 }
 0xec9   :  { %12754 = vrcp.f32 %v6784_v47  ;;  %12191 = vmatprep.subr.mxu0 %v12830_v26  ;;  %12184 = vmatmul.mubr.msk.f32.vlgmr.msra.gmra.mrb[90].mxu0 %vm232_vm2, %v6811_v63 }
 0xeca   :  { %v12745_v32 = vpop.eup %12744  ;;  %12179 = vmatmul.mubr.msk.f32.vlgmr.msra.gmra.mrb[90].mxu1 %vm232_vm2, %v6809_v20  ;;  %12192 = vmatpush3.msra.mxu0 %v14477_v1 }
 0xecb   :  { %v12747_v52 = vpop.eup %12746  ;;  %v6815_v45 = vmul.f32 %v12745_v32, %v14527_v58  ;;  %12187 = vmatpush3.msra.mxu1 %v14492_v30  ;;  %v6793_v54 = vpop.xlane.xlu1 %6792  ;;  %12188 = vmatprep.mubr.msk.f32.mxu1 %vm12831_vm1, %v12830_v26 }
 0xecc   :  { %v6813_v22 = vmul.f32 %v12747_v52, %v14529_v36  ;;  %12756 = vrcp.f32 %v6793_v54  ;;  %v6790_v56 = vpop.xlane.xlu0 %6789  ;;  %12193 = vmatprep.mubr.msk.f32.mxu0 %vm12831_vm1, %v12830_v26  ;;  %12196 = vmatprep.subr.mxu1 %v12830_v26 }
 0xecd   :  { %12758 = vrcp.f32 %v6790_v56  ;;  %12201 = vmatprep.subr.mxu0 %v12830_v26  ;;  %12194 = vmatmul.mubr.msk.f32.vlgmr.msra.gmra.mrb[92].mxu0 %vm232_vm2, %v6815_v45 }
 0xece   :  { %v12749_v1 = vpop.eup %12748  ;;  %12189 = vmatmul.mubr.msk.f32.vlgmr.msra.gmra.mrb[92].mxu1 %vm232_vm2, %v6813_v22  ;;  %12202 = vmatpush3.msra.mxu0 %v14568_v35 }
 0xecf   :  { %v12751_v30 = vpop.eup %12750  ;;  %v6819_v58 = vmul.f32 %v12749_v1, %v14536_v19  ;;  %12197 = vmatpush3.msra.mxu1 %v14231_v3  ;;  %12198 = vmatprep.mubr.msk.f32.mxu1 %vm12831_vm1, %v12830_v26 }
 0xed0   :  { %v6817_v36 = vmul.f32 %v12751_v30, %v14538_v61  ;;  %12203 = vmatprep.mubr.msk.f32.mxu0 %vm12831_vm1, %v12830_v26  ;;  %12206 = vmatprep.subr.mxu1 %v12830_v26  ;;  %v5438_v37 = vpop.permute.xlu0 %5437 }
 0xed1   :  { %12211 = vmatprep.subr.mxu0 %v12830_v26  ;;  %12204 = vmatmul.mubr.msk.f32.vlgmr.msra.gmra.mrb[94].mxu0 %vm232_vm2, %v6819_v58  ;;  %v12497_v58 = vld [vmem:[%s15447_s4 + $0x28] sm:$0xff]  }
 0xed2   :  { %v12753_v35 = vpop.eup %12752  ;;  %12199 = vmatmul.mubr.msk.f32.vlgmr.msra.gmra.mrb[94].mxu1 %vm232_vm2, %v6817_v36  ;;  %12212 = vmatpush3.msra.mxu0 %v14571_v43  ;;  %v12498_v36 = vld [vmem:[%s15447_s4 + $0x30] sm:$0xff]  }
 0xed3   :  { %v12755_v3 = vpop.eup %12754  ;;  %v6823_v19 = vmul.f32 %v12753_v35, %v14544_v4  ;;  %12207 = vmatpush3.msra.mxu1 %v14566_v5  ;;  %12208 = vmatprep.mubr.msk.f32.mxu1 %vm12831_vm1, %v12830_v26 }
 0xed4   :  { %v6821_v61 = vmul.f32 %v12755_v3, %v14546_v39  ;;  %12213 = vmatprep.mubr.msk.f32.mxu0 %vm12831_vm1, %v12830_v26  ;;  %12216 = vmatprep.subr.mxu1 %v12830_v26  ;;  %v12499_v3 = vld [vmem:[%s15447_s4 + $0x38] sm:$0xff]  }
 0xed5   :  { %12221 = vmatprep.subr.mxu0 %v12830_v26  ;;  %12214 = vmatmul.mubr.msk.f32.vlgmr.msra.gmra.mrb[96].mxu0 %vm232_vm2, %v6823_v19 }
 0xed6   :  { %v12757_v38 = vpop.eup %12756  ;;  %12209 = vmatmul.mubr.msk.f32.vlgmr.msra.gmra.mrb[96].mxu1 %vm232_vm2, %v6821_v61  ;;  %12222 = vmatpush3.msra.mxu0 %v14573_v42 }
 0xed7   :  { %v12759_v4 = vpop.eup %12758  ;;  %v6827_v5 = vmul.f32 %v12757_v38, %v14552_v49  ;;  %12217 = vmatpush3.msra.mxu1 %v14587_v21  ;;  %12218 = vmatprep.mubr.msk.f32.mxu1 %vm12831_vm1, %v12830_v26  ;;  %v6796_v49 = vpop.xlane.xlu1 %6795 }
 0xed8   :  { %v6825_v39 = vmul.f32 %v12759_v4, %v14554_v15  ;;  %12223 = vmatprep.mubr.msk.f32.mxu0 %vm12831_vm1, %v12830_v26  ;;  %12231 = vmatprep.subr.mxu0 %v12830_v26  ;;  %12760 = vrcp.f32 %v6796_v49 }
 0xed9   :  { %12224 = vmatmul.mubr.msk.f32.vlgmr.msra.gmra.mrb[98].mxu0 %vm232_vm2, %v6827_v5  ;;  %12226 = vmatprep.subr.mxu1 %v12830_v26 }
 0xeda   :  { %12219 = vmatmul.mubr.msk.f32.vlgmr.msra.gmra.mrb[98].mxu1 %vm232_vm2, %v6825_v39  ;;  %12232 = vmatpush3.msra.mxu0 %v5438_v37 }
 0xedb   :  { %12228 = vmatprep.mubr.msk.f32.mxu1 %vm12831_vm1, %v12830_v26  ;;  %12233 = vmatprep.mubr.msk.f32.mxu0 %vm12831_vm1, %v12830_v26 }
 0xee2   :  { %v12761_v43 = vpop.eup %12760 }
 0xee3   :  { %v6829_v59 = vmul.f32 %v12761_v43, %v14560_v62 }
 0xf00   :  { %v6799_v15 = vpop.xlane.xlu1 %6798 }
 0xf01   :  { %12762 = vrcp.f32 %v6799_v15 }
 0xf04   :  { %v5435_v42 = vpop.permute.xlu1 %5434 }
 0xf05   :  { %12227 = vmatpush3.msra.mxu1 %v5435_v42 }
 0xf06   :  { %12229 = vmatmul.mubr.msk.f32.vlgmr.msra.gmra.mrb[100].mxu1 %vm232_vm2, %v6829_v59  ;;  %12236 = vmatprep.subr.bf16.mxu1 %v12830_v26 }
 0xf07   :  { %12244 = vmatprep.mubr.msk.bf16.mxu1 %vm12831_vm1, %v12830_v26  ;;  %12237 = vmatpush3.bf16.msra.mxu1 %v12496_v51 }
 0xf08   :  { %12238 = vmatprep.subr.bf16.mxu1 %v12830_v26 }
 0xf0b   :  { %v12763_v9 = vpop.eup %12762  ;;  %12239 = vmatpush3.bf16.msra.mxu1 %v12497_v58 }
 0xf0c   :  { %v6831_v11 = vmul.f32 %v12763_v9, %v14575_v16  ;;  %12240 = vmatprep.subr.bf16.mxu1 %v12830_v26 }
 0xf0e   :  { %12234 = vmatmul.mubr.msk.f32.vlgmr.msra.gmra.mrb[100].mxu0 %vm232_vm2, %v6831_v11 }
 0xf0f   :  { %8704 = vmatprep.mubr.bf16.mxu0 %v12822_v2  ;;  %12241 = vmatpush3.bf16.msra.mxu1 %v12498_v36 }
 0xf10   :  { %12242 = vmatprep.subr.bf16.mxu1 %v12830_v26 }
 0xf13   :  { %12243 = vmatpush3.bf16.msra.mxu1 %v12499_v3 }
 0xf4f   :  { %v14671_v8 = vpop.f32.mrb[86].mxu1 }
 0xf50   :  { %v12160_v57 = vpop.f32.mrb[87].mxu1 }
 0xf94   :  { %v6974_v62 = vpop.f32.mrb[86].mxu0 }
 0xf95   :  { %v12165_v21 = vpop.f32.mrb[87].mxu0 }
 0xf98   :  { %v7120_v50 = vpop.f32.mrb[88].mxu0 }
 0xf99   :  { %v7047_v13 = vpop.f32.mrb[88].mxu1  ;;  %v12175_v28 = vpop.f32.mrb[89].mxu0 }
 0xf9a   :  { %v12170_v44 = vpop.f32.mrb[89].mxu1 }
 0xf9c   :  { %v7266_v25 = vpop.f32.mrb[90].mxu0 }
 0xf9d   :  { %v7193_v23 = vpop.f32.mrb[90].mxu1  ;;  %v12185_v29 = vpop.f32.mrb[91].mxu0 }
 0xf9e   :  { %v12180_v12 = vpop.f32.mrb[91].mxu1 }
 0xfa0   :  { %v7412_v60 = vpop.f32.mrb[92].mxu0 }
 0xfa1   :  { %v7339_v0 = vpop.f32.mrb[92].mxu1  ;;  %v12195_v16 = vpop.f32.mrb[93].mxu0 }
 0xfa2   :  { %v12190_v24 = vpop.f32.mrb[93].mxu1 }
 0xfa4   :  { %v7558_v34 = vpop.f32.mrb[94].mxu0 }
 0xfa5   :  { %v7485_v18 = vpop.f32.mrb[94].mxu1  ;;  %v12305_v41 = vpack.i.bf16 %v7558_v34, %v6974_v62  ;;  %v12205_v53 = vpop.f32.mrb[95].mxu0 }
 0xfa6   :  { %v12200_v48 = vpop.f32.mrb[95].mxu1 }
 0xfa7   :  { %12306 = vrot.lane.b32.xlu1 %v12305_v41, %s15466_s14 }
 0xfa8   :  { %v7704_v63 = vpop.f32.mrb[96].mxu0 }
 0xfa9   :  { %v7631_v55 = vpop.f32.mrb[96].mxu1  ;;  %v12315_v20 = vpack.i.bf16 %v7704_v63, %v7120_v50  ;;  %v12215_v47 = vpop.f32.mrb[97].mxu0 }
 0xfaa   :  { %v12310_v32 = vpack.i.bf16 %v7631_v55, %v7047_v13  ;;  %v12210_v52 = vpop.f32.mrb[97].mxu1 }
 0xfab   :  { %12316 = vrot.lane.b32.xlu1 %v12315_v20, %s15467_s15 }
 0xfac   :  { %12311 = vrot.lane.b32.xlu0 %v12310_v32, %s15468_s16  ;;  %v7850_v45 = vpop.f32.mrb[98].mxu0  ;;  %v10879_v32 = vld [vmem:[%s15448_s5 + $0x1] ss:$0 sm:$0xff] }
 0xfad   :  { %v7777_v54 = vpop.f32.mrb[98].mxu1  ;;  %v12325_v22 = vpack.i.bf16 %v7850_v45, %v7266_v25  ;;  %v12225_v56 = vpop.f32.mrb[99].mxu0 }
 0xfae   :  { %v12320_v1 = vpack.i.bf16 %v7777_v54, %v7193_v23  ;;  %v12220_v30 = vpop.f32.mrb[99].mxu1 }
 0xfaf   :  { %12326 = vrot.lane.b32.xlu1 %v12325_v22, %s15469_s17 }
 0xfb0   :  { %12321 = vrot.lane.b32.xlu0 %v12320_v1, %s15470_s18 }
 0xfd9   :  { %v7923_v35 = vpop.f32.mrb[100].mxu1 }
 0xfda   :  { %v12330_v19 = vpack.i.bf16 %v7923_v35, %v7339_v0  ;;  %v12230_v61 = vpop.f32.mrb[101].mxu1 }
 0xfdc   :  { %12331 = vrot.lane.b32.xlu0 %v12330_v19, %s15471_s25 }
 0xfe1   :  { %v7996_v38 = vpop.f32.mrb[100].mxu0 }
 0xfe2   :  { %v12335_v4 = vpack.i.bf16 %v7996_v38, %v7412_v60  ;;  %v12235_v5 = vpop.f32.mrb[101].mxu0 }
 0xfe4   :  { %12336 = vrot.lane.b32.xlu1 %v12335_v4, %s15472_s29 }
0x1019   :  { %v12307_v39 = vpop.permute.xlu1 %12306 }
0x101a   :  { %v12309_v15 = vunpack.i.h.bf16 %v12307_v39  ;;  %v12308_v26 = vunpack.i.l.bf16 %v12307_v39 }
0x101c   :  { %v8028_v9 = vsel %vm232_vm2, %v14671_v8, %v12308_v26  ;;  %v8063_v11 = vsel %vm232_vm2, %v7485_v18, %v12309_v15  ;;  %v10894_v15 = vld [vmem:[%s15451_s8 + $0x240] sm:$0xff]  ;;  %v10887_v26 = vld [vmem:[%s15451_s8 + $0x208] sm:$0xff] }
0x101d   :  { %v12317_v49 = vpop.permute.xlu1 %12316 }
0x101e   :  { %v12312_v37 = vpop.permute.xlu0 %12311  ;;  %v12319_v57 = vunpack.i.h.bf16 %v12317_v49  ;;  %v12318_v62 = vunpack.i.l.bf16 %v12317_v49  ;;  %v10886_v49 = vld [vmem:[%s15451_s8 + $0x200] sm:$0xff] }
0x101f   :  { %v12314_v43 = vunpack.i.h.bf16 %v12312_v37  ;;  %v12313_v59 = vunpack.i.l.bf16 %v12312_v37 }
0x1021   :  { %v8064_v21 = vsel %vm2820_vm3, %v8063_v11, %v12314_v43  ;;  %v8029_v50 = vsel %vm2820_vm3, %v8028_v9, %v12313_v59  ;;  %v12327_v13 = vpop.permute.xlu1 %12326  ;;  %v10953_v43 = vcombine.high %v10886_v49, %v10894_v15  ;;  %v10895_v59 = vld [vmem:[%s15451_s8 + $0x248] sm:$0xff] }
0x1022   :  { %v12322_v42 = vpop.permute.xlu0 %12321  ;;  %v12329_v23 = vunpack.i.h.bf16 %v12327_v13  ;;  %v12328_v29 = vunpack.i.l.bf16 %v12327_v13  ;;  %v8030_v12 = vsel %vm2822_vm4, %v8029_v50, %v12318_v62  ;;  %v8065_v60 = vsel %vm2822_vm4, %v8064_v21, %v12319_v57  ;;  %v10902_v57 = vld [vmem:[%s15451_s8 + $0x280] sm:$0xff]  ;;  %v10903_v21 = vld [vmem:[%s15451_s8 + $0x288] sm:$0xff] }
0x1023   :  { %v12324_v28 = vunpack.i.h.bf16 %v12322_v42  ;;  %v12323_v44 = vunpack.i.l.bf16 %v12322_v42  ;;  %v10952_v42 = vcombine.low %v10886_v49, %v10894_v15  ;;  %v10954_v9 = vcombine.low %v10887_v26, %v10895_v59  ;;  %8672 = vmatprep.subr.bf16.mxu0 %v10953_v43  ;;  %v10910_v62 = vld [vmem:[%s15451_s8 + $0x2c0] sm:$0xff]  ;;  %v10911_v13 = vld [vmem:[%s15451_s8 + $0x2c8] sm:$0xff]  ;;  %v10912_v43 = vld [vmem:[%s15451_s8 + $0x2d0] sm:$0xff] }
0x1024   :  { %v10955_v11 = vcombine.high %v10887_v26, %v10895_v59  ;;  %v10969_v50 = vcombine.high %v10902_v57, %v10910_v62  ;;  %v10904_v26 = vld [vmem:[%s15451_s8 + $0x290] sm:$0xff]  ;;  %v10905_v59 = vld [vmem:[%s15451_s8 + $0x298] sm:$0xff] }
0x1025   :  { %v8031_v8 = vsel %vm2824_vm5, %v8030_v12, %v12323_v44  ;;  %v8066_v0 = vsel %vm2824_vm5, %v8065_v60, %v12324_v28  ;;  %8673 = vmatpush1.bf16.msra.mxu0 %v10952_v42  ;;  %v10968_v28 = vcombine.low %v10902_v57, %v10910_v62  ;;  %v10970_v44 = vcombine.low %v10903_v21, %v10911_v13  ;;  %v10919_v12 = vld [vmem:[%s15451_s8 + $0x308] sm:$0xff]  ;;  %v10920_v62 = vld [vmem:[%s15451_s8 + $0x310] sm:$0xff] }
0x1026   :  { %v8032_v18 = vsel %vm2826_vm6, %v8031_v8, %v12328_v29  ;;  %v8067_v41 = vsel %vm2826_vm6, %v8066_v0, %v12329_v23  ;;  %8715 = vmatprep.subr.bf16.mxu1 %v10955_v11  ;;  %8674 = vmatprep.subr.bf16.mxu0 %v10969_v50  ;;  %v10918_v23 = vld [vmem:[%s15451_s8 + $0x300] sm:$0xff]  ;;  %v10927_v8 = vld [vmem:[%s15451_s8 + $0x348] sm:$0xff]  ;;  %v10973_v11 = vcombine.high %v10904_v26, %v10912_v43  ;;  %v10921_v50 = vld [vmem:[%s15451_s8 + $0x318] sm:$0xff] }
0x1027   :  { %v10926_v29 = vld [vmem:[%s15451_s8 + $0x340] sm:$0xff] }
0x1028   :  { %v10985_v60 = vcombine.high %v10918_v23, %v10926_v29  ;;  %v10984_v0 = vcombine.low %v10918_v23, %v10926_v29  ;;  %v10936_v29 = vld [vmem:[%s15451_s8 + $0x390] sm:$0xff] }
0x1029   :  { %8675 = vmatpush1.bf16.msra.mxu0 %v10968_v28  ;;  %v10972_v28 = vcombine.low %v10904_v26, %v10912_v43 }
0x102a   :  { %8676 = vmatprep.subr.bf16.mxu0 %v10985_v60  ;;  %v10937_v60 = vld [vmem:[%s15451_s8 + $0x398] sm:$0xff] }
0x102d   :  { %8677 = vmatpush1.bf16.msra.mxu0 %v10984_v0 }
0x104e   :  { %v12332_v25 = vpop.permute.xlu0 %12331 }
0x104f   :  { %v12334_v16 = vunpack.i.h.bf16 %v12332_v25  ;;  %v12333_v24 = vunpack.i.l.bf16 %v12332_v25  ;;  %v10971_v25 = vcombine.high %v10903_v21, %v10911_v13  ;;  %v10928_v21 = vld [vmem:[%s15451_s8 + $0x350] sm:$0xff]  ;;  %v10929_v13 = vld [vmem:[%s15451_s8 + $0x358] sm:$0xff] }
0x1050   :  { %v10991_v23 = vcombine.high %v10921_v50, %v10929_v13  ;;  %v10988_v0 = vcombine.low %v10920_v62, %v10928_v21 }
0x1051   :  { %v8033_v48 = vsel %vm2828_vm7, %v8032_v18, %v12333_v24  ;;  %v8068_v63 = vsel %vm2828_vm7, %v8067_v41, %v12334_v16  ;;  %v10986_v16 = vcombine.low %v10919_v12, %v10927_v8  ;;  %v10987_v24 = vcombine.high %v10919_v12, %v10927_v8  ;;  %v10942_v18 = vld [vmem:[%s15451_s8 + $0x3c0] sm:$0xff]  ;;  %v10935_v41 = vld [vmem:[%s15451_s8 + $0x388] sm:$0xff]  ;;  %v10944_v12 = vld [vmem:[%s15451_s8 + $0x3d0] sm:$0xff] }
0x1052   :  { %v10945_v8 = vld [vmem:[%s15451_s8 + $0x3d8] sm:$0xff] }
0x1056   :  { %v12337_v34 = vpop.permute.xlu1 %12336 }
0x1057   :  { %v12339_v53 = vunpack.i.h.bf16 %v12337_v34  ;;  %v12338_v51 = vunpack.i.l.bf16 %v12337_v34  ;;  %v10934_v34 = vld [vmem:[%s15451_s8 + $0x380] sm:$0xff] }
0x1059   :  { %v8034_v55 = vsel %vm2830_vm8, %v8033_v48, %v12338_v51  ;;  %v8069_v20 = vsel %vm2830_vm8, %v8068_v63, %v12339_v53  ;;  %v11001_v53 = vcombine.high %v10934_v34, %v10942_v18  ;;  %v10943_v51 = vld [vmem:[%s15451_s8 + $0x3c8] sm:$0xff]  ;;  %v11000_v48 = vcombine.low %v10934_v34, %v10942_v18  ;;  %v10890_v18 = vld [vmem:[%s15451_s8 + $0x220] sm:$0xff] }
0x105a   :  { %v8070_v47 = vpack.c.bf16 %v8069_v20, %v8034_v55  ;;  %v11002_v63 = vcombine.low %v10935_v41, %v10943_v51  ;;  %v11003_v55 = vcombine.high %v10935_v41, %v10943_v51  ;;  %v10888_v20 = vld [vmem:[%s15451_s8 + $0x210] sm:$0xff]  ;;  %v11007_v34 = vcombine.high %v10937_v60, %v10945_v8  ;;  %v10898_v41 = vld [vmem:[%s15451_s8 + $0x260] sm:$0xff]  ;;  %v10899_v51 = vld [vmem:[%s15451_s8 + $0x268] sm:$0xff] }
0x105b   :  { %8678 = vmatprep.subr.bf16.mxu0 %v11001_v53  ;;  %v10891_v53 = vld [vmem:[%s15451_s8 + $0x228] sm:$0xff] }
0x105c   :  { %12245 = vmatmul.mubr.msk.bf16.vlgmr.msra.gmra.mrb[104].mxu1 %vm109_vm0, %v8070_v47  ;;  %8679 = vmatpush1.bf16.msra.mxu0 %v11000_v48  ;;  %v10896_v47 = vld [vmem:[%s15451_s8 + $0x250] sm:$0xff]  ;;  %v11004_v48 = vcombine.low %v10936_v29, %v10944_v12 }
0x105d   :  { %8747 = vmatprep.mubr.bf16.mxu1 %v12822_v2  ;;  %8716 = vmatpush1.bf16.msra.mxu1 %v10954_v9 }
0x105e   :  { %8717 = vmatprep.subr.bf16.mxu1 %v10971_v25  ;;  %v10989_v25 = vcombine.high %v10920_v62, %v10928_v21 }
0x1061   :  { %8718 = vmatpush1.bf16.msra.mxu1 %v10970_v44 }
0x1062   :  { %8719 = vmatprep.subr.bf16.mxu1 %v10987_v24  ;;  %v11005_v24 = vcombine.high %v10936_v29, %v10944_v12 }
0x1065   :  { %8720 = vmatpush1.bf16.msra.mxu1 %v10986_v16  ;;  %v10990_v16 = vcombine.low %v10921_v50, %v10929_v13 }
0x1066   :  { %8721 = vmatprep.subr.bf16.mxu1 %v11003_v55  ;;  %v10961_v55 = vcombine.high %v10890_v18, %v10898_v41 }
0x1069   :  { %8722 = vmatpush1.bf16.msra.mxu1 %v11002_v63  ;;  %v11006_v63 = vcombine.low %v10937_v60, %v10945_v8 }
0x112f   :  { %v8149_v52 = vpop.f32.mrb[104].mxu1 }
0x1130   :  { %v8150_v45 = vadd.f32 %v10879_v32, %v8149_v52  ;;  %v12246_v54 = vpop.f32.mrb[105].mxu1  ;;  %v10956_v52 = vcombine.low %v10888_v20, %v10896_v47 }
0x1131   :  { %v8152_v22 = vpop.f32.mrb[106].mxu1  ;;  %v10897_v54 = vld [vmem:[%s15451_s8 + $0x258] sm:$0xff] }
0x1132   :  { %v8158_v56 = vadd.f32 %v8150_v45, %v14215_v40  ;;  %v8153_v1 = vadd.f32 %v10879_v32, %v8152_v22  ;;  %v12247_v30 = vpop.f32.mrb[107].mxu1  ;;  %v10889_v32 = vld [vmem:[%s15451_s8 + $0x218] sm:$0xff]  ;;  %v10957_v45 = vcombine.high %v10888_v20, %v10896_v47  ;;  %v10963_v20 = vcombine.high %v10891_v53, %v10899_v51  ;;  %v10906_v47 = vld [vmem:[%s15451_s8 + $0x2a0] sm:$0xff] }
0x1133   :  { %v10958_v22 = vcombine.low %v10889_v32, %v10897_v54 }
0x1134   :  { %v8159_v58 = vadd.f32 %v8153_v1, %v14217_v46  ;;  %v8160_v36 = vsel %vm109_vm0, %v8158_v56, 0.0  ;;  %8758 = vmatprep.subr.bf16.mxu0 %v10957_v45  ;;  %v10915_v45 = vld [vmem:[%s15451_s8 + $0x2e8] sm:$0xff] }
0x1135   :  { %8161 = vadd.xlane.f32.xlu0 %v8160_v36 }
0x1136   :  { %v8163_v35 = vsel %vm109_vm0, %v8159_v58, 0.0 }
0x1137   :  { %8164 = vadd.xlane.f32.xlu1 %v8163_v35 }
0x11c2   :  { %v8162_v3 = vpop.xlane.xlu0 %8161 }
0x11c3   :  { %v8166_v19 = vmul.f32 0.015625, %v8162_v3 }
0x11c4   :  { %v8165_v61 = vpop.xlane.xlu1 %8164 }
0x11c5   :  { %v14719_v38 = vsub.f32 %v8158_v56, %v8166_v19  ;;  %v8167_v4 = vmul.f32 0.015625, %v8165_v61  ;;  %v10959_v56 = vcombine.high %v10889_v32, %v10897_v54  ;;  %v10885_v19 = vld [vmem:[%s15449_s6 + $0x2] sm:$0x3]  ;;  %v10960_v54 = vcombine.low %v10890_v18, %v10898_v41 }
0x11c6   :  { %v10914_v32 = vld [vmem:[%s15451_s8 + $0x2e0] sm:$0xff] }
0x11c7   :  { %v14721_v5 = vsub.f32 %v8159_v58, %v8167_v4  ;;  %v8170_v40 = vmul.f32 %v14719_v38, %v14719_v38  ;;  %8801 = vmatprep.subr.bf16.mxu1 %v10959_v56  ;;  %v8189_v4 = vrot.slane %v10885_v19, %v12949_v14  ;;  %v10977_v56 = vcombine.high %v10906_v47, %v10914_v32 }
0x11c9   :  { %v8172_v39 = vsel %vm109_vm0, %v8170_v40, 0.0  ;;  %v8171_v46 = vmul.f32 %v14721_v5, %v14721_v5 }
0x11ca   :  { %8173 = vadd.xlane.f32.xlu0 %v8172_v39 }
0x11cb   :  { %v8175_v37 = vsel %vm109_vm0, %v8171_v46, 0.0  ;;  %v8195_v46 = vrot.slane %v10885_v19, %v12956_v17 }
0x11ce   :  { %8176 = vadd.xlane.f32.xlu0 %v8175_v37 }
0x1257   :  { %v8174_v1 = vpop.xlane.xlu0 %8173 }
0x1258   :  { %v8178_v30 = vmul.f32 0.015625, %v8174_v1 }
0x125a   :  { %v8180_v58 = vadd.f32 1e-05, %v8178_v30  ;;  %v10922_v30 = vld [vmem:[%s15451_s8 + $0x320] sm:$0xff] }
0x125b   :  { %v8177_v36 = vpop.xlane.xlu0 %8176 }
0x125c   :  { %12764 = vrsqrt.f32 %v8180_v58  ;;  %v8179_v35 = vmul.f32 0.015625, %v8177_v36  ;;  %v10930_v58 = vld [vmem:[%s15451_s8 + $0x360] sm:$0xff]  ;;  %v10923_v36 = vld [vmem:[%s15451_s8 + $0x328] sm:$0xff] }
0x125e   :  { %v8181_v3 = vadd.f32 1e-05, %v8179_v35  ;;  %v10931_v35 = vld [vmem:[%s15451_s8 + $0x368] sm:$0xff] }
0x1260   :  { %12766 = vrsqrt.f32 %v8181_v3  ;;  %v10976_v3 = vcombine.low %v10906_v47, %v10914_v32 }
0x1266   :  { %v12765_v61 = vpop.eup %12764 }
0x1267   :  { %v8184_v40 = vmul.f32 %v12765_v61, %v14719_v38  ;;  %v10913_v38 = vld [vmem:[%s15451_s8 + $0x2d8] sm:$0xff]  ;;  %v10993_v61 = vcombine.high %v10922_v30, %v10930_v58 }
0x1268   :  { %v10975_v57 = vcombine.high %v10905_v59, %v10913_v38  ;;  %v10974_v44 = vcombine.low %v10905_v59, %v10913_v38  ;;  %v10892_v59 = vld [vmem:[%s15451_s8 + $0x230] sm:$0xff] }
0x1269   :  { %v8190_v37 = vmul.f32 %v8189_v4, %v8184_v40  ;;  %v10938_v40 = vld [vmem:[%s15451_s8 + $0x3a0] sm:$0xff]  ;;  %v10900_v38 = vld [vmem:[%s15451_s8 + $0x270] sm:$0xff] }
0x126a   :  { %v12767_v39 = vpop.eup %12766  ;;  %v10965_v50 = vcombine.high %v10892_v59, %v10900_v38  ;;  %v10964_v29 = vcombine.low %v10892_v59, %v10900_v38  ;;  %v12520_v59 = vld [vmem:[%s15453_s10 + $0x468] sm:$0xff]  }
0x126b   :  { %v8185_v49 = vmul.f32 %v12767_v39, %v14721_v5  ;;  %v14808_v42 = vadd.f32 %v8195_v46, %v8190_v37  ;;  %v10946_v39 = vld [vmem:[%s15451_s8 + $0x3e0] sm:$0xff]  ;;  %v10947_v37 = vld [vmem:[%s15451_s8 + $0x3e8] sm:$0xff] }
0x126c   :  { %v11009_v26 = vcombine.high %v10938_v40, %v10946_v39  ;;  %v11008_v62 = vcombine.low %v10938_v40, %v10946_v39  ;;  %v12512_v40 = vld [vmem:[%s15453_s10 + $0x458] sm:$0xff]   ;;  %v12521_v38 = vld [vmem:[%s15453_s10 + $0x4e8] sm:$0xff]  }
0x126d   :  { %v8191_v15 = vmul.f32 %v8189_v4, %v8185_v49  ;;  %v10995_v4 = vcombine.high %v10923_v36, %v10931_v35  ;;  %v10992_v49 = vcombine.low %v10922_v30, %v10930_v58  ;;  %v12503_v30 = vld [vmem:[%s15453_s10 + $0x480] sm:$0xff]   ;;  %v12504_v58 = vld [vmem:[%s15453_s10 + $0x448] sm:$0xff]   ;;  %v12513_v39 = vld [vmem:[%s15453_s10 + $0x4d8] sm:$0xff]  }
0x126f   :  { %v14810_v5 = vadd.f32 %v8195_v46, %v8191_v15  ;;  %v10939_v46 = vld [vmem:[%s15451_s8 + $0x3a8] sm:$0xff]  ;;  %v10994_v15 = vcombine.low %v10923_v36, %v10931_v35 }
0x1270   :  { %v11011_v43 = vcombine.high %v10939_v46, %v10947_v37  ;;  %v11010_v21 = vcombine.low %v10939_v46, %v10947_v37  ;;  %v12505_v36 = vld [vmem:[%s15453_s10 + $0x4c8] sm:$0xff]   ;;  %v12514_v46 = vld [vmem:[%s15453_s10 + $0x418] sm:$0xff]  }
0x1271   :  { %v14814_v9 = vpack.c.bf16 %v14810_v5, %v14808_v42  ;;  %v12506_v35 = vld [vmem:[%s15453_s10 + $0x408] sm:$0xff]   ;;  %v12515_v37 = vld [vmem:[%s15453_s10 + $0x498] sm:$0xff]  }
0x1273   :  { %11016 = vmatmul.mubr.msk.bf16.vlgmr.msra.gmra.mrb[104].mxu0 %vm109_vm0, %v14814_v9  ;;  %11017 = vmatmul.mubr.msk.bf16.vlgmr.msra.gmra.mrb[108].mxu1 %vm109_vm0, %v14814_v9 }
0x1274   :  { %8759 = vmatpush1.bf16.msra.mxu0 %v10956_v52  ;;  %8802 = vmatpush1.bf16.msra.mxu1 %v10958_v22  ;;  %v10907_v52 = vld [vmem:[%s15451_s8 + $0x2a8] sm:$0xff]  ;;  %v10962_v22 = vcombine.low %v10891_v53, %v10899_v51 }
0x1275   :  { %8760 = vmatprep.subr.bf16.mxu0 %v10973_v11  ;;  %8803 = vmatprep.subr.bf16.mxu1 %v10975_v57  ;;  %v10979_v1 = vcombine.high %v10907_v52, %v10915_v45  ;;  %v10978_v19 = vcombine.low %v10907_v52, %v10915_v45  ;;  %v10893_v11 = vld [vmem:[%s15451_s8 + $0x238] sm:$0xff] }
0x1276   :  { %8790 = vmatprep.mubr.bf16.mxu0 %v12822_v2  ;;  %8833 = vmatprep.mubr.bf16.mxu1 %v12822_v2  ;;  %v10901_v57 = vld [vmem:[%s15451_s8 + $0x278] sm:$0xff] }
0x1277   :  { %v10967_v13 = vcombine.high %v10893_v11, %v10901_v57  ;;  %v10966_v12 = vcombine.low %v10893_v11, %v10901_v57  ;;  %v12522_v11 = vld [vmem:[%s15453_s10 + $0x428] sm:$0xff]  }
0x1278   :  { %8761 = vmatpush1.bf16.msra.mxu0 %v10972_v28  ;;  %8804 = vmatpush1.bf16.msra.mxu1 %v10974_v44  ;;  %v10908_v28 = vld [vmem:[%s15451_s8 + $0x2b0] sm:$0xff]  ;;  %v12523_v57 = vld [vmem:[%s15453_s10 + $0x4a8] sm:$0xff]  }
0x1279   :  { %8762 = vmatprep.subr.bf16.mxu0 %v10989_v25  ;;  %8805 = vmatprep.subr.bf16.mxu1 %v10991_v23  ;;  %v10916_v44 = vld [vmem:[%s15451_s8 + $0x2f0] sm:$0xff]  ;;  %v10909_v25 = vld [vmem:[%s15451_s8 + $0x2b8] sm:$0xff] }
0x127a   :  { %v10917_v23 = vld [vmem:[%s15451_s8 + $0x2f8] sm:$0xff]  ;;  %v10981_v60 = vcombine.high %v10908_v28, %v10916_v44  ;;  %v10980_v18 = vcombine.low %v10908_v28, %v10916_v44 }
0x127b   :  { %v10983_v8 = vcombine.high %v10909_v25, %v10917_v23  ;;  %v10982_v41 = vcombine.low %v10909_v25, %v10917_v23  ;;  %v12528_v28 = vld [vmem:[%s15453_s10 + $0x478] sm:$0xff]  }
0x127c   :  { %8763 = vmatpush1.bf16.msra.mxu0 %v10988_v0  ;;  %8806 = vmatpush1.bf16.msra.mxu1 %v10990_v16  ;;  %v10924_v0 = vld [vmem:[%s15451_s8 + $0x330] sm:$0xff]  ;;  %v12529_v44 = vld [vmem:[%s15453_s10 + $0x4f8] sm:$0xff]  }
0x127d   :  { %8764 = vmatprep.subr.bf16.mxu0 %v11005_v24  ;;  %8807 = vmatprep.subr.bf16.mxu1 %v11007_v34  ;;  %v10932_v16 = vld [vmem:[%s15451_s8 + $0x370] sm:$0xff]  ;;  %v10925_v24 = vld [vmem:[%s15451_s8 + $0x338] sm:$0xff] }
0x127e   :  { %v10933_v34 = vld [vmem:[%s15451_s8 + $0x378] sm:$0xff]  ;;  %v10997_v53 = vcombine.high %v10924_v0, %v10932_v16  ;;  %v10996_v47 = vcombine.low %v10924_v0, %v10932_v16 }
0x127f   :  { %v10999_v51 = vcombine.high %v10925_v24, %v10933_v34  ;;  %v10998_v32 = vcombine.low %v10925_v24, %v10933_v34  ;;  %v12530_v25 = vld [vmem:[%s15453_s10 + $0x438] sm:$0xff]  }
0x1280   :  { %8765 = vmatpush1.bf16.msra.mxu0 %v11004_v48  ;;  %8808 = vmatpush1.bf16.msra.mxu1 %v11006_v63  ;;  %v10940_v48 = vld [vmem:[%s15451_s8 + $0x3b0] sm:$0xff]  ;;  %v12531_v23 = vld [vmem:[%s15453_s10 + $0x4b8] sm:$0xff]  }
0x1281   :  { %8844 = vmatprep.subr.bf16.mxu0 %v10961_v55  ;;  %8887 = vmatprep.subr.bf16.mxu1 %v10963_v20  ;;  %v10948_v63 = vld [vmem:[%s15451_s8 + $0x3f0] sm:$0xff]  ;;  %v10941_v55 = vld [vmem:[%s15451_s8 + $0x3b8] sm:$0xff] }
0x1282   :  { %v10949_v20 = vld [vmem:[%s15451_s8 + $0x3f8] sm:$0xff]  ;;  %v11013_v52 = vcombine.high %v10940_v48, %v10948_v63 }
0x1283   :  { %11018 = vmatmul.mubr.msk.bf16.vlgmr.msra.gmra.mrb[108].mxu0 %vm109_vm0, %v14814_v9  ;;  %11019 = vmatmul.mubr.msk.bf16.vlgmr.msra.gmra.mrb[112].mxu1 %vm109_vm0, %v14814_v9  ;;  %v11015_v45 = vcombine.high %v10941_v55, %v10949_v20 }
0x1284   :  { %8845 = vmatpush1.bf16.msra.mxu0 %v10960_v54  ;;  %8888 = vmatpush1.bf16.msra.mxu1 %v10962_v22  ;;  %v11012_v54 = vcombine.low %v10940_v48, %v10948_v63  ;;  %v11014_v22 = vcombine.low %v10941_v55, %v10949_v20 }
0x1285   :  { %8846 = vmatprep.subr.bf16.mxu0 %v10977_v56  ;;  %8889 = vmatprep.subr.bf16.mxu1 %v10979_v1  ;;  %v12500_v56 = vld [vmem:[%s15453_s10 + $0x440] sm:$0xff]  }
0x1286   :  { %8876 = vmatprep.mubr.bf16.mxu0 %v12822_v2  ;;  %8919 = vmatprep.mubr.bf16.mxu1 %v12822_v2  ;;  %v12502_v1 = vld [vmem:[%s15453_s10 + $0x400] sm:$0xff]  }
0x1288   :  { %8847 = vmatpush1.bf16.msra.mxu0 %v10976_v3  ;;  %8890 = vmatpush1.bf16.msra.mxu1 %v10978_v19  ;;  %v12507_v3 = vld [vmem:[%s15453_s10 + $0x488] sm:$0xff]   ;;  %v12508_v19 = vld [vmem:[%s15453_s10 + $0x450] sm:$0xff]  }
0x1289   :  { %8848 = vmatprep.subr.bf16.mxu0 %v10993_v61  ;;  %8891 = vmatprep.subr.bf16.mxu1 %v10995_v4  ;;  %v12510_v61 = vld [vmem:[%s15453_s10 + $0x410] sm:$0xff]  }
0x128a   :  { %v12511_v4 = vld [vmem:[%s15453_s10 + $0x490] sm:$0xff]  }
0x128c   :  { %8849 = vmatpush1.bf16.msra.mxu0 %v10992_v49  ;;  %8892 = vmatpush1.bf16.msra.mxu1 %v10994_v15  ;;  %v12516_v49 = vld [vmem:[%s15453_s10 + $0x460] sm:$0xff]  }
0x128d   :  { %8850 = vmatprep.subr.bf16.mxu0 %v11009_v26  ;;  %8893 = vmatprep.subr.bf16.mxu1 %v11011_v43  ;;  %v12517_v15 = vld [vmem:[%s15453_s10 + $0x4e0] sm:$0xff]  }
0x128e   :  { %v12518_v26 = vld [vmem:[%s15453_s10 + $0x420] sm:$0xff]  }
0x128f   :  { %v12519_v43 = vld [vmem:[%s15453_s10 + $0x4a0] sm:$0xff]  }
0x1290   :  { %8851 = vmatpush1.bf16.msra.mxu0 %v11008_v62  ;;  %8894 = vmatpush1.bf16.msra.mxu1 %v11010_v21  ;;  %v12524_v62 = vld [vmem:[%s15453_s10 + $0x470] sm:$0xff]  }
0x1291   :  { %8930 = vmatprep.subr.bf16.mxu0 %v10965_v50  ;;  %8973 = vmatprep.subr.bf16.mxu1 %v10967_v13  ;;  %v12525_v21 = vld [vmem:[%s15453_s10 + $0x4f0] sm:$0xff]  }
0x1292   :  { %v12526_v50 = vld [vmem:[%s15453_s10 + $0x430] sm:$0xff]  }
0x1293   :  { %11020 = vmatmul.mubr.msk.bf16.vlgmr.msra.gmra.mrb[112].mxu0 %vm109_vm0, %v14814_v9  ;;  %11021 = vmatmul.mubr.msk.bf16.vlgmr.msra.gmra.mrb[116].mxu1 %vm109_vm0, %v14814_v9  ;;  %v12527_v13 = vld [vmem:[%s15453_s10 + $0x4b0] sm:$0xff]  }
0x1294   :  { %8931 = vmatpush1.bf16.msra.mxu0 %v10964_v29  ;;  %8974 = vmatpush1.bf16.msra.mxu1 %v10966_v12  ;;  %v12532_v29 = vld [vmem:[%s15453_s10 + $0x540] sm:$0xff]  }
0x1295   :  { %8932 = vmatprep.subr.bf16.mxu0 %v10981_v60  ;;  %8975 = vmatprep.subr.bf16.mxu1 %v10983_v8  ;;  %v12533_v12 = vld [vmem:[%s15453_s10 + $0x5c0] sm:$0xff]   ;;  %v10950_v60 = vld [vmem:[%s15452_s9 + $0x10] sm:$0xff] }
0x1296   :  { %8962 = vmatprep.mubr.bf16.mxu0 %v12822_v2  ;;  %9005 = vmatprep.mubr.bf16.mxu1 %v12822_v2  ;;  %v12501_v2 = vld [vmem:[%s15453_s10 + $0x4c0] sm:$0xff]   ;;  %v8272_v8 = vrot.slane %v10950_v60, %v12949_v14  ;;  %v8280_v0 = vrot.slane %v10950_v60, %v13823_v27  ;;  %v8276_v16 = vrot.slane %v10950_v60, %v12956_v17 }
0x1297   :  { %v8284_v24 = vrot.slane %v10950_v60, %v13829_v31 }
0x1298   :  { %8933 = vmatpush1.bf16.msra.mxu0 %v10980_v18  ;;  %8976 = vmatpush1.bf16.msra.mxu1 %v10982_v41 }
0x1299   :  { %8934 = vmatprep.subr.bf16.mxu0 %v10997_v53  ;;  %8977 = vmatprep.subr.bf16.mxu1 %v10999_v51 }
0x129c   :  { %8935 = vmatpush1.bf16.msra.mxu0 %v10996_v47  ;;  %8978 = vmatpush1.bf16.msra.mxu1 %v10998_v32 }
0x129d   :  { %8936 = vmatprep.subr.bf16.mxu0 %v11013_v52  ;;  %8979 = vmatprep.subr.bf16.mxu1 %v11015_v45 }
0x12a0   :  { %8937 = vmatpush1.bf16.msra.mxu0 %v11012_v54  ;;  %8980 = vmatpush1.bf16.msra.mxu1 %v11014_v22 }
0x12a1   :  { %11728 = vmatprep.subr.bf16.mxu0 %v12500_v56  ;;  %11750 = vmatprep.subr.bf16.mxu1 %v12501_v2 }
0x12a3   :  { %11022 = vmatmul.mubr.msk.bf16.vlgmr.msra.gmra.mrb[116].mxu0 %vm109_vm0, %v14814_v9  ;;  %11023 = vmatmul.mubr.msk.bf16.vlgmr.msra.gmra.mrb[120].mxu1 %vm109_vm0, %v14814_v9  ;;  %v12509_v9 = vld [vmem:[%s15453_s10 + $0x4d0] sm:$0xff]  }
0x12a4   :  { %11729 = vmatpush3.bf16.msra.mxu0 %v12502_v1  ;;  %11751 = vmatpush3.bf16.msra.mxu1 %v12503_v30 }
0x12a5   :  { %11730 = vmatprep.subr.bf16.mxu0 %v12504_v58  ;;  %11752 = vmatprep.subr.bf16.mxu1 %v12505_v36 }
0x12a8   :  { %11731 = vmatpush3.bf16.msra.mxu0 %v12506_v35  ;;  %11753 = vmatpush3.bf16.msra.mxu1 %v12507_v3 }
0x12a9   :  { %11732 = vmatprep.subr.bf16.mxu0 %v12508_v19  ;;  %11754 = vmatprep.subr.bf16.mxu1 %v12509_v9 }
0x12ac   :  { %11733 = vmatpush3.bf16.msra.mxu0 %v12510_v61  ;;  %11755 = vmatpush3.bf16.msra.mxu1 %v12511_v4 }
0x12ad   :  { %11734 = vmatprep.subr.bf16.mxu0 %v12512_v40  ;;  %11756 = vmatprep.subr.bf16.mxu1 %v12513_v39  ;;  %v12534_v39 = vld [vmem:[%s15453_s10 + $0x500] sm:$0xff]  }
0x12b0   :  { %11735 = vmatpush3.bf16.msra.mxu0 %v12514_v46  ;;  %11757 = vmatpush3.bf16.msra.mxu1 %v12515_v37  ;;  %v12535_v46 = vld [vmem:[%s15453_s10 + $0x580] sm:$0xff]   ;;  %v12536_v37 = vld [vmem:[%s15453_s10 + $0x548] sm:$0xff]  }
0x12b1   :  { %11736 = vmatprep.subr.bf16.mxu0 %v12516_v49  ;;  %11758 = vmatprep.subr.bf16.mxu1 %v12517_v15  ;;  %v12537_v49 = vld [vmem:[%s15453_s10 + $0x5c8] sm:$0xff]  }
0x12b2   :  { %v12538_v15 = vld [vmem:[%s15453_s10 + $0x508] sm:$0xff]  }
0x12b4   :  { %11737 = vmatpush3.bf16.msra.mxu0 %v12518_v26  ;;  %11759 = vmatpush3.bf16.msra.mxu1 %v12519_v43  ;;  %v12539_v26 = vld [vmem:[%s15453_s10 + $0x588] sm:$0xff]   ;;  %v8288_v43 = vrot.slane %v10950_v60, %v13848_v6 }
0x12b5   :  { %11738 = vmatprep.subr.bf16.mxu0 %v12520_v59  ;;  %11760 = vmatprep.subr.bf16.mxu1 %v12521_v38  ;;  %v8296_v59 = vrot.slane %v10950_v60, %v13851_v7  ;;  %v12540_v38 = vld [vmem:[%s15453_s10 + $0x550] sm:$0xff]  }
0x12b8   :  { %11739 = vmatpush3.bf16.msra.mxu0 %v12522_v11  ;;  %11761 = vmatpush3.bf16.msra.mxu1 %v12523_v57  ;;  %v12541_v11 = vld [vmem:[%s15453_s10 + $0x5d0] sm:$0xff]   ;;  %v8292_v57 = vrot.slane %v10950_v60, %v13854_v33 }
0x12b9   :  { %11740 = vmatprep.subr.bf16.mxu0 %v12524_v62  ;;  %11762 = vmatprep.subr.bf16.mxu1 %v12525_v21  ;;  %v8300_v62 = vrot.slane %v10950_v60, %v13857_v10  ;;  %v12545_v60 = vld [vmem:[%s15453_s10 + $0x5d8] sm:$0xff]  }
0x12bc   :  { %11741 = vmatpush3.bf16.msra.mxu0 %v12526_v50  ;;  %11763 = vmatpush3.bf16.msra.mxu1 %v12527_v13  ;;  %v12542_v13 = vld [vmem:[%s15453_s10 + $0x510] sm:$0xff]  }
0x12bd   :  { %11742 = vmatprep.subr.bf16.mxu0 %v12528_v28  ;;  %11764 = vmatprep.subr.bf16.mxu1 %v12529_v44  ;;  %v12543_v28 = vld [vmem:[%s15453_s10 + $0x590] sm:$0xff]  }
0x12c0   :  { %11743 = vmatpush3.bf16.msra.mxu0 %v12530_v25  ;;  %11765 = vmatpush3.bf16.msra.mxu1 %v12531_v23 }
0x12c1   :  { %11772 = vmatprep.subr.bf16.mxu0 %v12532_v29  ;;  %11794 = vmatprep.subr.bf16.mxu1 %v12533_v12  ;;  %v12544_v12 = vld [vmem:[%s15453_s10 + $0x558] sm:$0xff]  }
0x1346   :  { %v8706_v34 = vpop.f32.mrb[104].mxu0  ;;  %v8749_v18 = vpop.f32.mrb[108].mxu1 }
0x1347   :  { %v8707_v41 = vadd.f32 %v8706_v34, %v8272_v8  ;;  %v8750_v53 = vadd.f32 %v8749_v18, %v8280_v0  ;;  %v8708_v51 = vpop.f32.mrb[105].mxu0  ;;  %v8751_v48 = vpop.f32.mrb[109].mxu1 }
0x1348   :  { %v8709_v63 = vadd.f32 %v8708_v51, %v8276_v16  ;;  %v8752_v55 = vadd.f32 %v8751_v48, %v8284_v24  ;;  %v8710_v20 = vpop.f32.mrb[106].mxu0  ;;  %v8753_v47 = vpop.f32.mrb[110].mxu1 }
0x1349   :  { %v8711_v32 = vadd.f32 %v8710_v20, %v8272_v8  ;;  %v8754_v52 = vadd.f32 %v8753_v47, %v8280_v0  ;;  %v8712_v45 = vpop.f32.mrb[107].mxu0  ;;  %v8755_v54 = vpop.f32.mrb[111].mxu1  ;;  %v9016_v2 = vmax.f32 %v8707_v41, 0.0  ;;  %v9018_v1 = vmax.f32 %v8750_v53, 0.0 }
0x134a   :  { %v8713_v22 = vadd.f32 %v8712_v45, %v8276_v16  ;;  %v8756_v56 = vadd.f32 %v8755_v54, %v8284_v24  ;;  %v9017_v36 = vmax.f32 %v8709_v63, 0.0  ;;  %v9019_v35 = vmax.f32 %v8752_v55, 0.0  ;;  %v12546_v63 = vld [vmem:[%s15453_s10 + $0x518] sm:$0xff]   ;;  %v12548_v45 = vld [vmem:[%s15453_s10 + $0x560] sm:$0xff]  }
0x134b   :  { %v9032_v30 = vmax.f32 %v8711_v32, 0.0  ;;  %v9034_v58 = vmax.f32 %v8754_v52, 0.0  ;;  %v12547_v55 = vld [vmem:[%s15453_s10 + $0x598] sm:$0xff]   ;;  %v12549_v54 = vld [vmem:[%s15453_s10 + $0x5e0] sm:$0xff]  }
0x134c   :  { %v9033_v3 = vmax.f32 %v8713_v22, 0.0  ;;  %v9035_v19 = vmax.f32 %v8756_v56, 0.0 }
0x134d   :  { %v9048_v9 = vpack.c.bf16 %v9032_v30, %v9016_v2  ;;  %v9050_v61 = vpack.c.bf16 %v9034_v58, %v9018_v1 }
0x134e   :  { %v9049_v4 = vpack.c.bf16 %v9033_v3, %v9017_v36  ;;  %v9051_v40 = vpack.c.bf16 %v9035_v19, %v9019_v35  ;;  %v12550_v3 = vld [vmem:[%s15453_s10 + $0x520] sm:$0xff]  }
0x134f   :  { %v12551_v19 = vld [vmem:[%s15453_s10 + $0x5a0] sm:$0xff]  }
0x1350   :  { %10129 = vmatprep.mubr.bf16.mxu0 %v9049_v4  ;;  %10170 = vmatprep.mubr.bf16.mxu1 %v9051_v40  ;;  %v15138_v4 = vld [vmem:[%s15452_s9 + $0x18] sm:$0xff]  ;;  %v12554_v40 = vld [vmem:[%s15453_s10 + $0x528] sm:$0xff]  }
0x1351   :  { %10130 = vmatmul.mubr.bf16.vlgmr.msra.gmra.mrb[120].mxu0 %v9048_v9  ;;  %10171 = vmatmul.mubr.bf16.vlgmr.msra.gmra.mrb[124].mxu1 %v9050_v61  ;;  %v12552_v9 = vld [vmem:[%s15453_s10 + $0x568] sm:$0xff]  }
0x1352   :  { %11773 = vmatpush3.bf16.msra.mxu0 %v12534_v39  ;;  %11795 = vmatpush3.bf16.msra.mxu1 %v12535_v46  ;;  %v12553_v61 = vld [vmem:[%s15453_s10 + $0x5e8] sm:$0xff]   ;;  %v8304_v46 = vrot.slane %v15138_v4, %v12949_v14 }
0x1353   :  { %11774 = vmatprep.subr.bf16.mxu0 %v12536_v37  ;;  %11796 = vmatprep.subr.bf16.mxu1 %v12537_v49  ;;  %v12555_v39 = vld [vmem:[%s15453_s10 + $0x5a8] sm:$0xff]   ;;  %v8312_v37 = vrot.slane %v15138_v4, %v13823_v27  ;;  %v12556_v49 = vld [vmem:[%s15453_s10 + $0x570] sm:$0xff]  }
0x1354   :  { %v12558_v27 = vld [vmem:[%s15453_s10 + $0x530] sm:$0xff]  }
0x1356   :  { %v8792_v21 = vpop.f32.mrb[108].mxu0  ;;  %v8835_v50 = vpop.f32.mrb[112].mxu1  ;;  %11775 = vmatpush3.bf16.msra.mxu0 %v12538_v15  ;;  %11797 = vmatpush3.bf16.msra.mxu1 %v12539_v26  ;;  %v12557_v15 = vld [vmem:[%s15453_s10 + $0x5f0] sm:$0xff]   ;;  %v8308_v26 = vrot.slane %v15138_v4, %v12956_v17 }
0x1357   :  { %v8793_v44 = vadd.f32 %v8792_v21, %v8288_v43  ;;  %v8836_v25 = vadd.f32 %v8835_v50, %v8296_v59  ;;  %v8794_v23 = vpop.f32.mrb[109].mxu0  ;;  %v8837_v29 = vpop.f32.mrb[113].mxu1  ;;  %11776 = vmatprep.subr.bf16.mxu0 %v12540_v38  ;;  %11798 = vmatprep.subr.bf16.mxu1 %v12541_v11  ;;  %v12559_v11 = vld [vmem:[%s15453_s10 + $0x5b0] sm:$0xff]  }
0x1358   :  { %v8795_v8 = vadd.f32 %v8794_v23, %v8292_v57  ;;  %v8838_v0 = vadd.f32 %v8837_v29, %v8300_v62  ;;  %v8796_v16 = vpop.f32.mrb[110].mxu0  ;;  %v8839_v24 = vpop.f32.mrb[114].mxu1 }
0x1359   :  { %v8797_v34 = vadd.f32 %v8796_v16, %v8288_v43  ;;  %v8840_v18 = vadd.f32 %v8839_v24, %v8296_v59  ;;  %v8798_v41 = vpop.f32.mrb[111].mxu0  ;;  %v8841_v53 = vpop.f32.mrb[115].mxu1  ;;  %v9020_v20 = vmax.f32 %v8793_v44, 0.0  ;;  %v9022_v47 = vmax.f32 %v8836_v25, 0.0  ;;  %v12562_v24 = vld [vmem:[%s15453_s10 + $0x538] sm:$0xff]  }
0x135a   :  { %v8799_v51 = vadd.f32 %v8798_v41, %v8292_v57  ;;  %v8842_v48 = vadd.f32 %v8841_v53, %v8300_v62  ;;  %11777 = vmatpush3.bf16.msra.mxu0 %v12542_v13  ;;  %11799 = vmatpush3.bf16.msra.mxu1 %v12543_v28  ;;  %v9021_v22 = vmax.f32 %v8795_v8, 0.0  ;;  %v9023_v56 = vmax.f32 %v8838_v0, 0.0  ;;  %v12561_v13 = vld [vmem:[%s15453_s10 + $0x5f8] sm:$0xff]  }
0x135b   :  { %v9036_v32 = vmax.f32 %v8797_v34, 0.0  ;;  %v9038_v52 = vmax.f32 %v8840_v18, 0.0  ;;  %11778 = vmatprep.subr.bf16.mxu0 %v12544_v12  ;;  %11800 = vmatprep.subr.bf16.mxu1 %v12545_v60  ;;  %v8316_v43 = vrot.slane %v15138_v4, %v13829_v31  ;;  %v12560_v31 = vld [vmem:[%s15453_s10 + $0x578] sm:$0xff]  }
0x135c   :  { %v9037_v2 = vmax.f32 %v8799_v51, 0.0  ;;  %v9039_v1 = vmax.f32 %v8842_v48, 0.0  ;;  %v12563_v34 = vld [vmem:[%s15453_s10 + $0x5b8] sm:$0xff]   ;;  %v12564_v48 = vld [vmem:[%s15453_s10 + $0x640] sm:$0xff]  }
0x135d   :  { %v15119_v30 = vpack.c.bf16 %v9036_v32, %v9020_v20  ;;  %v15121_v58 = vpack.c.bf16 %v9038_v52, %v9022_v47 }
0x135e   :  { %v9053_v36 = vpack.c.bf16 %v9037_v2, %v9021_v22  ;;  %v9055_v35 = vpack.c.bf16 %v9039_v1, %v9023_v56  ;;  %11779 = vmatpush3.bf16.msra.mxu0 %v12546_v63  ;;  %11801 = vmatpush3.bf16.msra.mxu1 %v12547_v55  ;;  %v12565_v63 = vld [vmem:[%s15453_s10 + $0x6c0] sm:$0xff]   ;;  %v12568_v1 = vld [vmem:[%s15453_s10 + $0x648] sm:$0xff]  }
0x135f   :  { %11780 = vmatprep.subr.bf16.mxu0 %v12548_v45  ;;  %11802 = vmatprep.subr.bf16.mxu1 %v12549_v54  ;;  %v12566_v56 = vld [vmem:[%s15453_s10 + $0x600] sm:$0xff]  }
0x1360   :  { %10211 = vmatprep.mubr.bf16.mxu0 %v9053_v36  ;;  %10252 = vmatprep.mubr.bf16.mxu1 %v9055_v35  ;;  %v12567_v2 = vld [vmem:[%s15453_s10 + $0x680] sm:$0xff]   ;;  %v12569_v36 = vld [vmem:[%s15453_s10 + $0x6c8] sm:$0xff]  }
0x1361   :  { %v12570_v35 = vld [vmem:[%s15453_s10 + $0x608] sm:$0xff]  }
0x1362   :  { %11781 = vmatpush3.bf16.msra.mxu0 %v12550_v3  ;;  %11803 = vmatpush3.bf16.msra.mxu1 %v12551_v19  ;;  %v8320_v3 = vrot.slane %v15138_v4, %v13848_v6  ;;  %v8328_v19 = vrot.slane %v15138_v4, %v13851_v7  ;;  %v12573_v6 = vld [vmem:[%s15453_s10 + $0x6d0] sm:$0xff]  }
0x1363   :  { %11782 = vmatprep.subr.bf16.mxu0 %v12552_v9  ;;  %11804 = vmatprep.subr.bf16.mxu1 %v12553_v61  ;;  %v8324_v9 = vrot.slane %v15138_v4, %v13854_v33  ;;  %v8332_v61 = vrot.slane %v15138_v4, %v13857_v10  ;;  %v12575_v33 = vld [vmem:[%s15453_s10 + $0x690] sm:$0xff]   ;;  %v12576_v10 = vld [vmem:[%s15453_s10 + $0x658] sm:$0xff]  }
0x1366   :  { %v8878_v59 = vpop.f32.mrb[112].mxu0  ;;  %v8921_v38 = vpop.f32.mrb[116].mxu1  ;;  %11783 = vmatpush3.bf16.msra.mxu0 %v12554_v40  ;;  %11805 = vmatpush3.bf16.msra.mxu1 %v12555_v39  ;;  %v12574_v39 = vld [vmem:[%s15453_s10 + $0x610] sm:$0xff]  }
0x1367   :  { %v8879_v57 = vadd.f32 %v8878_v59, %v8304_v46  ;;  %v8922_v62 = vadd.f32 %v8921_v38, %v8312_v37  ;;  %v8880_v21 = vpop.f32.mrb[113].mxu0  ;;  %v8923_v50 = vpop.f32.mrb[117].mxu1  ;;  %11784 = vmatprep.subr.bf16.mxu0 %v12556_v49  ;;  %11806 = vmatprep.subr.bf16.mxu1 %v12557_v15  ;;  %v12577_v38 = vld [vmem:[%s15453_s10 + $0x6d8] sm:$0xff]  }
0x1368   :  { %v8881_v28 = vadd.f32 %v8880_v21, %v8308_v26  ;;  %v8924_v44 = vadd.f32 %v8923_v50, %v8316_v43  ;;  %v8882_v25 = vpop.f32.mrb[114].mxu0  ;;  %v8925_v23 = vpop.f32.mrb[118].mxu1 }
0x1369   :  { %v8883_v29 = vadd.f32 %v8882_v25, %v8304_v46  ;;  %v8926_v12 = vadd.f32 %v8925_v23, %v8312_v37  ;;  %v8884_v60 = vpop.f32.mrb[115].mxu0  ;;  %v8927_v8 = vpop.f32.mrb[119].mxu1  ;;  %v9024_v18 = vmax.f32 %v8879_v57, 0.0  ;;  %v9026_v41 = vmax.f32 %v8922_v62, 0.0  ;;  %v12579_v23 = vld [vmem:[%s15453_s10 + $0x698] sm:$0xff]  }
0x136a   :  { %v8885_v0 = vadd.f32 %v8884_v60, %v8308_v26  ;;  %v8928_v16 = vadd.f32 %v8927_v8, %v8316_v43  ;;  %11785 = vmatpush3.bf16.msra.mxu0 %v12558_v27  ;;  %11807 = vmatpush3.bf16.msra.mxu1 %v12559_v11  ;;  %v9025_v55 = vmax.f32 %v8881_v28, 0.0  ;;  %v9027_v20 = vmax.f32 %v8924_v44, 0.0 }
0x136b   :  { %v9040_v53 = vmax.f32 %v8883_v29, 0.0  ;;  %v9042_v51 = vmax.f32 %v8926_v12, 0.0  ;;  %11786 = vmatprep.subr.bf16.mxu0 %v12560_v31  ;;  %11808 = vmatprep.subr.bf16.mxu1 %v12561_v13  ;;  %v12578_v31 = vld [vmem:[%s15453_s10 + $0x618] sm:$0xff]   ;;  %v12580_v29 = vld [vmem:[%s15453_s10 + $0x660] sm:$0xff]  }
0x136c   :  { %v9041_v47 = vmax.f32 %v8885_v0, 0.0  ;;  %v9043_v32 = vmax.f32 %v8928_v16, 0.0  ;;  %v12581_v16 = vld [vmem:[%s15453_s10 + $0x6e0] sm:$0xff]  }
0x136d   :  { %v15184_v52 = vpack.c.bf16 %v9040_v53, %v9024_v18  ;;  %v15186_v45 = vpack.c.bf16 %v9042_v51, %v9026_v41  ;;  %v12582_v53 = vld [vmem:[%s15453_s10 + $0x620] sm:$0xff]  }
0x136e   :  { %v9057_v54 = vpack.c.bf16 %v9041_v47, %v9025_v55  ;;  %v9059_v22 = vpack.c.bf16 %v9043_v32, %v9027_v20  ;;  %11787 = vmatpush3.bf16.msra.mxu0 %v12562_v24  ;;  %11809 = vmatpush3.bf16.msra.mxu1 %v12563_v34  ;;  %v12583_v51 = vld [vmem:[%s15453_s10 + $0x6a0] sm:$0xff]   ;;  %v12586_v55 = vld [vmem:[%s15453_s10 + $0x628] sm:$0xff]   ;;  %v12588_v47 = vld [vmem:[%s15453_s10 + $0x670] sm:$0xff]  }
0x136f   :  { %11816 = vmatprep.subr.bf16.mxu0 %v12564_v48  ;;  %11838 = vmatprep.subr.bf16.mxu1 %v12565_v63  ;;  %v12584_v48 = vld [vmem:[%s15453_s10 + $0x668] sm:$0xff]   ;;  %v12589_v32 = vld [vmem:[%s15453_s10 + $0x6f0] sm:$0xff]  }
0x1370   :  { %v12585_v63 = vld [vmem:[%s15453_s10 + $0x6e8] sm:$0xff]  }
0x1371   :  { %10212 = vmatmul.mubr.bf16.vlgmr.msra.gmra.mrb[124].mxu0 %v15119_v30  ;;  %10253 = vmatmul.mubr.bf16.vlgmr.msra.gmra.mrb[128].mxu1 %v15121_v58  ;;  %v12571_v30 = vld [vmem:[%s15453_s10 + $0x688] sm:$0xff]   ;;  %v12572_v58 = vld [vmem:[%s15453_s10 + $0x650] sm:$0xff]  }
0x1372   :  { %11817 = vmatpush3.bf16.msra.mxu0 %v12566_v56  ;;  %10293 = vmatprep.mubr.bf16.mxu0 %v9057_v54  ;;  %v12587_v20 = vld [vmem:[%s15453_s10 + $0x6a8] sm:$0xff]   ;;  %v12590_v54 = vld [vmem:[%s15453_s10 + $0x630] sm:$0xff]   ;;  %v12592_v56 = vld [vmem:[%s15453_s10 + $0x678] sm:$0xff]  }
0x1373   :  { %11839 = vmatpush3.bf16.msra.mxu1 %v12567_v2  ;;  %10334 = vmatprep.mubr.bf16.mxu1 %v9059_v22  ;;  %v12591_v22 = vld [vmem:[%s15453_s10 + $0x6b0] sm:$0xff]   ;;  %v12593_v2 = vld [vmem:[%s15453_s10 + $0x6f8] sm:$0xff]  }
0x1374   :  { %11818 = vmatprep.subr.bf16.mxu0 %v12568_v1  ;;  %11840 = vmatprep.subr.bf16.mxu1 %v12569_v36  ;;  %v12594_v1 = vld [vmem:[%s15453_s10 + $0x638] sm:$0xff]  }
0x1375   :  { %v12595_v36 = vld [vmem:[%s15453_s10 + $0x6b8] sm:$0xff]  }
0x1376   :  { %v8964_v7 = vpop.f32.mrb[116].mxu0  ;;  %v9007_v40 = vpop.f32.mrb[120].mxu1  ;;  %11819 = vmatpush3.bf16.msra.mxu0 %v12570_v35  ;;  %v12596_v35 = vld [vmem:[%s15453_s10 + $0x740] sm:$0xff]  }
0x1377   :  { %v8965_v46 = vadd.f32 %v8964_v7, %v8320_v3  ;;  %v9008_v37 = vadd.f32 %v9007_v40, %v8328_v19  ;;  %11841 = vmatpush3.bf16.msra.mxu1 %v12571_v30  ;;  %v8966_v49 = vpop.f32.mrb[117].mxu0  ;;  %v9009_v15 = vpop.f32.mrb[121].mxu1  ;;  %11820 = vmatprep.subr.bf16.mxu0 %v12572_v58  ;;  %v12599_v30 = vld [vmem:[%s15453_s10 + $0x780] sm:$0xff]   ;;  %v12600_v58 = vld [vmem:[%s15453_s10 + $0x748] sm:$0xff]   ;;  %v12606_v7 = vld [vmem:[%s15453_s10 + $0x710] sm:$0xff]  }
0x1378   :  { %v8967_v4 = vadd.f32 %v8966_v49, %v8324_v9  ;;  %v9010_v26 = vadd.f32 %v9009_v15, %v8332_v61  ;;  %v8968_v43 = vpop.f32.mrb[118].mxu0  ;;  %v9011_v59 = vpop.f32.mrb[122].mxu1  ;;  %11842 = vmatprep.subr.bf16.mxu1 %v12573_v6  ;;  %v12603_v6 = vld [vmem:[%s15453_s10 + $0x788] sm:$0xff]   ;;  %v12607_v40 = vld [vmem:[%s15453_s10 + $0x790] sm:$0xff]   ;;  %v12611_v49 = vld [vmem:[%s15453_s10 + $0x798] sm:$0xff]  }
0x1379   :  { %v8969_v27 = vadd.f32 %v8968_v43, %v8320_v3  ;;  %v9012_v11 = vadd.f32 %v9011_v59, %v8328_v19  ;;  %v8970_v57 = vpop.f32.mrb[119].mxu0  ;;  %v9013_v62 = vpop.f32.mrb[123].mxu1  ;;  %v9028_v13 = vmax.f32 %v8965_v46, 0.0  ;;  %v9030_v28 = vmax.f32 %v9008_v37, 0.0  ;;  %v12597_v3 = vld [vmem:[%s15453_s10 + $0x7c0] sm:$0xff]   ;;  %v12609_v46 = vld [vmem:[%s15453_s10 + $0x7d8] sm:$0xff]  }
0x137a   :  { %v8971_v21 = vadd.f32 %v8970_v57, %v8324_v9  ;;  %v9014_v50 = vadd.f32 %v9013_v62, %v8332_v61  ;;  %11821 = vmatpush3.bf16.msra.mxu0 %v12574_v39  ;;  %v9029_v12 = vmax.f32 %v8967_v4, 0.0  ;;  %v9031_v60 = vmax.f32 %v9010_v26, 0.0  ;;  %v12598_v19 = vld [vmem:[%s15453_s10 + $0x700] sm:$0xff]   ;;  %v12601_v9 = vld [vmem:[%s15453_s10 + $0x7c8] sm:$0xff]   ;;  %v12608_v39 = vld [vmem:[%s15453_s10 + $0x758] sm:$0xff]  }
0x137b   :  { %v9044_v44 = vmax.f32 %v8969_v27, 0.0  ;;  %v9046_v25 = vmax.f32 %v9012_v11, 0.0  ;;  %11843 = vmatpush3.bf16.msra.mxu1 %v12575_v33  ;;  %11822 = vmatprep.subr.bf16.mxu0 %v12576_v10  ;;  %v12602_v61 = vld [vmem:[%s15453_s10 + $0x708] sm:$0xff]   ;;  %v12610_v37 = vld [vmem:[%s15453_s10 + $0x718] sm:$0xff]   ;;  %v12612_v15 = vld [vmem:[%s15453_s10 + $0x760] sm:$0xff]  }
0x137c   :  { %v9045_v8 = vmax.f32 %v8971_v21, 0.0  ;;  %v9047_v0 = vmax.f32 %v9014_v50, 0.0  ;;  %11844 = vmatprep.subr.bf16.mxu1 %v12577_v38  ;;  %v12613_v33 = vld [vmem:[%s15453_s10 + $0x7e0] sm:$0xff]   ;;  %v12616_v26 = vld [vmem:[%s15453_s10 + $0x768] sm:$0xff]   ;;  %v12620_v27 = vld [vmem:[%s15453_s10 + $0x770] sm:$0xff]  }
0x137d   :  { %v15246_v24 = vpack.c.bf16 %v9044_v44, %v9028_v13  ;;  %v15248_v34 = vpack.c.bf16 %v9046_v25, %v9030_v28  ;;  %v12614_v10 = vld [vmem:[%s15453_s10 + $0x720] sm:$0xff]   ;;  %v12617_v43 = vld [vmem:[%s15453_s10 + $0x7e8] sm:$0xff]   ;;  %v12621_v11 = vld [vmem:[%s15453_s10 + $0x7f0] sm:$0xff]  }
0x137e   :  { %v9061_v18 = vpack.c.bf16 %v9045_v8, %v9029_v12  ;;  %v9063_v41 = vpack.c.bf16 %v9047_v0, %v9031_v60  ;;  %11823 = vmatpush3.bf16.msra.mxu0 %v12578_v31  ;;  %v12615_v4 = vld [vmem:[%s15453_s10 + $0x7a0] sm:$0xff]   ;;  %v12618_v59 = vld [vmem:[%s15453_s10 + $0x728] sm:$0xff]   ;;  %v12622_v57 = vld [vmem:[%s15453_s10 + $0x730] sm:$0xff]  }
0x137f   :  { %11845 = vmatpush3.bf16.msra.mxu1 %v12579_v23  ;;  %11824 = vmatprep.subr.bf16.mxu0 %v12580_v29  ;;  %v12619_v38 = vld [vmem:[%s15453_s10 + $0x7a8] sm:$0xff]   ;;  %v12623_v62 = vld [vmem:[%s15453_s10 + $0x7b0] sm:$0xff]   ;;  %v12624_v21 = vld [vmem:[%s15453_s10 + $0x778] sm:$0xff]  }
0x1380   :  { %11846 = vmatprep.subr.bf16.mxu1 %v12581_v16  ;;  %v12625_v50 = vld [vmem:[%s15453_s10 + $0x7f8] sm:$0xff]   ;;  %v11281_v25 = vld [vmem:[%s15454_s11 + $0x1] ss:$0 sm:$0xff] }
0x1381   :  { %v12626_v31 = vld [vmem:[%s15453_s10 + $0x738] sm:$0xff]  }
0x1382   :  { %11825 = vmatpush3.bf16.msra.mxu0 %v12582_v53  ;;  %v12627_v13 = vld [vmem:[%s15453_s10 + $0x7b8] sm:$0xff]  }
0x1383   :  { %11847 = vmatpush3.bf16.msra.mxu1 %v12583_v51  ;;  %11826 = vmatprep.subr.bf16.mxu0 %v12584_v48 }
0x1384   :  { %11848 = vmatprep.subr.bf16.mxu1 %v12585_v63 }
0x1386   :  { %11827 = vmatpush3.bf16.msra.mxu0 %v12586_v55 }
0x1387   :  { %11849 = vmatpush3.bf16.msra.mxu1 %v12587_v20  ;;  %11828 = vmatprep.subr.bf16.mxu0 %v12588_v47 }
0x1388   :  { %11850 = vmatprep.subr.bf16.mxu1 %v12589_v32 }
0x138a   :  { %11829 = vmatpush3.bf16.msra.mxu0 %v12590_v54 }
0x138b   :  { %11851 = vmatpush3.bf16.msra.mxu1 %v12591_v22  ;;  %11830 = vmatprep.subr.bf16.mxu0 %v12592_v56 }
0x138c   :  { %11852 = vmatprep.subr.bf16.mxu1 %v12593_v2 }
0x138e   :  { %11831 = vmatpush3.bf16.msra.mxu0 %v12594_v1 }
0x138f   :  { %11853 = vmatpush3.bf16.msra.mxu1 %v12595_v36  ;;  %11860 = vmatprep.subr.bf16.mxu0 %v12596_v35 }
0x1390   :  { %11882 = vmatprep.subr.bf16.mxu1 %v12597_v3 }
0x1391   :  { %10294 = vmatmul.mubr.bf16.vlgmr.msra.gmra.mrb[128].mxu0 %v15184_v52  ;;  %v12604_v52 = vld [vmem:[%s15453_s10 + $0x750] sm:$0xff]  }
0x1392   :  { %10335 = vmatmul.mubr.bf16.vlgmr.msra.gmra.mrb[132].mxu1 %v15186_v45  ;;  %11861 = vmatpush3.bf16.msra.mxu0 %v12598_v19  ;;  %v12605_v45 = vld [vmem:[%s15453_s10 + $0x7d0] sm:$0xff]  }
0x1393   :  { %10375 = vmatprep.mubr.bf16.mxu0 %v9061_v18  ;;  %11883 = vmatpush3.bf16.msra.mxu1 %v12599_v30 }
0x1394   :  { %10416 = vmatprep.mubr.bf16.mxu1 %v9063_v41  ;;  %11862 = vmatprep.subr.bf16.mxu0 %v12600_v58 }
0x1395   :  { %11884 = vmatprep.subr.bf16.mxu1 %v12601_v9 }
0x1396   :  { %11863 = vmatpush3.bf16.msra.mxu0 %v12602_v61 }
0x1397   :  { %11885 = vmatpush3.bf16.msra.mxu1 %v12603_v6  ;;  %11864 = vmatprep.subr.bf16.mxu0 %v12604_v52 }
0x1398   :  { %11886 = vmatprep.subr.bf16.mxu1 %v12605_v45 }
0x139a   :  { %11865 = vmatpush3.bf16.msra.mxu0 %v12606_v7 }
0x139b   :  { %11887 = vmatpush3.bf16.msra.mxu1 %v12607_v40  ;;  %11866 = vmatprep.subr.bf16.mxu0 %v12608_v39 }
0x139c   :  { %11888 = vmatprep.subr.bf16.mxu1 %v12609_v46 }
0x139e   :  { %11867 = vmatpush3.bf16.msra.mxu0 %v12610_v37 }
0x139f   :  { %11889 = vmatpush3.bf16.msra.mxu1 %v12611_v49  ;;  %11868 = vmatprep.subr.bf16.mxu0 %v12612_v15 }
0x13a0   :  { %11890 = vmatprep.subr.bf16.mxu1 %v12613_v33 }
0x13a2   :  { %11869 = vmatpush3.bf16.msra.mxu0 %v12614_v10 }
0x13a3   :  { %11891 = vmatpush3.bf16.msra.mxu1 %v12615_v4  ;;  %11870 = vmatprep.subr.bf16.mxu0 %v12616_v26 }
0x13a4   :  { %11892 = vmatprep.subr.bf16.mxu1 %v12617_v43 }
0x13a6   :  { %11871 = vmatpush3.bf16.msra.mxu0 %v12618_v59 }
0x13a7   :  { %11893 = vmatpush3.bf16.msra.mxu1 %v12619_v38  ;;  %11872 = vmatprep.subr.bf16.mxu0 %v12620_v27 }
0x13a8   :  { %11894 = vmatprep.subr.bf16.mxu1 %v12621_v11 }
0x13aa   :  { %11873 = vmatpush3.bf16.msra.mxu0 %v12622_v57 }
0x13ab   :  { %11895 = vmatpush3.bf16.msra.mxu1 %v12623_v62  ;;  %11874 = vmatprep.subr.bf16.mxu0 %v12624_v21 }
0x13ac   :  { %11896 = vmatprep.subr.bf16.mxu1 %v12625_v50 }
0x13ae   :  { %11875 = vmatpush3.bf16.msra.mxu0 %v12626_v31 }
0x13af   :  { %11897 = vmatpush3.bf16.msra.mxu1 %v12627_v13 }
0x13b1   :  { %10376 = vmatmul.mubr.bf16.vlgmr.msra.gmra.mrb[132].mxu0 %v15246_v24 }
0x13b2   :  { %10417 = vmatmul.mubr.bf16.vlgmr.msra.gmra.mrb[136].mxu1 %v15248_v34 }
0x1424   :  { %v11744_v28 = vpop.f32.mrb[120].mxu0  ;;  %v11766_v44 = vpop.f32.mrb[124].mxu1 }
0x1425   :  { %v11745_v23 = vpop.f32.mrb[121].mxu0  ;;  %v11767_v29 = vpop.f32.mrb[125].mxu1 }
0x1426   :  { %v11746_v12 = vadd.f32 %v11745_v23, %v11744_v28  ;;  %v11768_v60 = vadd.f32 %v11767_v29, %v11766_v44  ;;  %v11747_v8 = vpop.f32.mrb[122].mxu0  ;;  %v11769_v0 = vpop.f32.mrb[126].mxu1 }
0x1427   :  { %v11748_v16 = vpop.f32.mrb[123].mxu0  ;;  %v11770_v18 = vpop.f32.mrb[127].mxu1 }
0x1428   :  { %v10132_v41 = vadd.f32 %v11746_v12, %v11281_v25  ;;  %v11749_v53 = vadd.f32 %v11748_v16, %v11747_v8  ;;  %v11771_v51 = vadd.f32 %v11770_v18, %v11769_v0 }
0x142a   :  { %v10173_v24 = vadd.f32 %v11768_v60, %v10132_v41  ;;  %v10135_v48 = vadd.f32 %v11749_v53, %v11281_v25 }
0x142c   :  { %v10176_v34 = vadd.f32 %v11771_v51, %v10135_v48 }
0x1444   :  { %v11788_v63 = vpop.f32.mrb[124].mxu0  ;;  %v11810_v55 = vpop.f32.mrb[128].mxu1 }
0x1445   :  { %v11789_v20 = vpop.f32.mrb[125].mxu0  ;;  %v11811_v47 = vpop.f32.mrb[129].mxu1 }
0x1446   :  { %v11790_v32 = vadd.f32 %v11789_v20, %v11788_v63  ;;  %v11812_v54 = vadd.f32 %v11811_v47, %v11810_v55  ;;  %v11791_v22 = vpop.f32.mrb[126].mxu0  ;;  %v11813_v56 = vpop.f32.mrb[130].mxu1 }
0x1447   :  { %v11792_v2 = vpop.f32.mrb[127].mxu0  ;;  %v11814_v1 = vpop.f32.mrb[131].mxu1 }
0x1448   :  { %v10214_v36 = vadd.f32 %v11790_v32, %v10173_v24  ;;  %v11793_v35 = vadd.f32 %v11792_v2, %v11791_v22  ;;  %v11815_v3 = vadd.f32 %v11814_v1, %v11813_v56  ;;  %v11410_v22 = vld [vmem:[%s15450_s7 + $0x2] sm:$0x3]  ;;  %s12840_s7 = smov [#allocation2]  }
0x1449   :  { %v10458_v56 = vrot.slane %v11410_v22, %v12949_v14  ;;  %s10513_s0 = sshll.u32 %s12840_s7, 4  ;;  %s10514_s0 = int_to_ptr.vmem [resolvable:$true] %s10513_s0 }
0x144a   :  { %v10255_v19 = vadd.f32 %v11812_v54, %v10214_v36  ;;  %v10217_v30 = vadd.f32 %v11793_v35, %v10176_v34  ;;  %v10464_v36 = vrot.slane %v11410_v22, %v12956_v17  ;;  %s12774_s24 = scalar_lea.vmem %s10514_s0, 256  ;;  %p12779_p1 = scmp.lt.s32.totalorder %s10514_s0, %s10514_s0 }
0x144b   :  { %p12775_p0 = scmp.ne.s32.totalorder %s10514_s0, %s12774_s24  ;;  %p12780_p2 = scmp.lt.s32.totalorder %s12774_s24, %s12774_s24 }
0x144c   :  { %v10258_v58 = vadd.f32 %v11815_v3, %v10217_v30  ;;  %v11411_v30 = vld [vmem:[%s15444_s1] ss:$0 sm:$0xff] }
0x144d   :  { %p12781_p3 = por %p12780_p2, %p12779_p1 }
0x144f   :  { %p12782_p4 = pnand %p12781_p3, %p12775_p0 }
0x1464   :  { %v11832_v9 = vpop.f32.mrb[128].mxu0 }
0x1465   :  { %v11854_v61 = vpop.f32.mrb[132].mxu1  ;;  %v11833_v6 = vpop.f32.mrb[129].mxu0 }
0x1466   :  { %v11834_v52 = vadd.f32 %v11833_v6, %v11832_v9  ;;  %v11855_v45 = vpop.f32.mrb[133].mxu1  ;;  %v11835_v7 = vpop.f32.mrb[130].mxu0 }
0x1467   :  { %v11856_v40 = vadd.f32 %v11855_v45, %v11854_v61  ;;  %v11857_v39 = vpop.f32.mrb[134].mxu1  ;;  %v11836_v46 = vpop.f32.mrb[131].mxu0  ;;  %v11413_v61 = vld [vmem:[%s15444_s1 + $0x1] ss:$0 sm:$0xff] }
0x1468   :  { %v10296_v37 = vadd.f32 %v11834_v52, %v10255_v19  ;;  %v11837_v49 = vadd.f32 %v11836_v46, %v11835_v7  ;;  %v11858_v15 = vpop.f32.mrb[135].mxu1 }
0x1469   :  { %v11859_v33 = vadd.f32 %v11858_v15, %v11857_v39 }
0x146a   :  { %v10337_v10 = vadd.f32 %v11856_v40, %v10296_v37  ;;  %v10299_v4 = vadd.f32 %v11837_v49, %v10258_v58 }
0x146c   :  { %v10340_v26 = vadd.f32 %v11859_v33, %v10299_v4 }
0x1484   :  { %v11876_v43 = vpop.f32.mrb[132].mxu0 }
0x1485   :  { %v11898_v59 = vpop.f32.mrb[136].mxu1  ;;  %v11877_v38 = vpop.f32.mrb[133].mxu0 }
0x1486   :  { %v11878_v27 = vadd.f32 %v11877_v38, %v11876_v43  ;;  %v11899_v11 = vpop.f32.mrb[137].mxu1  ;;  %v11879_v57 = vpop.f32.mrb[134].mxu0 }
0x1487   :  { %v11900_v62 = vadd.f32 %v11899_v11, %v11898_v59  ;;  %v11901_v21 = vpop.f32.mrb[138].mxu1  ;;  %v11880_v50 = vpop.f32.mrb[135].mxu0 }
0x1488   :  { %v10378_v31 = vadd.f32 %v11878_v27, %v10337_v10  ;;  %v11881_v13 = vadd.f32 %v11880_v50, %v11879_v57  ;;  %v11902_v28 = vpop.f32.mrb[139].mxu1 }
0x1489   :  { %v11903_v44 = vadd.f32 %v11902_v28, %v11901_v21 }
0x148a   :  { %v10419_v25 = vadd.f32 %v11900_v62, %v10378_v31  ;;  %v10381_v23 = vadd.f32 %v11881_v13, %v10340_v26 }
0x148c   :  { %v10422_v29 = vadd.f32 %v11903_v44, %v10381_v23  ;;  %v10427_v12 = vadd.f32 %v10419_v25, %v14808_v42 }
0x148e   :  { %v10429_v60 = vsel %vm109_vm0, %v10427_v12, 0.0  ;;  %v10428_v8 = vadd.f32 %v10422_v29, %v14810_v5 }
0x148f   :  { %10430 = vadd.xlane.f32.xlu1 %v10429_v60 }
0x1490   :  { %v10432_v0 = vsel %vm109_vm0, %v10428_v8, 0.0 }
0x1491   :  { %10433 = vadd.xlane.f32.xlu0 %v10432_v0 }
0x151c   :  { %v10431_v16 = vpop.xlane.xlu1 %10430 }
0x151d   :  { %v10435_v18 = vmul.f32 0.015625, %v10431_v16 }
0x151e   :  { %v10434_v41 = vpop.xlane.xlu0 %10433 }
0x151f   :  { %v10437_v53 = vsub.f32 %v10427_v12, %v10435_v18  ;;  %v10436_v51 = vmul.f32 0.015625, %v10434_v41 }
0x1521   :  { %v10438_v24 = vsub.f32 %v10428_v8, %v10436_v51  ;;  %v10439_v48 = vmul.f32 %v10437_v53, %v10437_v53 }
0x1523   :  { %v10441_v34 = vsel %vm109_vm0, %v10439_v48, 0.0  ;;  %v10440_v63 = vmul.f32 %v10438_v24, %v10438_v24 }
0x1524   :  { %10442 = vadd.xlane.f32.xlu1 %v10441_v34 }
0x1525   :  { %v10444_v42 = vsel %vm109_vm0, %v10440_v63, 0.0 }
0x1526   :  { %10445 = vadd.xlane.f32.xlu0 %v10444_v42 }
0x15b1   :  { %v10443_v55 = vpop.xlane.xlu1 %10442 }
0x15b2   :  { %v10447_v5 = vmul.f32 0.015625, %v10443_v55 }
0x15b3   :  { %v10446_v20 = vpop.xlane.xlu0 %10445 }
0x15b4   :  { %v10449_v47 = vadd.f32 1e-05, %v10447_v5  ;;  %v10448_v32 = vmul.f32 0.015625, %v10446_v20 }
0x15b6   :  { %12768 = vrsqrt.f32 %v10449_v47  ;;  %v10450_v54 = vadd.f32 1e-05, %v10448_v32 }
0x15b8   :  { %12770 = vrsqrt.f32 %v10450_v54 }
0x15c0   :  { %v12769_v2 = vpop.eup %12768 }
0x15c1   :  { %v10453_v1 = vmul.f32 %v12769_v2, %v10437_v53 }
0x15c2   :  { %v12771_v35 = vpop.eup %12770 }
0x15c3   :  { %v10454_v3 = vmul.f32 %v12771_v35, %v10438_v24  ;;  %v10459_v19 = vmul.f32 %v10458_v56, %v10453_v1 }
0x15c5   :  { %v10460_v58 = vmul.f32 %v10458_v56, %v10454_v3  ;;  %v10465_v9 = vadd.f32 %v10464_v36, %v10459_v19 }
0x15c7   :  { %v10466_v14 = vadd.f32 %v10464_v36, %v10460_v58  ;;  %v10474_v6 = vadd.f32 %v11411_v30, %v10465_v9 }
0x15c9   :  { %10475 = vst.msk [vmem:[#allocation2] sm:$0xff] %vm109_vm0, %v10474_v6  ;;  %v10476_v17 = vsel %vm109_vm0, %v10474_v6, 0.0  ;;  %v10495_v52 = vadd.f32 %v11413_v61, %v10466_v14 }
0x15ca   :  { %v10477_v45 = vrot.slane %v10476_v17, 4 }
0x15cb   :  { %10497 = vst.msk [vmem:[#allocation2 + $0x8] sm:$0xff] %vm109_vm0, %v10495_v52  ;;  %v10498_v7 = vsel %vm109_vm0, %v10495_v52, 0.0 }
0x15cc   :  { %v10478_v40 = vadd.f32 %v10477_v45, %v10476_v17  ;;  %v10499_v39 = vrot.slane %v10498_v7, 4 }
0x15cd   :  { %12785 = shalt.err (!%p12782_p4)
}
0x15ce   :  { %s12786_s26 = scalar_lea.hbm %s15455_s12, 256 }
0x15cf   :  { %p12787_p5 = scmp.ne.s32.totalorder %s15455_s12, %s12786_s26  ;;  %p12790_p6 = scmp.lt.u32.totalorder %s12786_s26, %s15455_s12 }
0x15d1   :  { %p12792_p7 = pnand %p12790_p6, %p12787_p5 }
0x15d3   :  { %12795 = shalt.err (!%p12792_p7)
}
0x15d4   :  { %s12841_s15 = smov 128   ;;  %v10479_v46 = vrot.slane %v10478_v40, 2  ;;  %v10500_v37 = vadd.f32 %v10499_v39, %v10498_v7  ;;  %vm10485_vm9 = vcmask 516096   ;;  %s12842_s9 = smov [#allocation4]  }
0x15d5   :  { %10519 = dma.vmem_to_hbm [thread:$0]  %s10514_s0, 256, %s15455_s12, [#allocation3], %s12841_s15, %s12841_s15, %s15466_s14  }
0x15d6   :  { %v10480_v49 = vadd.f32 %v10479_v46, %v10478_v40  ;;  %v10501_v15 = vrot.slane %v10500_v37, 2  ;;  %s10525_s19 = sshll.u32 %s12842_s9, 4  ;;  %s10526_s19 = int_to_ptr.vmem [resolvable:$true] %s10525_s19 }
0x15d7   :  { %s12796_s20 = scalar_lea.vmem %s10526_s19, 32  ;;  %p12801_p9 = scmp.lt.s32.totalorder %s10526_s19, %s10526_s19 }
0x15d8   :  { %v10502_v33 = vadd.f32 %v10501_v15, %v10500_v37  ;;  %v10481_v10 = vrot.slane %v10480_v49, 1  ;;  %p12797_p8 = scmp.ne.s32.totalorder %s10526_s19, %s12796_s20  ;;  %p12802_p10 = scmp.lt.s32.totalorder %s12796_s20, %s12796_s20 }
0x15da   :  { %v10482_v4 = vadd.f32 %v10481_v10, %v10480_v49  ;;  %v10503_v26 = vrot.slane %v10502_v33, 1  ;;  %p12803_p11 = por %p12802_p10, %p12801_p9 }
0x15dc   :  { %v10484_v43 = vmul.f32 0.125, %v10482_v4  ;;  %v10504_v59 = vadd.f32 %v10503_v26, %v10502_v33  ;;  %p12804_p12 = pnand %p12803_p11, %p12797_p8 }
0x15de   :  { %10486 = vst.msk [vmem:[#allocation4] sm:$0x1] %vm10485_vm9, %v10484_v43  ;;  %v10505_v38 = vmul.f32 0.125, %v10504_v59 }
0x15e0   :  { %10507 = vst.msk [vmem:[#allocation4 + $0x1] sm:$0x1] %vm10485_vm9, %v10505_v38 }
0x15e1   :  { %12807 = shalt.err (!%p12804_p12)
}
0x15e2   :  { %s12808_s27 = scalar_lea.hbm %s15456_s13, 32 }
0x15e3   :  { %p12809_p13 = scmp.ne.s32.totalorder %s15456_s13, %s12808_s27  ;;  %p12812_p0 = scmp.lt.u32.totalorder %s12808_s27, %s15456_s13 }
0x15e5   :  { %p12814_p1 = pnand %p12812_p0, %p12809_p13 }
0x15e7   :  { %12817 = shalt.err (!%p12814_p1)
}
0x15e8   :  { %s12843_s10 = smov 1  }
0x15e9   :  { %10531 = dma.vmem_to_hbm [thread:$0]  %s10526_s19, 32, %s15456_s13, [#allocation5], %s15468_s16, %s15468_s16, %s12843_s10  }
0x15ea   :  { %12818 = dma.done.wait [#allocation3], 256  }
0x15eb   :  { %12819 = vsyncadd [#allocation3], 4294967040 }
0x15ec   :  { %12820 = dma.done.wait [#allocation5], 32  }
0x15ed   :  { %12821 = vsyncadd [#allocation5], 4294967264 }
0x15ee   :  { %10538 = vsyncpa [#allocation3], 1 }
0x15ef   :  { %10539 = vsyncpa [#allocation5], 1 }

</bundles_post_ra>
